<compile_context>
chip_gen: v5e
topology: v5e:2x2
jax: 0.10.0
libtpu: 0.0.40
codegen_flags: <defaults>
</compile_context>

<pallas_src>
import jax
import jax.numpy as jnp
from jax.experimental import pallas as pl
from jax.experimental.pallas import tpu as pltpu

# Flip to jnp.bfloat16 on v6e/v7x for ~2x MXU throughput (accumulation stays f32 via
# preferred_element_type; validate drift vs the f32 reference before shipping).
MATMUL_DTYPE = jnp.float32

SUBLANES = 8     # f32 sublane multiple
LANES = 128      # lane width


def _vmem_spec():
    return pl.BlockSpec(memory_space=pltpu.MemorySpace.VMEM)


def _make_fused_kernel(Bp, L, H, num_layers, nc_pad):
    md = MATMUL_DTYPE
    f32 = jnp.float32
    H2, H4, H6, H8 = 2 * H, 4 * H, 6 * H, 8 * H

    def kernel(x_ref, proj_w_ref, proj_b_ref, *rest):
        lstm_refs = rest[:4 * num_layers]
        fc_w_ref = rest[4 * num_layers]        # (L, 2H, nc_pad)  step-fused layout
        fc_b_ref = rest[4 * num_layers + 1]    # (1, nc_pad)
        o_ref    = rest[4 * num_layers + 2]    # (Bp, nc_pad)
        gx_ref   = rest[4 * num_layers + 3]    # VMEM scratch (L*Bp, 8H), reused per layer

        # ---- proj_layer: one (L*Bp, T) @ (T, E) matmul for all timesteps ----
        x = x_ref[...].astype(md)                                    # rows = t*Bp + b
        layer_in = (jnp.dot(x, proj_w_ref[...].astype(md),
                            preferred_element_type=f32)
                    + proj_b_ref[...])                               # (L*Bp, E)

        acc = jnp.zeros((Bp, nc_pad), f32)                           # fc accumulator
        fc_b = fc_b_ref[...]

        # ---- bidirectional multi-layer LSTM ----
        for layer in range(num_layers):
            wih_f_ref, wih_b_ref, whh_ref, b_ref = lstm_refs[4 * layer:4 * layer + 4]
            last = (layer == num_layers - 1)

            lin = layer_in.astype(md)                                # (L*Bp, In)
            # bulk time-reversal of the layer input (8-row-aligned block copies,
            # off the critical path) so gx row-block s is step-aligned for BOTH dirs.
            lin_rev = jnp.concatenate(
                [lin[(L - 1 - t) * Bp:(L - t) * Bp, :] for t in range(L)], axis=0)

            # hoisted, step-aligned input projection for all timesteps + both dirs:
            #   gx[s-block, fwd cols] = x(s) @ Wih_f ; gx[s-block, bwd cols] = x(L-1-s) @ Wih_b
            gx_ref[...] = (
                jnp.dot(lin, wih_f_ref[...].astype(md), preferred_element_type=f32)
                + jnp.dot(lin_rev, wih_b_ref[...].astype(md), preferred_element_type=f32)
                + b_ref[...])                                        # (L*Bp, 8H)

            whh = whh_ref[...].astype(md)                            # (2H, 8H) block-diag

            h = jnp.zeros((Bp, H2), f32)                             # [h_fwd | h_bwd]
            c = jnp.zeros((Bp, H2), f32)                             # [c_fwd | c_bwd]
            hs = []
            # Fully-unrolled time loop: ONE matmul + ONE joint cell update per step.
            # TODO(synk): for large L switch to lax.fori_loop(..., unroll=2..4).
            for s in range(L):
                gates = gx_ref[s * Bp:(s + 1) * Bp, :] + jnp.dot(
                    h.astype(md), whh, preferred_element_type=f32)   # (Bp, 8H)
                sig = jax.nn.sigmoid(gates)                          # full-width EUP
                th = jnp.tanh(gates)                                 # full-width EUP
                i_g = sig[:, 0:H2]                                   # [i_f | i_b]
                f_g = sig[:, H2:H4]                                  # [f_f | f_b]
                g_g = th[:, H4:H6]                                   # [g_f | g_b]
                o_g = sig[:, H6:H8]                                  # [o_f | o_b]
                c = f_g * c + i_g * g_g
                h = o_g * jnp.tanh(c)
                if last:
                    # fold fc into the last layer's loop: hidden under the serial
                    # h@W_hh latency chain (fc weight rows pre-reordered per step).
                    acc = acc + jnp.dot(h.astype(md), fc_w_ref[s].astype(md),
                                        preferred_element_type=f32)
                else:
                    hs.append(h)

            if not last:
                # torch feature order per timestep t: [h_fwd(t) | h_bwd(t)];
                # one bulk register assembly, no per-step masked stores.
                layer_in = jnp.concatenate(
                    [jnp.concatenate([hs[t][:, 0:H], hs[L - 1 - t][:, H:H2]], axis=1)
                     for t in range(L)], axis=0)                     # (L*Bp, 2H)
            # TODO(synk): nn.LSTM inter-layer dropout (p=0.1) is training-only; eval
            # semantics are used here.

        o_ref[...] = (acc + fc_b).astype(o_ref.dtype)                # (Bp, 128) lane-dense

    return kernel


# ---------------------------------------------------------------------------
# Parameter construction (deterministic, PyTorch-style uniform(-1/sqrt(k), +1/sqrt(k)))
# Weights are stored in kernel-ready layouts:
#   * gate columns interleaved [i_f, i_b, f_f, f_b, g_f, g_b, o_f, o_b]
#   * whh is the (2H, 8H) block-diagonal fused recurrent weight
#   * fc_w is "step-fused": slab s = rows for [h_fwd(s) | h_bwd(L-1-s)]
# ---------------------------------------------------------------------------
def init_params(key, length, token_size, hidden_size, num_layers,
                num_classes, embed_size):
    f32 = jnp.float32
    H = hidden_size
    params = {}
    k_proj, k_lstm, k_fc = jax.random.split(key, 3)

    def scatter(w4, direction):
        # (..., 4H) gate-major [i,f,g,o] -> (..., 8H) interleaved layout; zeros in the
        # other direction's columns.
        z = jnp.zeros_like(w4[..., :H])
        parts = []
        for g in range(4):
            blk = w4[..., g * H:(g + 1) * H]
            parts += ([blk, z] if direction == 0 else [z, blk])
        return jnp.concatenate(parts, axis=-1)

    # proj_layer: Linear(token_size, embed_size); stored transposed (in, out)
    kp = 1.0 / jnp.sqrt(token_size)
    kw, kb = jax.random.split(k_proj)
    params["proj_w"] = jax.random.uniform(kw, (token_size, embed_size), f32, -kp, kp)
    params["proj_b"] = jax.random.uniform(kb, (1, embed_size), f32, -kp, kp)

    # Bidirectional LSTM layers (gate order i, f, g, o; biases combined b_ih + b_hh)
    kl = 1.0 / jnp.sqrt(hidden_size)
    lstm_params = []
    keys = jax.random.split(k_lstm, num_layers)
    for layer in range(num_layers):
        in_size = embed_size if layer == 0 else 2 * hidden_size
        ks = jax.random.split(keys[layer], 8)
        wih_f = jax.random.uniform(ks[0], (in_size, 4 * H), f32, -kl, kl)
        whh_f = jax.random.uniform(ks[1], (H, 4 * H), f32, -kl, kl)
        b_f = (jax.random.uniform(ks[2], (1, 4 * H), f32, -kl, kl)
               + jax.random.uniform(ks[3], (1, 4 * H), f32, -kl, kl))
        wih_b = jax.random.uniform(ks[4], (in_size, 4 * H), f32, -kl, kl)
        whh_b = jax.random.uniform(ks[5], (H, 4 * H), f32, -kl, kl)
        b_b = (jax.random.uniform(ks[6], (1, 4 * H), f32, -kl, kl)
               + jax.random.uniform(ks[7], (1, 4 * H), f32, -kl, kl))
        lstm_params.append({
            "wih_f": scatter(wih_f, 0),                               # (In, 8H)
            "wih_b": scatter(wih_b, 1),                               # (In, 8H)
            "whh": jnp.concatenate([scatter(whh_f, 0),
                                    scatter(whh_b, 1)], axis=0),      # (2H, 8H) block-diag
            "b": scatter(b_f, 0) + scatter(b_b, 1),                   # (1, 8H)
        })
    params["lstm"] = lstm_params

    # fc: Linear(length * hidden_size * 2, num_classes), output padded to 128 lanes,
    # rows reordered into the step-fused (L, 2H, nc_pad) layout.
    fc_in = length * H * 2
    kf = 1.0 / jnp.sqrt(fc_in)
    kw, kb = jax.random.split(k_fc)
    fc_w = jax.random.uniform(kw, (fc_in, num_classes), f32, -kf, kf)
    fc_b = jax.random.uniform(kb, (1, num_classes), f32, -kf, kf)
    nc_pad = pl.cdiv(num_classes, LANES) * LANES
    fc_w = jnp.pad(fc_w, ((0, 0), (0, nc_pad - num_classes)))
    fc3 = fc_w.reshape(length, 2, H, nc_pad)                # [t, dir, h, n]
    params["fc_w"] = jnp.concatenate([fc3[:, 0], fc3[::-1, 1]], axis=1)  # (L, 2H, ncp)
    params["fc_b"] = jnp.pad(fc_b, ((0, 0), (0, nc_pad - num_classes)))
    return params


# ---------------------------------------------------------------------------
# Forward pass (eval semantics; labels=None -> outputs = (logits,))
# ---------------------------------------------------------------------------
def make_forward(num_classes):
    @jax.jit
    def forward(X, params):
        B, L, T = X.shape
        H2 = params["lstm"][0]["whh"].shape[0]
        H = H2 // 2
        num_layers = len(params["lstm"])
        nc_pad = params["fc_w"].shape[-1]
        Bp = pl.cdiv(B, SUBLANES) * SUBLANES      # pad batch to the sublane multiple

        # batch pad + batch-first (B,L,T) -> time-major rows (L*Bp, T): every per-step
        # slice inside the fused kernel is then an 8-row-aligned contiguous block.
        Xp = jnp.pad(X.astype(jnp.float32), ((0, Bp - B), (0, 0), (0, 0)))
        x_tm = jnp.transpose(Xp, (1, 0, 2)).reshape(L * Bp, T)

        args = [x_tm, params["proj_w"], params["proj_b"]]
        for lp in params["lstm"]:
            args += [lp["wih_f"], lp["wih_b"], lp["whh"], lp["b"]]
        args += [params["fc_w"], params["fc_b"]]

        # explicit VMEM budget sized from the actual resident set (inputs + output +
        # gx scratch), with headroom; clamped to v7x's 64 MiB physical VMEM.
        nbytes = sum(int(a.size) * a.dtype.itemsize for a in args)
        nbytes += Bp * nc_pad * 4 + L * Bp * 8 * H * 4
        vmem_limit = int(min(max(32 << 20, 2 * nbytes + (16 << 20)), 64 << 20))

        logits_pad = pl.pallas_call(
            _make_fused_kernel(Bp, L, H, num_layers, nc_pad),
            out_shape=jax.ShapeDtypeStruct((Bp, nc_pad), jnp.float32),
            in_specs=[_vmem_spec()] * len(args),
            out_specs=_vmem_spec(),
            scratch_shapes=[pltpu.VMEM((L * Bp, 8 * H), jnp.float32)],
            compiler_params=pltpu.CompilerParams(vmem_limit_bytes=vmem_limit),
        )(*args)
        # TODO(synk): for large batches on v7x, add a "parallel" batch-tile grid axis to
        # use the second TensorCore; at these shapes a single invocation is optimal.
        return (logits_pad[:B, :num_classes],)

    return forward


if __name__ == "__main__":
    # Small shapes consistent with the module constructor.
    batch = 2
    length = 8          # sequence length
    token_size = 16
    hidden_size = 32
    num_layers = 2
    num_classes = 5
    embed_size = 32

    key = jax.random.PRNGKey(0)
    k_param, k_x = jax.random.split(key)
    params = init_params(k_param, length, token_size, hidden_size,
                         num_layers, num_classes, embed_size)
    X = jax.random.normal(k_x, (batch, length, token_size), jnp.float32)

    forward = make_forward(num_classes)
    (logits,) = forward(X, params)
    logits = jax.block_until_ready(logits)
    assert logits.shape == (batch, num_classes)
    assert logits.dtype == jnp.float32
    print("KERNEL_OK")
</pallas_src>

<mosaic_0001>
module attributes {stable_mosaic.version = 11 : i64} {
  func.func @kernel(%arg0: memref<64x16xf32, #tpu.memory_space<vmem>>, %arg1: memref<16x32xf32, #tpu.memory_space<vmem>>, %arg2: memref<1x32xf32, #tpu.memory_space<vmem>>, %arg3: memref<32x256xf32, #tpu.memory_space<vmem>>, %arg4: memref<32x256xf32, #tpu.memory_space<vmem>>, %arg5: memref<64x256xf32, #tpu.memory_space<vmem>>, %arg6: memref<1x256xf32, #tpu.memory_space<vmem>>, %arg7: memref<64x256xf32, #tpu.memory_space<vmem>>, %arg8: memref<64x256xf32, #tpu.memory_space<vmem>>, %arg9: memref<64x256xf32, #tpu.memory_space<vmem>>, %arg10: memref<1x256xf32, #tpu.memory_space<vmem>>, %arg11: memref<8x64x128xf32, #tpu.memory_space<vmem>>, %arg12: memref<1x128xf32, #tpu.memory_space<vmem>>, %arg13: memref<8x128xf32, #tpu.memory_space<vmem>>, %arg14: memref<64x256xf32, #tpu.memory_space<vmem>>) attributes {dimension_semantics = [], scalar_prefetch = 0 : i64, scratch_operands = 1 : i64, tpu.core_type = #tpu.core_type<tc>} {
    %c0 = arith.constant 0 : index
    %c0_0 = arith.constant 0 : index
    %0 = vector.load %arg0[%c0, %c0_0] : memref<64x16xf32, #tpu.memory_space<vmem>>, vector<64x16xf32>
    %c0_1 = arith.constant 0 : index
    %c0_2 = arith.constant 0 : index
    %1 = vector.load %arg1[%c0_1, %c0_2] : memref<16x32xf32, #tpu.memory_space<vmem>>, vector<16x32xf32>
    %cst = arith.constant dense<0.000000e+00> : vector<64x32xf32>
    %2 = tpu.matmul %0, %1, %cst {dimension_numbers = #tpu.dot_dimension_numbers<[1], [0], [0], [1], [0, 0, 1, 1], [], []>} : vector<64x16xf32>, vector<16x32xf32>, vector<64x32xf32> -> vector<64x32xf32>
    %c0_3 = arith.constant 0 : index
    %c0_4 = arith.constant 0 : index
    %3 = vector.load %arg2[%c0_3, %c0_4] : memref<1x32xf32, #tpu.memory_space<vmem>>, vector<1x32xf32>
    %4 = vector.broadcast %3 : vector<1x32xf32> to vector<64x32xf32>
    %5 = arith.addf %2, %4 : vector<64x32xf32>
    %cst_5 = arith.constant 0.000000e+00 : f32
    %6 = vector.broadcast %cst_5 : f32 to vector<8x128xf32>
    %c0_6 = arith.constant 0 : index
    %c0_7 = arith.constant 0 : index
    %7 = vector.load %arg12[%c0_6, %c0_7] : memref<1x128xf32, #tpu.memory_space<vmem>>, vector<1x128xf32>
    %8 = vector.extract_strided_slice %5 {offsets = [56, 0], sizes = [8, 32], strides = [1, 1]} : vector<64x32xf32> to vector<8x32xf32>
    %9 = vector.extract_strided_slice %5 {offsets = [48, 0], sizes = [8, 32], strides = [1, 1]} : vector<64x32xf32> to vector<8x32xf32>
    %10 = vector.extract_strided_slice %5 {offsets = [40, 0], sizes = [8, 32], strides = [1, 1]} : vector<64x32xf32> to vector<8x32xf32>
    %11 = vector.extract_strided_slice %5 {offsets = [32, 0], sizes = [8, 32], strides = [1, 1]} : vector<64x32xf32> to vector<8x32xf32>
    %12 = vector.extract_strided_slice %5 {offsets = [24, 0], sizes = [8, 32], strides = [1, 1]} : vector<64x32xf32> to vector<8x32xf32>
    %13 = vector.extract_strided_slice %5 {offsets = [16, 0], sizes = [8, 32], strides = [1, 1]} : vector<64x32xf32> to vector<8x32xf32>
    %14 = vector.extract_strided_slice %5 {offsets = [8, 0], sizes = [8, 32], strides = [1, 1]} : vector<64x32xf32> to vector<8x32xf32>
    %15 = vector.extract_strided_slice %5 {offsets = [0, 0], sizes = [8, 32], strides = [1, 1]} : vector<64x32xf32> to vector<8x32xf32>
    %16 = tpu.concatenate %8, %9, %10, %11, %12, %13, %14, %15 in 0 : vector<8x32xf32>, vector<8x32xf32>, vector<8x32xf32>, vector<8x32xf32>, vector<8x32xf32>, vector<8x32xf32>, vector<8x32xf32>, vector<8x32xf32> -> vector<64x32xf32>
    %c0_8 = arith.constant 0 : index
    %c0_9 = arith.constant 0 : index
    %17 = vector.load %arg3[%c0_8, %c0_9] : memref<32x256xf32, #tpu.memory_space<vmem>>, vector<32x256xf32>
    %cst_10 = arith.constant dense<0.000000e+00> : vector<64x256xf32>
    %18 = tpu.matmul %5, %17, %cst_10 {dimension_numbers = #tpu.dot_dimension_numbers<[1], [0], [0], [1], [0, 0, 1, 1], [], []>} : vector<64x32xf32>, vector<32x256xf32>, vector<64x256xf32> -> vector<64x256xf32>
    %c0_11 = arith.constant 0 : index
    %c0_12 = arith.constant 0 : index
    %19 = vector.load %arg4[%c0_11, %c0_12] : memref<32x256xf32, #tpu.memory_space<vmem>>, vector<32x256xf32>
    %cst_13 = arith.constant dense<0.000000e+00> : vector<64x256xf32>
    %20 = tpu.matmul %16, %19, %cst_13 {dimension_numbers = #tpu.dot_dimension_numbers<[1], [0], [0], [1], [0, 0, 1, 1], [], []>} : vector<64x32xf32>, vector<32x256xf32>, vector<64x256xf32> -> vector<64x256xf32>
    %21 = arith.addf %18, %20 : vector<64x256xf32>
    %c0_14 = arith.constant 0 : index
    %c0_15 = arith.constant 0 : index
    %22 = vector.load %arg6[%c0_14, %c0_15] : memref<1x256xf32, #tpu.memory_space<vmem>>, vector<1x256xf32>
    %23 = vector.broadcast %22 : vector<1x256xf32> to vector<64x256xf32>
    %24 = arith.addf %21, %23 : vector<64x256xf32>
    %c0_16 = arith.constant 0 : index
    %c0_17 = arith.constant 0 : index
    %25 = vector.load %arg14[%c0_16, %c0_17] : memref<64x256xf32, #tpu.memory_space<vmem>>, vector<64x256xf32>
    tpu.vector_store %arg14[%c0_16, %c0_17], %24 {strides = array<i32>} : memref<64x256xf32, #tpu.memory_space<vmem>>, vector<64x256xf32>,
    %c0_18 = arith.constant 0 : index
    %c0_19 = arith.constant 0 : index
    %26 = vector.load %arg5[%c0_18, %c0_19] : memref<64x256xf32, #tpu.memory_space<vmem>>, vector<64x256xf32>
    %cst_20 = arith.constant 0.000000e+00 : f32
    %27 = vector.broadcast %cst_20 : f32 to vector<8x64xf32>
    %cst_21 = arith.constant 0.000000e+00 : f32
    %28 = vector.broadcast %cst_21 : f32 to vector<8x64xf32>
    %c0_22 = arith.constant 0 : index
    %c0_23 = arith.constant 0 : index
    %29 = vector.load %arg14[%c0_22, %c0_23] : memref<64x256xf32, #tpu.memory_space<vmem>>, vector<8x256xf32>
    %cst_24 = arith.constant dense<0.000000e+00> : vector<8x256xf32>
    %30 = tpu.matmul %27, %26, %cst_24 {dimension_numbers = #tpu.dot_dimension_numbers<[1], [0], [0], [1], [0, 0, 1, 1], [], []>} : vector<8x64xf32>, vector<64x256xf32>, vector<8x256xf32> -> vector<8x256xf32>
    %31 = arith.addf %29, %30 : vector<8x256xf32>
    %32 = arith.negf %31 : vector<8x256xf32>
    %33 = math.exp %32 : vector<8x256xf32>
    %cst_25 = arith.constant 1.000000e+00 : f32
    %34 = vector.broadcast %cst_25 : f32 to vector<8x256xf32>
    %35 = arith.addf %34, %33 : vector<8x256xf32>
    %36 = arith.divf %34, %35 : vector<8x256xf32>
    %37 = math.tanh %31 : vector<8x256xf32>
    %38 = vector.extract_strided_slice %36 {offsets = [0, 0], sizes = [8, 64], strides = [1, 1]} : vector<8x256xf32> to vector<8x64xf32>
    %39 = vector.extract_strided_slice %36 {offsets = [0, 64], sizes = [8, 64], strides = [1, 1]} : vector<8x256xf32> to vector<8x64xf32>
    %40 = vector.extract_strided_slice %37 {offsets = [0, 128], sizes = [8, 64], strides = [1, 1]} : vector<8x256xf32> to vector<8x64xf32>
    %41 = vector.extract_strided_slice %36 {offsets = [0, 192], sizes = [8, 64], strides = [1, 1]} : vector<8x256xf32> to vector<8x64xf32>
    %42 = arith.mulf %39, %28 : vector<8x64xf32>
    %43 = arith.mulf %38, %40 : vector<8x64xf32>
    %44 = arith.addf %42, %43 : vector<8x64xf32>
    %45 = math.tanh %44 : vector<8x64xf32>
    %46 = arith.mulf %41, %45 : vector<8x64xf32>
    %c8 = arith.constant 8 : index
    %c0_26 = arith.constant 0 : index
    %47 = vector.load %arg14[%c8, %c0_26] : memref<64x256xf32, #tpu.memory_space<vmem>>, vector<8x256xf32>
    %cst_27 = arith.constant dense<0.000000e+00> : vector<8x256xf32>
    %48 = tpu.matmul %46, %26, %cst_27 {dimension_numbers = #tpu.dot_dimension_numbers<[1], [0], [0], [1], [0, 0, 1, 1], [], []>} : vector<8x64xf32>, vector<64x256xf32>, vector<8x256xf32> -> vector<8x256xf32>
    %49 = arith.addf %47, %48 : vector<8x256xf32>
    %50 = arith.negf %49 : vector<8x256xf32>
    %51 = math.exp %50 : vector<8x256xf32>
    %cst_28 = arith.constant 1.000000e+00 : f32
    %52 = vector.broadcast %cst_28 : f32 to vector<8x256xf32>
    %53 = arith.addf %52, %51 : vector<8x256xf32>
    %54 = arith.divf %52, %53 : vector<8x256xf32>
    %55 = math.tanh %49 : vector<8x256xf32>
    %56 = vector.extract_strided_slice %54 {offsets = [0, 0], sizes = [8, 64], strides = [1, 1]} : vector<8x256xf32> to vector<8x64xf32>
    %57 = vector.extract_strided_slice %54 {offsets = [0, 64], sizes = [8, 64], strides = [1, 1]} : vector<8x256xf32> to vector<8x64xf32>
    %58 = vector.extract_strided_slice %55 {offsets = [0, 128], sizes = [8, 64], strides = [1, 1]} : vector<8x256xf32> to vector<8x64xf32>
    %59 = vector.extract_strided_slice %54 {offsets = [0, 192], sizes = [8, 64], strides = [1, 1]} : vector<8x256xf32> to vector<8x64xf32>
    %60 = arith.mulf %57, %44 : vector<8x64xf32>
    %61 = arith.mulf %56, %58 : vector<8x64xf32>
    %62 = arith.addf %60, %61 : vector<8x64xf32>
    %63 = math.tanh %62 : vector<8x64xf32>
    %64 = arith.mulf %59, %63 : vector<8x64xf32>
    %c16 = arith.constant 16 : index
    %c0_29 = arith.constant 0 : index
    %65 = vector.load %arg14[%c16, %c0_29] : memref<64x256xf32, #tpu.memory_space<vmem>>, vector<8x256xf32>
    %cst_30 = arith.constant dense<0.000000e+00> : vector<8x256xf32>
    %66 = tpu.matmul %64, %26, %cst_30 {dimension_numbers = #tpu.dot_dimension_numbers<[1], [0], [0], [1], [0, 0, 1, 1], [], []>} : vector<8x64xf32>, vector<64x256xf32>, vector<8x256xf32> -> vector<8x256xf32>
    %67 = arith.addf %65, %66 : vector<8x256xf32>
    %68 = arith.negf %67 : vector<8x256xf32>
    %69 = math.exp %68 : vector<8x256xf32>
    %cst_31 = arith.constant 1.000000e+00 : f32
    %70 = vector.broadcast %cst_31 : f32 to vector<8x256xf32>
    %71 = arith.addf %70, %69 : vector<8x256xf32>
    %72 = arith.divf %70, %71 : vector<8x256xf32>
    %73 = math.tanh %67 : vector<8x256xf32>
    %74 = vector.extract_strided_slice %72 {offsets = [0, 0], sizes = [8, 64], strides = [1, 1]} : vector<8x256xf32> to vector<8x64xf32>
    %75 = vector.extract_strided_slice %72 {offsets = [0, 64], sizes = [8, 64], strides = [1, 1]} : vector<8x256xf32> to vector<8x64xf32>
    %76 = vector.extract_strided_slice %73 {offsets = [0, 128], sizes = [8, 64], strides = [1, 1]} : vector<8x256xf32> to vector<8x64xf32>
    %77 = vector.extract_strided_slice %72 {offsets = [0, 192], sizes = [8, 64], strides = [1, 1]} : vector<8x256xf32> to vector<8x64xf32>
    %78 = arith.mulf %75, %62 : vector<8x64xf32>
    %79 = arith.mulf %74, %76 : vector<8x64xf32>
    %80 = arith.addf %78, %79 : vector<8x64xf32>
    %81 = math.tanh %80 : vector<8x64xf32>
    %82 = arith.mulf %77, %81 : vector<8x64xf32>
    %c24 = arith.constant 24 : index
    %c0_32 = arith.constant 0 : index
    %83 = vector.load %arg14[%c24, %c0_32] : memref<64x256xf32, #tpu.memory_space<vmem>>, vector<8x256xf32>
    %cst_33 = arith.constant dense<0.000000e+00> : vector<8x256xf32>
    %84 = tpu.matmul %82, %26, %cst_33 {dimension_numbers = #tpu.dot_dimension_numbers<[1], [0], [0], [1], [0, 0, 1, 1], [], []>} : vector<8x64xf32>, vector<64x256xf32>, vector<8x256xf32> -> vector<8x256xf32>
    %85 = arith.addf %83, %84 : vector<8x256xf32>
    %86 = arith.negf %85 : vector<8x256xf32>
    %87 = math.exp %86 : vector<8x256xf32>
    %cst_34 = arith.constant 1.000000e+00 : f32
    %88 = vector.broadcast %cst_34 : f32 to vector<8x256xf32>
    %89 = arith.addf %88, %87 : vector<8x256xf32>
    %90 = arith.divf %88, %89 : vector<8x256xf32>
    %91 = math.tanh %85 : vector<8x256xf32>
    %92 = vector.extract_strided_slice %90 {offsets = [0, 0], sizes = [8, 64], strides = [1, 1]} : vector<8x256xf32> to vector<8x64xf32>
    %93 = vector.extract_strided_slice %90 {offsets = [0, 64], sizes = [8, 64], strides = [1, 1]} : vector<8x256xf32> to vector<8x64xf32>
    %94 = vector.extract_strided_slice %91 {offsets = [0, 128], sizes = [8, 64], strides = [1, 1]} : vector<8x256xf32> to vector<8x64xf32>
    %95 = vector.extract_strided_slice %90 {offsets = [0, 192], sizes = [8, 64], strides = [1, 1]} : vector<8x256xf32> to vector<8x64xf32>
    %96 = arith.mulf %93, %80 : vector<8x64xf32>
    %97 = arith.mulf %92, %94 : vector<8x64xf32>
    %98 = arith.addf %96, %97 : vector<8x64xf32>
    %99 = math.tanh %98 : vector<8x64xf32>
    %100 = arith.mulf %95, %99 : vector<8x64xf32>
    %c32 = arith.constant 32 : index
    %c0_35 = arith.constant 0 : index
    %101 = vector.load %arg14[%c32, %c0_35] : memref<64x256xf32, #tpu.memory_space<vmem>>, vector<8x256xf32>
    %cst_36 = arith.constant dense<0.000000e+00> : vector<8x256xf32>
    %102 = tpu.matmul %100, %26, %cst_36 {dimension_numbers = #tpu.dot_dimension_numbers<[1], [0], [0], [1], [0, 0, 1, 1], [], []>} : vector<8x64xf32>, vector<64x256xf32>, vector<8x256xf32> -> vector<8x256xf32>
    %103 = arith.addf %101, %102 : vector<8x256xf32>
    %104 = arith.negf %103 : vector<8x256xf32>
    %105 = math.exp %104 : vector<8x256xf32>
    %cst_37 = arith.constant 1.000000e+00 : f32
    %106 = vector.broadcast %cst_37 : f32 to vector<8x256xf32>
    %107 = arith.addf %106, %105 : vector<8x256xf32>
    %108 = arith.divf %106, %107 : vector<8x256xf32>
    %109 = math.tanh %103 : vector<8x256xf32>
    %110 = vector.extract_strided_slice %108 {offsets = [0, 0], sizes = [8, 64], strides = [1, 1]} : vector<8x256xf32> to vector<8x64xf32>
    %111 = vector.extract_strided_slice %108 {offsets = [0, 64], sizes = [8, 64], strides = [1, 1]} : vector<8x256xf32> to vector<8x64xf32>
    %112 = vector.extract_strided_slice %109 {offsets = [0, 128], sizes = [8, 64], strides = [1, 1]} : vector<8x256xf32> to vector<8x64xf32>
    %113 = vector.extract_strided_slice %108 {offsets = [0, 192], sizes = [8, 64], strides = [1, 1]} : vector<8x256xf32> to vector<8x64xf32>
    %114 = arith.mulf %111, %98 : vector<8x64xf32>
    %115 = arith.mulf %110, %112 : vector<8x64xf32>
    %116 = arith.addf %114, %115 : vector<8x64xf32>
    %117 = math.tanh %116 : vector<8x64xf32>
    %118 = arith.mulf %113, %117 : vector<8x64xf32>
    %c40 = arith.constant 40 : index
    %c0_38 = arith.constant 0 : index
    %119 = vector.load %arg14[%c40, %c0_38] : memref<64x256xf32, #tpu.memory_space<vmem>>, vector<8x256xf32>
    %cst_39 = arith.constant dense<0.000000e+00> : vector<8x256xf32>
    %120 = tpu.matmul %118, %26, %cst_39 {dimension_numbers = #tpu.dot_dimension_numbers<[1], [0], [0], [1], [0, 0, 1, 1], [], []>} : vector<8x64xf32>, vector<64x256xf32>, vector<8x256xf32> -> vector<8x256xf32>
    %121 = arith.addf %119, %120 : vector<8x256xf32>
    %122 = arith.negf %121 : vector<8x256xf32>
    %123 = math.exp %122 : vector<8x256xf32>
    %cst_40 = arith.constant 1.000000e+00 : f32
    %124 = vector.broadcast %cst_40 : f32 to vector<8x256xf32>
    %125 = arith.addf %124, %123 : vector<8x256xf32>
    %126 = arith.divf %124, %125 : vector<8x256xf32>
    %127 = math.tanh %121 : vector<8x256xf32>
    %128 = vector.extract_strided_slice %126 {offsets = [0, 0], sizes = [8, 64], strides = [1, 1]} : vector<8x256xf32> to vector<8x64xf32>
    %129 = vector.extract_strided_slice %126 {offsets = [0, 64], sizes = [8, 64], strides = [1, 1]} : vector<8x256xf32> to vector<8x64xf32>
    %130 = vector.extract_strided_slice %127 {offsets = [0, 128], sizes = [8, 64], strides = [1, 1]} : vector<8x256xf32> to vector<8x64xf32>
    %131 = vector.extract_strided_slice %126 {offsets = [0, 192], sizes = [8, 64], strides = [1, 1]} : vector<8x256xf32> to vector<8x64xf32>
    %132 = arith.mulf %129, %116 : vector<8x64xf32>
    %133 = arith.mulf %128, %130 : vector<8x64xf32>
    %134 = arith.addf %132, %133 : vector<8x64xf32>
    %135 = math.tanh %134 : vector<8x64xf32>
    %136 = arith.mulf %131, %135 : vector<8x64xf32>
    %c48 = arith.constant 48 : index
    %c0_41 = arith.constant 0 : index
    %137 = vector.load %arg14[%c48, %c0_41] : memref<64x256xf32, #tpu.memory_space<vmem>>, vector<8x256xf32>
    %cst_42 = arith.constant dense<0.000000e+00> : vector<8x256xf32>
    %138 = tpu.matmul %136, %26, %cst_42 {dimension_numbers = #tpu.dot_dimension_numbers<[1], [0], [0], [1], [0, 0, 1, 1], [], []>} : vector<8x64xf32>, vector<64x256xf32>, vector<8x256xf32> -> vector<8x256xf32>
    %139 = arith.addf %137, %138 : vector<8x256xf32>
    %140 = arith.negf %139 : vector<8x256xf32>
    %141 = math.exp %140 : vector<8x256xf32>
    %cst_43 = arith.constant 1.000000e+00 : f32
    %142 = vector.broadcast %cst_43 : f32 to vector<8x256xf32>
    %143 = arith.addf %142, %141 : vector<8x256xf32>
    %144 = arith.divf %142, %143 : vector<8x256xf32>
    %145 = math.tanh %139 : vector<8x256xf32>
    %146 = vector.extract_strided_slice %144 {offsets = [0, 0], sizes = [8, 64], strides = [1, 1]} : vector<8x256xf32> to vector<8x64xf32>
    %147 = vector.extract_strided_slice %144 {offsets = [0, 64], sizes = [8, 64], strides = [1, 1]} : vector<8x256xf32> to vector<8x64xf32>
    %148 = vector.extract_strided_slice %145 {offsets = [0, 128], sizes = [8, 64], strides = [1, 1]} : vector<8x256xf32> to vector<8x64xf32>
    %149 = vector.extract_strided_slice %144 {offsets = [0, 192], sizes = [8, 64], strides = [1, 1]} : vector<8x256xf32> to vector<8x64xf32>
    %150 = arith.mulf %147, %134 : vector<8x64xf32>
    %151 = arith.mulf %146, %148 : vector<8x64xf32>
    %152 = arith.addf %150, %151 : vector<8x64xf32>
    %153 = math.tanh %152 : vector<8x64xf32>
    %154 = arith.mulf %149, %153 : vector<8x64xf32>
    %c56 = arith.constant 56 : index
    %c0_44 = arith.constant 0 : index
    %155 = vector.load %arg14[%c56, %c0_44] : memref<64x256xf32, #tpu.memory_space<vmem>>, vector<8x256xf32>
    %cst_45 = arith.constant dense<0.000000e+00> : vector<8x256xf32>
    %156 = tpu.matmul %154, %26, %cst_45 {dimension_numbers = #tpu.dot_dimension_numbers<[1], [0], [0], [1], [0, 0, 1, 1], [], []>} : vector<8x64xf32>, vector<64x256xf32>, vector<8x256xf32> -> vector<8x256xf32>
    %157 = arith.addf %155, %156 : vector<8x256xf32>
    %158 = arith.negf %157 : vector<8x256xf32>
    %159 = math.exp %158 : vector<8x256xf32>
    %cst_46 = arith.constant 1.000000e+00 : f32
    %160 = vector.broadcast %cst_46 : f32 to vector<8x256xf32>
    %161 = arith.addf %160, %159 : vector<8x256xf32>
    %162 = arith.divf %160, %161 : vector<8x256xf32>
    %163 = math.tanh %157 : vector<8x256xf32>
    %164 = vector.extract_strided_slice %162 {offsets = [0, 0], sizes = [8, 64], strides = [1, 1]} : vector<8x256xf32> to vector<8x64xf32>
    %165 = vector.extract_strided_slice %162 {offsets = [0, 64], sizes = [8, 64], strides = [1, 1]} : vector<8x256xf32> to vector<8x64xf32>
    %166 = vector.extract_strided_slice %163 {offsets = [0, 128], sizes = [8, 64], strides = [1, 1]} : vector<8x256xf32> to vector<8x64xf32>
    %167 = vector.extract_strided_slice %162 {offsets = [0, 192], sizes = [8, 64], strides = [1, 1]} : vector<8x256xf32> to vector<8x64xf32>
    %168 = arith.mulf %165, %152 : vector<8x64xf32>
    %169 = arith.mulf %164, %166 : vector<8x64xf32>
    %170 = arith.addf %168, %169 : vector<8x64xf32>
    %171 = math.tanh %170 : vector<8x64xf32>
    %172 = arith.mulf %167, %171 : vector<8x64xf32>
    %173 = vector.extract_strided_slice %46 {offsets = [0, 0], sizes = [8, 32], strides = [1, 1]} : vector<8x64xf32> to vector<8x32xf32>
    %174 = vector.extract_strided_slice %172 {offsets = [0, 32], sizes = [8, 32], strides = [1, 1]} : vector<8x64xf32> to vector<8x32xf32>
    %175 = tpu.concatenate %173, %174 in 1 : vector<8x32xf32>, vector<8x32xf32> -> vector<8x64xf32>
    %176 = vector.extract_strided_slice %64 {offsets = [0, 0], sizes = [8, 32], strides = [1, 1]} : vector<8x64xf32> to vector<8x32xf32>
    %177 = vector.extract_strided_slice %154 {offsets = [0, 32], sizes = [8, 32], strides = [1, 1]} : vector<8x64xf32> to vector<8x32xf32>
    %178 = tpu.concatenate %176, %177 in 1 : vector<8x32xf32>, vector<8x32xf32> -> vector<8x64xf32>
    %179 = vector.extract_strided_slice %82 {offsets = [0, 0], sizes = [8, 32], strides = [1, 1]} : vector<8x64xf32> to vector<8x32xf32>
    %180 = vector.extract_strided_slice %136 {offsets = [0, 32], sizes = [8, 32], strides = [1, 1]} : vector<8x64xf32> to vector<8x32xf32>
    %181 = tpu.concatenate %179, %180 in 1 : vector<8x32xf32>, vector<8x32xf32> -> vector<8x64xf32>
    %182 = vector.extract_strided_slice %100 {offsets = [0, 0], sizes = [8, 32], strides = [1, 1]} : vector<8x64xf32> to vector<8x32xf32>
    %183 = vector.extract_strided_slice %118 {offsets = [0, 32], sizes = [8, 32], strides = [1, 1]} : vector<8x64xf32> to vector<8x32xf32>
    %184 = tpu.concatenate %182, %183 in 1 : vector<8x32xf32>, vector<8x32xf32> -> vector<8x64xf32>
    %185 = vector.extract_strided_slice %118 {offsets = [0, 0], sizes = [8, 32], strides = [1, 1]} : vector<8x64xf32> to vector<8x32xf32>
    %186 = vector.extract_strided_slice %100 {offsets = [0, 32], sizes = [8, 32], strides = [1, 1]} : vector<8x64xf32> to vector<8x32xf32>
    %187 = tpu.concatenate %185, %186 in 1 : vector<8x32xf32>, vector<8x32xf32> -> vector<8x64xf32>
    %188 = vector.extract_strided_slice %136 {offsets = [0, 0], sizes = [8, 32], strides = [1, 1]} : vector<8x64xf32> to vector<8x32xf32>
    %189 = vector.extract_strided_slice %82 {offsets = [0, 32], sizes = [8, 32], strides = [1, 1]} : vector<8x64xf32> to vector<8x32xf32>
    %190 = tpu.concatenate %188, %189 in 1 : vector<8x32xf32>, vector<8x32xf32> -> vector<8x64xf32>
    %191 = vector.extract_strided_slice %154 {offsets = [0, 0], sizes = [8, 32], strides = [1, 1]} : vector<8x64xf32> to vector<8x32xf32>
    %192 = vector.extract_strided_slice %64 {offsets = [0, 32], sizes = [8, 32], strides = [1, 1]} : vector<8x64xf32> to vector<8x32xf32>
    %193 = tpu.concatenate %191, %192 in 1 : vector<8x32xf32>, vector<8x32xf32> -> vector<8x64xf32>
    %194 = vector.extract_strided_slice %172 {offsets = [0, 0], sizes = [8, 32], strides = [1, 1]} : vector<8x64xf32> to vector<8x32xf32>
    %195 = vector.extract_strided_slice %46 {offsets = [0, 32], sizes = [8, 32], strides = [1, 1]} : vector<8x64xf32> to vector<8x32xf32>
    %196 = tpu.concatenate %194, %195 in 1 : vector<8x32xf32>, vector<8x32xf32> -> vector<8x64xf32>
    %197 = tpu.concatenate %175, %178, %181, %184, %187, %190, %193, %196 in 0 : vector<8x64xf32>, vector<8x64xf32>, vector<8x64xf32>, vector<8x64xf32>, vector<8x64xf32>, vector<8x64xf32>, vector<8x64xf32>, vector<8x64xf32> -> vector<64x64xf32>
    %198 = vector.extract_strided_slice %197 {offsets = [56, 0], sizes = [8, 64], strides = [1, 1]} : vector<64x64xf32> to vector<8x64xf32>
    %199 = vector.extract_strided_slice %197 {offsets = [48, 0], sizes = [8, 64], strides = [1, 1]} : vector<64x64xf32> to vector<8x64xf32>
    %200 = vector.extract_strided_slice %197 {offsets = [40, 0], sizes = [8, 64], strides = [1, 1]} : vector<64x64xf32> to vector<8x64xf32>
    %201 = vector.extract_strided_slice %197 {offsets = [32, 0], sizes = [8, 64], strides = [1, 1]} : vector<64x64xf32> to vector<8x64xf32>
    %202 = vector.extract_strided_slice %197 {offsets = [24, 0], sizes = [8, 64], strides = [1, 1]} : vector<64x64xf32> to vector<8x64xf32>
    %203 = vector.extract_strided_slice %197 {offsets = [16, 0], sizes = [8, 64], strides = [1, 1]} : vector<64x64xf32> to vector<8x64xf32>
    %204 = vector.extract_strided_slice %197 {offsets = [8, 0], sizes = [8, 64], strides = [1, 1]} : vector<64x64xf32> to vector<8x64xf32>
    %205 = vector.extract_strided_slice %197 {offsets = [0, 0], sizes = [8, 64], strides = [1, 1]} : vector<64x64xf32> to vector<8x64xf32>
    %206 = tpu.concatenate %198, %199, %200, %201, %202, %203, %204, %205 in 0 : vector<8x64xf32>, vector<8x64xf32>, vector<8x64xf32>, vector<8x64xf32>, vector<8x64xf32>, vector<8x64xf32>, vector<8x64xf32>, vector<8x64xf32> -> vector<64x64xf32>
    %c0_47 = arith.constant 0 : index
    %c0_48 = arith.constant 0 : index
    %207 = vector.load %arg7[%c0_47, %c0_48] : memref<64x256xf32, #tpu.memory_space<vmem>>, vector<64x256xf32>
    %cst_49 = arith.constant dense<0.000000e+00> : vector<64x256xf32>
    %208 = tpu.matmul %197, %207, %cst_49 {dimension_numbers = #tpu.dot_dimension_numbers<[1], [0], [0], [1], [0, 0, 1, 1], [], []>} : vector<64x64xf32>, vector<64x256xf32>, vector<64x256xf32> -> vector<64x256xf32>
    %c0_50 = arith.constant 0 : index
    %c0_51 = arith.constant 0 : index
    %209 = vector.load %arg8[%c0_50, %c0_51] : memref<64x256xf32, #tpu.memory_space<vmem>>, vector<64x256xf32>
    %cst_52 = arith.constant dense<0.000000e+00> : vector<64x256xf32>
    %210 = tpu.matmul %206, %209, %cst_52 {dimension_numbers = #tpu.dot_dimension_numbers<[1], [0], [0], [1], [0, 0, 1, 1], [], []>} : vector<64x64xf32>, vector<64x256xf32>, vector<64x256xf32> -> vector<64x256xf32>
    %211 = arith.addf %208, %210 : vector<64x256xf32>
    %c0_53 = arith.constant 0 : index
    %c0_54 = arith.constant 0 : index
    %212 = vector.load %arg10[%c0_53, %c0_54] : memref<1x256xf32, #tpu.memory_space<vmem>>, vector<1x256xf32>
    %213 = vector.broadcast %212 : vector<1x256xf32> to vector<64x256xf32>
    %214 = arith.addf %211, %213 : vector<64x256xf32>
    %c0_55 = arith.constant 0 : index
    %c0_56 = arith.constant 0 : index
    %215 = vector.load %arg14[%c0_55, %c0_56] : memref<64x256xf32, #tpu.memory_space<vmem>>, vector<64x256xf32>
    tpu.vector_store %arg14[%c0_55, %c0_56], %214 {strides = array<i32>} : memref<64x256xf32, #tpu.memory_space<vmem>>, vector<64x256xf32>,
    %c0_57 = arith.constant 0 : index
    %c0_58 = arith.constant 0 : index
    %216 = vector.load %arg9[%c0_57, %c0_58] : memref<64x256xf32, #tpu.memory_space<vmem>>, vector<64x256xf32>
    %cst_59 = arith.constant 0.000000e+00 : f32
    %217 = vector.broadcast %cst_59 : f32 to vector<8x64xf32>
    %cst_60 = arith.constant 0.000000e+00 : f32
    %218 = vector.broadcast %cst_60 : f32 to vector<8x64xf32>
    %c0_61 = arith.constant 0 : index
    %c0_62 = arith.constant 0 : index
    %219 = vector.load %arg14[%c0_61, %c0_62] : memref<64x256xf32, #tpu.memory_space<vmem>>, vector<8x256xf32>
    %cst_63 = arith.constant dense<0.000000e+00> : vector<8x256xf32>
    %220 = tpu.matmul %217, %216, %cst_63 {dimension_numbers = #tpu.dot_dimension_numbers<[1], [0], [0], [1], [0, 0, 1, 1], [], []>} : vector<8x64xf32>, vector<64x256xf32>, vector<8x256xf32> -> vector<8x256xf32>
    %221 = arith.addf %219, %220 : vector<8x256xf32>
    %222 = arith.negf %221 : vector<8x256xf32>
    %223 = math.exp %222 : vector<8x256xf32>
    %cst_64 = arith.constant 1.000000e+00 : f32
    %224 = vector.broadcast %cst_64 : f32 to vector<8x256xf32>
    %225 = arith.addf %224, %223 : vector<8x256xf32>
    %226 = arith.divf %224, %225 : vector<8x256xf32>
    %227 = math.tanh %221 : vector<8x256xf32>
    %228 = vector.extract_strided_slice %226 {offsets = [0, 0], sizes = [8, 64], strides = [1, 1]} : vector<8x256xf32> to vector<8x64xf32>
    %229 = vector.extract_strided_slice %226 {offsets = [0, 64], sizes = [8, 64], strides = [1, 1]} : vector<8x256xf32> to vector<8x64xf32>
    %230 = vector.extract_strided_slice %227 {offsets = [0, 128], sizes = [8, 64], strides = [1, 1]} : vector<8x256xf32> to vector<8x64xf32>
    %231 = vector.extract_strided_slice %226 {offsets = [0, 192], sizes = [8, 64], strides = [1, 1]} : vector<8x256xf32> to vector<8x64xf32>
    %232 = arith.mulf %229, %218 : vector<8x64xf32>
    %233 = arith.mulf %228, %230 : vector<8x64xf32>
    %234 = arith.addf %232, %233 : vector<8x64xf32>
    %235 = math.tanh %234 : vector<8x64xf32>
    %236 = arith.mulf %231, %235 : vector<8x64xf32>
    %c0_65 = arith.constant 0 : index
    %c0_66 = arith.constant 0 : index
    %c0_67 = arith.constant 0 : index
    %237 = vector.load %arg11[%c0_65, %c0_66, %c0_67] : memref<8x64x128xf32, #tpu.memory_space<vmem>>, vector<1x64x128xf32>
    %238 = vector.shape_cast %237 : vector<1x64x128xf32> to vector<64x128xf32>
    %cst_68 = arith.constant dense<0.000000e+00> : vector<8x128xf32>
    %239 = tpu.matmul %236, %238, %cst_68 {dimension_numbers = #tpu.dot_dimension_numbers<[1], [0], [0], [1], [0, 0, 1, 1], [], []>} : vector<8x64xf32>, vector<64x128xf32>, vector<8x128xf32> -> vector<8x128xf32>
    %240 = arith.addf %6, %239 : vector<8x128xf32>
    %c8_69 = arith.constant 8 : index
    %c0_70 = arith.constant 0 : index
    %241 = vector.load %arg14[%c8_69, %c0_70] : memref<64x256xf32, #tpu.memory_space<vmem>>, vector<8x256xf32>
    %cst_71 = arith.constant dense<0.000000e+00> : vector<8x256xf32>
    %242 = tpu.matmul %236, %216, %cst_71 {dimension_numbers = #tpu.dot_dimension_numbers<[1], [0], [0], [1], [0, 0, 1, 1], [], []>} : vector<8x64xf32>, vector<64x256xf32>, vector<8x256xf32> -> vector<8x256xf32>
    %243 = arith.addf %241, %242 : vector<8x256xf32>
    %244 = arith.negf %243 : vector<8x256xf32>
    %245 = math.exp %244 : vector<8x256xf32>
    %cst_72 = arith.constant 1.000000e+00 : f32
    %246 = vector.broadcast %cst_72 : f32 to vector<8x256xf32>
    %247 = arith.addf %246, %245 : vector<8x256xf32>
    %248 = arith.divf %246, %247 : vector<8x256xf32>
    %249 = math.tanh %243 : vector<8x256xf32>
    %250 = vector.extract_strided_slice %248 {offsets = [0, 0], sizes = [8, 64], strides = [1, 1]} : vector<8x256xf32> to vector<8x64xf32>
    %251 = vector.extract_strided_slice %248 {offsets = [0, 64], sizes = [8, 64], strides = [1, 1]} : vector<8x256xf32> to vector<8x64xf32>
    %252 = vector.extract_strided_slice %249 {offsets = [0, 128], sizes = [8, 64], strides = [1, 1]} : vector<8x256xf32> to vector<8x64xf32>
    %253 = vector.extract_strided_slice %248 {offsets = [0, 192], sizes = [8, 64], strides = [1, 1]} : vector<8x256xf32> to vector<8x64xf32>
    %254 = arith.mulf %251, %234 : vector<8x64xf32>
    %255 = arith.mulf %250, %252 : vector<8x64xf32>
    %256 = arith.addf %254, %255 : vector<8x64xf32>
    %257 = math.tanh %256 : vector<8x64xf32>
    %258 = arith.mulf %253, %257 : vector<8x64xf32>
    %c1 = arith.constant 1 : index
    %c0_73 = arith.constant 0 : index
    %c0_74 = arith.constant 0 : index
    %259 = vector.load %arg11[%c1, %c0_73, %c0_74] : memref<8x64x128xf32, #tpu.memory_space<vmem>>, vector<1x64x128xf32>
    %260 = vector.shape_cast %259 : vector<1x64x128xf32> to vector<64x128xf32>
    %cst_75 = arith.constant dense<0.000000e+00> : vector<8x128xf32>
    %261 = tpu.matmul %258, %260, %cst_75 {dimension_numbers = #tpu.dot_dimension_numbers<[1], [0], [0], [1], [0, 0, 1, 1], [], []>} : vector<8x64xf32>, vector<64x128xf32>, vector<8x128xf32> -> vector<8x128xf32>
    %262 = arith.addf %240, %261 : vector<8x128xf32>
    %c16_76 = arith.constant 16 : index
    %c0_77 = arith.constant 0 : index
    %263 = vector.load %arg14[%c16_76, %c0_77] : memref<64x256xf32, #tpu.memory_space<vmem>>, vector<8x256xf32>
    %cst_78 = arith.constant dense<0.000000e+00> : vector<8x256xf32>
    %264 = tpu.matmul %258, %216, %cst_78 {dimension_numbers = #tpu.dot_dimension_numbers<[1], [0], [0], [1], [0, 0, 1, 1], [], []>} : vector<8x64xf32>, vector<64x256xf32>, vector<8x256xf32> -> vector<8x256xf32>
    %265 = arith.addf %263, %264 : vector<8x256xf32>
    %266 = arith.negf %265 : vector<8x256xf32>
    %267 = math.exp %266 : vector<8x256xf32>
    %cst_79 = arith.constant 1.000000e+00 : f32
    %268 = vector.broadcast %cst_79 : f32 to vector<8x256xf32>
    %269 = arith.addf %268, %267 : vector<8x256xf32>
    %270 = arith.divf %268, %269 : vector<8x256xf32>
    %271 = math.tanh %265 : vector<8x256xf32>
    %272 = vector.extract_strided_slice %270 {offsets = [0, 0], sizes = [8, 64], strides = [1, 1]} : vector<8x256xf32> to vector<8x64xf32>
    %273 = vector.extract_strided_slice %270 {offsets = [0, 64], sizes = [8, 64], strides = [1, 1]} : vector<8x256xf32> to vector<8x64xf32>
    %274 = vector.extract_strided_slice %271 {offsets = [0, 128], sizes = [8, 64], strides = [1, 1]} : vector<8x256xf32> to vector<8x64xf32>
    %275 = vector.extract_strided_slice %270 {offsets = [0, 192], sizes = [8, 64], strides = [1, 1]} : vector<8x256xf32> to vector<8x64xf32>
    %276 = arith.mulf %273, %256 : vector<8x64xf32>
    %277 = arith.mulf %272, %274 : vector<8x64xf32>
    %278 = arith.addf %276, %277 : vector<8x64xf32>
    %279 = math.tanh %278 : vector<8x64xf32>
    %280 = arith.mulf %275, %279 : vector<8x64xf32>
    %c2 = arith.constant 2 : index
    %c0_80 = arith.constant 0 : index
    %c0_81 = arith.constant 0 : index
    %281 = vector.load %arg11[%c2, %c0_80, %c0_81] : memref<8x64x128xf32, #tpu.memory_space<vmem>>, vector<1x64x128xf32>
    %282 = vector.shape_cast %281 : vector<1x64x128xf32> to vector<64x128xf32>
    %cst_82 = arith.constant dense<0.000000e+00> : vector<8x128xf32>
    %283 = tpu.matmul %280, %282, %cst_82 {dimension_numbers = #tpu.dot_dimension_numbers<[1], [0], [0], [1], [0, 0, 1, 1], [], []>} : vector<8x64xf32>, vector<64x128xf32>, vector<8x128xf32> -> vector<8x128xf32>
    %284 = arith.addf %262, %283 : vector<8x128xf32>
    %c24_83 = arith.constant 24 : index
    %c0_84 = arith.constant 0 : index
    %285 = vector.load %arg14[%c24_83, %c0_84] : memref<64x256xf32, #tpu.memory_space<vmem>>, vector<8x256xf32>
    %cst_85 = arith.constant dense<0.000000e+00> : vector<8x256xf32>
    %286 = tpu.matmul %280, %216, %cst_85 {dimension_numbers = #tpu.dot_dimension_numbers<[1], [0], [0], [1], [0, 0, 1, 1], [], []>} : vector<8x64xf32>, vector<64x256xf32>, vector<8x256xf32> -> vector<8x256xf32>
    %287 = arith.addf %285, %286 : vector<8x256xf32>
    %288 = arith.negf %287 : vector<8x256xf32>
    %289 = math.exp %288 : vector<8x256xf32>
    %cst_86 = arith.constant 1.000000e+00 : f32
    %290 = vector.broadcast %cst_86 : f32 to vector<8x256xf32>
    %291 = arith.addf %290, %289 : vector<8x256xf32>
    %292 = arith.divf %290, %291 : vector<8x256xf32>
    %293 = math.tanh %287 : vector<8x256xf32>
    %294 = vector.extract_strided_slice %292 {offsets = [0, 0], sizes = [8, 64], strides = [1, 1]} : vector<8x256xf32> to vector<8x64xf32>
    %295 = vector.extract_strided_slice %292 {offsets = [0, 64], sizes = [8, 64], strides = [1, 1]} : vector<8x256xf32> to vector<8x64xf32>
    %296 = vector.extract_strided_slice %293 {offsets = [0, 128], sizes = [8, 64], strides = [1, 1]} : vector<8x256xf32> to vector<8x64xf32>
    %297 = vector.extract_strided_slice %292 {offsets = [0, 192], sizes = [8, 64], strides = [1, 1]} : vector<8x256xf32> to vector<8x64xf32>
    %298 = arith.mulf %295, %278 : vector<8x64xf32>
    %299 = arith.mulf %294, %296 : vector<8x64xf32>
    %300 = arith.addf %298, %299 : vector<8x64xf32>
    %301 = math.tanh %300 : vector<8x64xf32>
    %302 = arith.mulf %297, %301 : vector<8x64xf32>
    %c3 = arith.constant 3 : index
    %c0_87 = arith.constant 0 : index
    %c0_88 = arith.constant 0 : index
    %303 = vector.load %arg11[%c3, %c0_87, %c0_88] : memref<8x64x128xf32, #tpu.memory_space<vmem>>, vector<1x64x128xf32>
    %304 = vector.shape_cast %303 : vector<1x64x128xf32> to vector<64x128xf32>
    %cst_89 = arith.constant dense<0.000000e+00> : vector<8x128xf32>
    %305 = tpu.matmul %302, %304, %cst_89 {dimension_numbers = #tpu.dot_dimension_numbers<[1], [0], [0], [1], [0, 0, 1, 1], [], []>} : vector<8x64xf32>, vector<64x128xf32>, vector<8x128xf32> -> vector<8x128xf32>
    %306 = arith.addf %284, %305 : vector<8x128xf32>
    %c32_90 = arith.constant 32 : index
    %c0_91 = arith.constant 0 : index
    %307 = vector.load %arg14[%c32_90, %c0_91] : memref<64x256xf32, #tpu.memory_space<vmem>>, vector<8x256xf32>
    %cst_92 = arith.constant dense<0.000000e+00> : vector<8x256xf32>
    %308 = tpu.matmul %302, %216, %cst_92 {dimension_numbers = #tpu.dot_dimension_numbers<[1], [0], [0], [1], [0, 0, 1, 1], [], []>} : vector<8x64xf32>, vector<64x256xf32>, vector<8x256xf32> -> vector<8x256xf32>
    %309 = arith.addf %307, %308 : vector<8x256xf32>
    %310 = arith.negf %309 : vector<8x256xf32>
    %311 = math.exp %310 : vector<8x256xf32>
    %cst_93 = arith.constant 1.000000e+00 : f32
    %312 = vector.broadcast %cst_93 : f32 to vector<8x256xf32>
    %313 = arith.addf %312, %311 : vector<8x256xf32>
    %314 = arith.divf %312, %313 : vector<8x256xf32>
    %315 = math.tanh %309 : vector<8x256xf32>
    %316 = vector.extract_strided_slice %314 {offsets = [0, 0], sizes = [8, 64], strides = [1, 1]} : vector<8x256xf32> to vector<8x64xf32>
    %317 = vector.extract_strided_slice %314 {offsets = [0, 64], sizes = [8, 64], strides = [1, 1]} : vector<8x256xf32> to vector<8x64xf32>
    %318 = vector.extract_strided_slice %315 {offsets = [0, 128], sizes = [8, 64], strides = [1, 1]} : vector<8x256xf32> to vector<8x64xf32>
    %319 = vector.extract_strided_slice %314 {offsets = [0, 192], sizes = [8, 64], strides = [1, 1]} : vector<8x256xf32> to vector<8x64xf32>
    %320 = arith.mulf %317, %300 : vector<8x64xf32>
    %321 = arith.mulf %316, %318 : vector<8x64xf32>
    %322 = arith.addf %320, %321 : vector<8x64xf32>
    %323 = math.tanh %322 : vector<8x64xf32>
    %324 = arith.mulf %319, %323 : vector<8x64xf32>
    %c4 = arith.constant 4 : index
    %c0_94 = arith.constant 0 : index
    %c0_95 = arith.constant 0 : index
    %325 = vector.load %arg11[%c4, %c0_94, %c0_95] : memref<8x64x128xf32, #tpu.memory_space<vmem>>, vector<1x64x128xf32>
    %326 = vector.shape_cast %325 : vector<1x64x128xf32> to vector<64x128xf32>
    %cst_96 = arith.constant dense<0.000000e+00> : vector<8x128xf32>
    %327 = tpu.matmul %324, %326, %cst_96 {dimension_numbers = #tpu.dot_dimension_numbers<[1], [0], [0], [1], [0, 0, 1, 1], [], []>} : vector<8x64xf32>, vector<64x128xf32>, vector<8x128xf32> -> vector<8x128xf32>
    %328 = arith.addf %306, %327 : vector<8x128xf32>
    %c40_97 = arith.constant 40 : index
    %c0_98 = arith.constant 0 : index
    %329 = vector.load %arg14[%c40_97, %c0_98] : memref<64x256xf32, #tpu.memory_space<vmem>>, vector<8x256xf32>
    %cst_99 = arith.constant dense<0.000000e+00> : vector<8x256xf32>
    %330 = tpu.matmul %324, %216, %cst_99 {dimension_numbers = #tpu.dot_dimension_numbers<[1], [0], [0], [1], [0, 0, 1, 1], [], []>} : vector<8x64xf32>, vector<64x256xf32>, vector<8x256xf32> -> vector<8x256xf32>
    %331 = arith.addf %329, %330 : vector<8x256xf32>
    %332 = arith.negf %331 : vector<8x256xf32>
    %333 = math.exp %332 : vector<8x256xf32>
    %cst_100 = arith.constant 1.000000e+00 : f32
    %334 = vector.broadcast %cst_100 : f32 to vector<8x256xf32>
    %335 = arith.addf %334, %333 : vector<8x256xf32>
    %336 = arith.divf %334, %335 : vector<8x256xf32>
    %337 = math.tanh %331 : vector<8x256xf32>
    %338 = vector.extract_strided_slice %336 {offsets = [0, 0], sizes = [8, 64], strides = [1, 1]} : vector<8x256xf32> to vector<8x64xf32>
    %339 = vector.extract_strided_slice %336 {offsets = [0, 64], sizes = [8, 64], strides = [1, 1]} : vector<8x256xf32> to vector<8x64xf32>
    %340 = vector.extract_strided_slice %337 {offsets = [0, 128], sizes = [8, 64], strides = [1, 1]} : vector<8x256xf32> to vector<8x64xf32>
    %341 = vector.extract_strided_slice %336 {offsets = [0, 192], sizes = [8, 64], strides = [1, 1]} : vector<8x256xf32> to vector<8x64xf32>
    %342 = arith.mulf %339, %322 : vector<8x64xf32>
    %343 = arith.mulf %338, %340 : vector<8x64xf32>
    %344 = arith.addf %342, %343 : vector<8x64xf32>
    %345 = math.tanh %344 : vector<8x64xf32>
    %346 = arith.mulf %341, %345 : vector<8x64xf32>
    %c5 = arith.constant 5 : index
    %c0_101 = arith.constant 0 : index
    %c0_102 = arith.constant 0 : index
    %347 = vector.load %arg11[%c5, %c0_101, %c0_102] : memref<8x64x128xf32, #tpu.memory_space<vmem>>, vector<1x64x128xf32>
    %348 = vector.shape_cast %347 : vector<1x64x128xf32> to vector<64x128xf32>
    %cst_103 = arith.constant dense<0.000000e+00> : vector<8x128xf32>
    %349 = tpu.matmul %346, %348, %cst_103 {dimension_numbers = #tpu.dot_dimension_numbers<[1], [0], [0], [1], [0, 0, 1, 1], [], []>} : vector<8x64xf32>, vector<64x128xf32>, vector<8x128xf32> -> vector<8x128xf32>
    %350 = arith.addf %328, %349 : vector<8x128xf32>
    %c48_104 = arith.constant 48 : index
    %c0_105 = arith.constant 0 : index
    %351 = vector.load %arg14[%c48_104, %c0_105] : memref<64x256xf32, #tpu.memory_space<vmem>>, vector<8x256xf32>
    %cst_106 = arith.constant dense<0.000000e+00> : vector<8x256xf32>
    %352 = tpu.matmul %346, %216, %cst_106 {dimension_numbers = #tpu.dot_dimension_numbers<[1], [0], [0], [1], [0, 0, 1, 1], [], []>} : vector<8x64xf32>, vector<64x256xf32>, vector<8x256xf32> -> vector<8x256xf32>
    %353 = arith.addf %351, %352 : vector<8x256xf32>
    %354 = arith.negf %353 : vector<8x256xf32>
    %355 = math.exp %354 : vector<8x256xf32>
    %cst_107 = arith.constant 1.000000e+00 : f32
    %356 = vector.broadcast %cst_107 : f32 to vector<8x256xf32>
    %357 = arith.addf %356, %355 : vector<8x256xf32>
    %358 = arith.divf %356, %357 : vector<8x256xf32>
    %359 = math.tanh %353 : vector<8x256xf32>
    %360 = vector.extract_strided_slice %358 {offsets = [0, 0], sizes = [8, 64], strides = [1, 1]} : vector<8x256xf32> to vector<8x64xf32>
    %361 = vector.extract_strided_slice %358 {offsets = [0, 64], sizes = [8, 64], strides = [1, 1]} : vector<8x256xf32> to vector<8x64xf32>
    %362 = vector.extract_strided_slice %359 {offsets = [0, 128], sizes = [8, 64], strides = [1, 1]} : vector<8x256xf32> to vector<8x64xf32>
    %363 = vector.extract_strided_slice %358 {offsets = [0, 192], sizes = [8, 64], strides = [1, 1]} : vector<8x256xf32> to vector<8x64xf32>
    %364 = arith.mulf %361, %344 : vector<8x64xf32>
    %365 = arith.mulf %360, %362 : vector<8x64xf32>
    %366 = arith.addf %364, %365 : vector<8x64xf32>
    %367 = math.tanh %366 : vector<8x64xf32>
    %368 = arith.mulf %363, %367 : vector<8x64xf32>
    %c6 = arith.constant 6 : index
    %c0_108 = arith.constant 0 : index
    %c0_109 = arith.constant 0 : index
    %369 = vector.load %arg11[%c6, %c0_108, %c0_109] : memref<8x64x128xf32, #tpu.memory_space<vmem>>, vector<1x64x128xf32>
    %370 = vector.shape_cast %369 : vector<1x64x128xf32> to vector<64x128xf32>
    %cst_110 = arith.constant dense<0.000000e+00> : vector<8x128xf32>
    %371 = tpu.matmul %368, %370, %cst_110 {dimension_numbers = #tpu.dot_dimension_numbers<[1], [0], [0], [1], [0, 0, 1, 1], [], []>} : vector<8x64xf32>, vector<64x128xf32>, vector<8x128xf32> -> vector<8x128xf32>
    %372 = arith.addf %350, %371 : vector<8x128xf32>
    %c56_111 = arith.constant 56 : index
    %c0_112 = arith.constant 0 : index
    %373 = vector.load %arg14[%c56_111, %c0_112] : memref<64x256xf32, #tpu.memory_space<vmem>>, vector<8x256xf32>
    %cst_113 = arith.constant dense<0.000000e+00> : vector<8x256xf32>
    %374 = tpu.matmul %368, %216, %cst_113 {dimension_numbers = #tpu.dot_dimension_numbers<[1], [0], [0], [1], [0, 0, 1, 1], [], []>} : vector<8x64xf32>, vector<64x256xf32>, vector<8x256xf32> -> vector<8x256xf32>
    %375 = arith.addf %373, %374 : vector<8x256xf32>
    %376 = arith.negf %375 : vector<8x256xf32>
    %377 = math.exp %376 : vector<8x256xf32>
    %cst_114 = arith.constant 1.000000e+00 : f32
    %378 = vector.broadcast %cst_114 : f32 to vector<8x256xf32>
    %379 = arith.addf %378, %377 : vector<8x256xf32>
    %380 = arith.divf %378, %379 : vector<8x256xf32>
    %381 = math.tanh %375 : vector<8x256xf32>
    %382 = vector.extract_strided_slice %380 {offsets = [0, 0], sizes = [8, 64], strides = [1, 1]} : vector<8x256xf32> to vector<8x64xf32>
    %383 = vector.extract_strided_slice %380 {offsets = [0, 64], sizes = [8, 64], strides = [1, 1]} : vector<8x256xf32> to vector<8x64xf32>
    %384 = vector.extract_strided_slice %381 {offsets = [0, 128], sizes = [8, 64], strides = [1, 1]} : vector<8x256xf32> to vector<8x64xf32>
    %385 = vector.extract_strided_slice %380 {offsets = [0, 192], sizes = [8, 64], strides = [1, 1]} : vector<8x256xf32> to vector<8x64xf32>
    %386 = arith.mulf %383, %366 : vector<8x64xf32>
    %387 = arith.mulf %382, %384 : vector<8x64xf32>
    %388 = arith.addf %386, %387 : vector<8x64xf32>
    %389 = math.tanh %388 : vector<8x64xf32>
    %390 = arith.mulf %385, %389 : vector<8x64xf32>
    %c7 = arith.constant 7 : index
    %c0_115 = arith.constant 0 : index
    %c0_116 = arith.constant 0 : index
    %391 = vector.load %arg11[%c7, %c0_115, %c0_116] : memref<8x64x128xf32, #tpu.memory_space<vmem>>, vector<1x64x128xf32>
    %392 = vector.shape_cast %391 : vector<1x64x128xf32> to vector<64x128xf32>
    %cst_117 = arith.constant dense<0.000000e+00> : vector<8x128xf32>
    %393 = tpu.matmul %390, %392, %cst_117 {dimension_numbers = #tpu.dot_dimension_numbers<[1], [0], [0], [1], [0, 0, 1, 1], [], []>} : vector<8x64xf32>, vector<64x128xf32>, vector<8x128xf32> -> vector<8x128xf32>
    %394 = arith.addf %372, %393 : vector<8x128xf32>
    %395 = vector.broadcast %7 : vector<1x128xf32> to vector<8x128xf32>
    %396 = arith.addf %394, %395 : vector<8x128xf32>
    %c0_118 = arith.constant 0 : index
    %c0_119 = arith.constant 0 : index
    %397 = vector.load %arg13[%c0_118, %c0_119] : memref<8x128xf32, #tpu.memory_space<vmem>>, vector<8x128xf32>
    tpu.vector_store %arg13[%c0_118, %c0_119], %396 {strides = array<i32>} : memref<8x128xf32, #tpu.memory_space<vmem>>, vector<8x128xf32>,
    return
  }
}

</mosaic_0001>

<bundles_post_ra>
// kernel: forward.1
= control target key start
LH: loop header
LB: loop body
LE: loop exit
PB: predicated region body
PF: predicated region fallthrough
CT: control target
= control target key end

     0   :  { %18 = vsyncpa [#allocation4], 0  ;;  %s4067_s0 = inlined_call_operand.vmem [shape: f32[64,16], index: 0, kind: input, shape index: {}]   ;;  %s4068_s1 = inlined_call_operand.vmem [shape: f32[16,32], index: 1, kind: input, shape index: {}]   ;;  %s4069_s2 = inlined_call_operand.vmem [shape: f32[1,32], index: 2, kind: input, shape index: {}]   ;;  %s4070_s3 = inlined_call_operand.vmem [shape: f32[32,256], index: 3, kind: input, shape index: {}]   ;;  %s4071_s4 = inlined_call_operand.hbm [shape: f32[32,256], index: 4, kind: input, shape index: {}]   ;;  %s4072_s5 = inlined_call_operand.vmem [shape: f32[64,256], index: 5, kind: input, shape index: {}]   ;;  %s4073_s6 = inlined_call_operand.vmem [shape: f32[1,256], index: 6, kind: input, shape index: {}]   ;;  %s4074_s7 = inlined_call_operand.hbm [shape: f32[64,256], index: 7, kind: input, shape index: {}]   ;;  %s4075_s8 = inlined_call_operand.hbm [shape: f32[64,256], index: 8, kind: input, shape index: {}]   ;;  %s4076_s9 = inlined_call_operand.hbm [shape: f32[64,256], index: 9, kind: input, shape index: {}]   ;;  %s4077_s10 = inlined_call_operand.vmem [shape: f32[1,256], index: 10, kind: input, shape index: {}]   ;;  %s4078_s11 = inlined_call_operand.hbm [shape: f32[8,64,128], index: 11, kind: input, shape index: {}]   ;;  %s4079_s12 = inlined_call_operand.hbm [shape: f32[1,128], index: 12, kind: input, shape index: {}]   ;;  %s4080_s13 = inlined_call_operand.vmem [shape: f32[8,128], index: 13, kind: output, shape index: {}]  }
   0x1   :  { %19 = vsyncpa [#allocation6], 0 }
   0x2   :  { %20 = vsyncpa [#allocation9], 0 }
   0x3   :  { %21 = vsyncpa [#allocation12], 0  ;;  %s51_s27 = sshll.u32 %s4074_s7, 4  ;;  %s3084_s28 = smov [#allocation5]   ;;  %s52_s27 = int_to_ptr.hbm [resolvable:$true] %s51_s27 }
   0x4   :  { %s53_s29 = sshll.u32 %s3084_s28, 4  ;;  %s77_s15 = sshll.u32 %s4076_s9, 4  ;;  %s54_s29 = int_to_ptr.vmem [resolvable:$true] %s53_s29  ;;  %s78_s15 = int_to_ptr.hbm [resolvable:$true] %s77_s15 }
   0x5   :  { %s3085_s16 = smov 256   ;;  %s3086_s17 = smov 16  }
   0x6   :  { %59 = dma.hbm_to_vmem [thread:$0]  %s52_s27, 2048, %s54_s29, [#allocation6], %s3085_s16, %s3085_s16, %s3086_s17  }
   0x7   :  { %s3087_s18 = smov [#allocation8]   ;;  %s34_s22 = sshll.u32 %s4071_s4, 4  ;;  %s35_s22 = int_to_ptr.hbm [resolvable:$true] %s34_s22 }
   0x8   :  { %s79_s19 = sshll.u32 %s3087_s18, 4  ;;  %s64_s24 = sshll.u32 %s4075_s8, 4  ;;  %s80_s19 = int_to_ptr.vmem [resolvable:$true] %s79_s19  ;;  %s65_s24 = int_to_ptr.hbm [resolvable:$true] %s64_s24 }
   0x9   :  { %85 = dma.hbm_to_vmem [thread:$0]  %s78_s15, 2048, %s80_s19, [#allocation9], %s3085_s16, %s3085_s16, %s3086_s17  }
   0xa   :  { %s3088_s25 = smov [#allocation3]   ;;  %s3089_s9 = smov [#allocation7]  }
   0xb   :  { %s36_s26 = sshll.u32 %s3088_s25, 4  ;;  %s66_s27 = sshll.u32 %s3089_s9, 4  ;;  %s37_s26 = int_to_ptr.vmem [resolvable:$true] %s36_s26  ;;  %s67_s27 = int_to_ptr.vmem [resolvable:$true] %s66_s27 }
   0xc   :  { %42 = dma.hbm_to_vmem [thread:$0]  %s35_s22, 1024, %s37_s26, [#allocation4], %s3085_s16, %s3085_s16, %s3086_s17  }
   0xd   :  { %s92_s30 = sshll.u32 %s4078_s11, 4  ;;  %s3090_s4 = smov [#allocation10]   ;;  %s93_s30 = int_to_ptr.hbm [resolvable:$true] %s92_s30 }
   0xe   :  { %72 = dma.hbm_to_vmem [thread:$0]  %s65_s24, 2048, %s67_s27, [#allocation6], %s3085_s16, %s3085_s16, %s3086_s17  }
   0xf   :  { %s94_s14 = sshll.u32 %s3090_s4, 4  ;;  %s106_s8 = sshll.u32 %s4079_s12, 4  ;;  %s95_s14 = int_to_ptr.vmem [resolvable:$true] %s94_s14  ;;  %s107_s8 = int_to_ptr.hbm [resolvable:$true] %s106_s8 }
  0x10   :  { %s3091_s19 = smov 128   ;;  %s3092_s20 = smov 8  }
  0x11   :  { %100 = dma.hbm_to_vmem [thread:$0]  %s93_s30, 8192, %s95_s14, [#allocation9], %s3091_s19, %s3091_s19, %s3092_s20  }
  0x12   :  { %s3093_s21 = smov [#allocation11]  }
  0x13   :  { %s108_s22 = sshll.u32 %s3093_s21, 4  ;;  %s109_s22 = int_to_ptr.vmem [resolvable:$true] %s108_s22 }
  0x14   :  { %111 = dma.hbm_to_vmem [thread:$0]  %s107_s8, 16, %s109_s22, [#allocation12]  }
  0x15   :  { %3076 = dma.done.wait [#allocation4], 1024  }
  0x16   :  { %3077 = vsyncadd [#allocation4], 4294966272 }
  0x17   :  { %3078 = dma.done.wait [#allocation6], 4096  }
  0x18   :  { %3079 = vsyncadd [#allocation6], 4294963200 }
  0x19   :  { %3080 = dma.done.wait [#allocation9], 10240  }
  0x1a   :  { %3081 = vsyncadd [#allocation9], 4294957056 }
  0x1b   :  { %3082 = dma.done.wait [#allocation12], 16  }
  0x1c   :  { %3083 = vsyncadd [#allocation12], 4294967280  ;;  %v145_v0 = vld [vmem:[%s4068_s1 + $0x8] sm:$0xff]  ;;  %v144_v1 = vld [vmem:[%s4068_s1] sm:$0xff]  ;;  %vm150_vm0 = vcmask 130048   ;;  %vm233_vm1 = vcmask 261120  }
  0x1d   :  { %189 = vmatpush.msra.mxu0 %v145_v0  ;;  %v136_v2 = vld [vmem:[%s4067_s0] sm:$0xff]  ;;  %v137_v3 = vld [vmem:[%s4067_s0 + $0x8] sm:$0xff]  ;;  %v138_v4 = vld [vmem:[%s4067_s0 + $0x10] sm:$0xff]  ;;  %v3094_v59 = vmov 0.0   ;;  %vm478_vm10 = vcmask 523264  }
  0x1e   :  { %v139_v5 = vld [vmem:[%s4067_s0 + $0x18] sm:$0xff]  ;;  %v223_v6 = vld [vmem:[%s4070_s3 + $0x30] sm:$0xff]  ;;  %v221_v8 = vld [vmem:[%s4070_s3 + $0x20] sm:$0xff] }
  0x1f   :  { %190 = vmatpush.msra.mxu0 %v144_v1  ;;  %v224_v7 = vld [vmem:[%s4070_s3 + $0x38] sm:$0xff]  ;;  %352 = vmatpush.msra.mxu3 %v223_v6  ;;  %v222_v9 = vld [vmem:[%s4070_s3 + $0x28] sm:$0xff]  ;;  %v140_v10 = vld [vmem:[%s4067_s0 + $0x20] sm:$0xff] }
  0x20   :  { %2570 = vmatmul.msk.f32.vlgmr.msra.gmra.mxu0 %vm150_vm0, %v136_v2  ;;  %v141_v11 = vld [vmem:[%s4067_s0 + $0x28] sm:$0xff]  ;;  %v142_v12 = vld [vmem:[%s4067_s0 + $0x30] sm:$0xff]  ;;  %v143_v13 = vld [vmem:[%s4067_s0 + $0x38] sm:$0xff] }
  0x21   :  { %393 = vmatpush.msrb.mxu0 %v224_v7  ;;  %353 = vmatpush.msra.mxu3 %v221_v8  ;;  %v219_v14 = vld [vmem:[%s4070_s3 + $0x10] sm:$0xff]  ;;  %v220_v15 = vld [vmem:[%s4070_s3 + $0x18] sm:$0xff]  ;;  %v217_v16 = vld [vmem:[%s4070_s3] sm:$0xff] }
  0x22   :  { %v218_v17 = vld [vmem:[%s4070_s3 + $0x8] sm:$0xff]  ;;  %v3249_v18 = vld [vmem:[%s4069_s2] ss:$0 sm:$0xff]  ;;  %v231_v25 = vld [vmem:[#allocation3 + $0x30] sm:$0xff] }
  0x23   :  { %394 = vmatpush.msrb.mxu0 %v222_v9  ;;  %354 = vmatpush.msra.mxu3 %v219_v14  ;;  %v232_v26 = vld [vmem:[#allocation3 + $0x38] sm:$0xff]  ;;  %v229_v27 = vld [vmem:[#allocation3 + $0x20] sm:$0xff]  ;;  %v230_v28 = vld [vmem:[#allocation3 + $0x28] sm:$0xff] }
  0x24   :  { %270 = vmatpush.msra.mxu1 %v231_v25  ;;  %311 = vmatpush.msra.mxu2 %v232_v26  ;;  %v227_v29 = vld [vmem:[#allocation3 + $0x10] sm:$0xff]  ;;  %v228_v30 = vld [vmem:[#allocation3 + $0x18] sm:$0xff]  ;;  %v225_v33 = vld [vmem:[#allocation3] sm:$0xff] }
  0x25   :  { %395 = vmatpush.msrb.mxu0 %v220_v15  ;;  %355 = vmatpush.msra.mxu3 %v217_v16  ;;  %v226_v34 = vld [vmem:[#allocation3 + $0x8] sm:$0xff]  ;;  %v3282_v35 = vld [vmem:[%s4072_s5 + $0x70] sm:$0xff]  ;;  %v3293_v38 = vld [vmem:[%s4072_s5 + $0x60] sm:$0xff] }
  0x26   :  { %271 = vmatpush.msra.mxu1 %v229_v27  ;;  %312 = vmatpush.msra.mxu2 %v230_v28  ;;  %v3298_v39 = vld [vmem:[%s4072_s5 + $0x78] sm:$0xff]  ;;  %v3310_v42 = vld [vmem:[%s4072_s5 + $0x50] sm:$0xff]  ;;  %v3315_v43 = vld [vmem:[%s4072_s5 + $0x68] sm:$0xff] }
  0x27   :  { %396 = vmatpush.msrb.mxu0 %v218_v17  ;;  %587 = vmatpush.msrb.mxu3 %v3282_v35  ;;  %v3327_v46 = vld [vmem:[%s4072_s5 + $0x40] sm:$0xff]  ;;  %v3332_v47 = vld [vmem:[%s4072_s5 + $0x58] sm:$0xff]  ;;  %v3344_v50 = vld [vmem:[%s4072_s5 + $0x30] sm:$0xff] }
  0x28   :  { %2571 = vmatmul.msk.f32.gmra.mxu0 %vm150_vm0, %v137_v3  ;;  %272 = vmatpush.msra.mxu1 %v227_v29  ;;  %v3349_v51 = vld [vmem:[%s4072_s5 + $0x48] sm:$0xff]  ;;  %v3362_v52 = vld [vmem:[%s4072_s5 + $0x20] sm:$0xff]  ;;  %v3367_v53 = vld [vmem:[%s4072_s5 + $0x38] sm:$0xff] }
  0x29   :  { %313 = vmatpush.msra.mxu2 %v228_v30  ;;  %1072 = vmatpush.msra.mxu0 %v3282_v35  ;;  %v3378_v54 = vld [vmem:[%s4072_s5 + $0x10] sm:$0xff]  ;;  %v3383_v55 = vld [vmem:[%s4072_s5 + $0x28] sm:$0xff]  ;;  %v3394_v56 = vld [vmem:[%s4072_s5] sm:$0xff] }
  0x2a   :  { %273 = vmatpush.msra.mxu1 %v225_v33  ;;  %588 = vmatpush.msrb.mxu3 %v3293_v38  ;;  %v3399_v57 = vld [vmem:[%s4072_s5 + $0x18] sm:$0xff]  ;;  %v3404_v58 = vld [vmem:[%s4072_s5 + $0x8] sm:$0xff] }
  0x2b   :  { %314 = vmatpush.msra.mxu2 %v226_v34  ;;  %1073 = vmatpush.msra.mxu0 %v3293_v38 }
  0x2c   :  { %490 = vmatpush.msrb.mxu1 %v3282_v35  ;;  %589 = vmatpush.msrb.mxu3 %v3310_v42 }
  0x2d   :  { %510 = vmatpush.msrb.mxu2 %v3298_v39  ;;  %1074 = vmatpush.msra.mxu0 %v3310_v42 }
  0x2e   :  { %491 = vmatpush.msrb.mxu1 %v3293_v38  ;;  %590 = vmatpush.msrb.mxu3 %v3327_v46 }
  0x2f   :  { %511 = vmatpush.msrb.mxu2 %v3315_v43  ;;  %1075 = vmatpush.msra.mxu0 %v3327_v46 }
  0x30   :  { %2572 = vmatmul.msk.f32.gmra.mxu0 %vm150_vm0, %v138_v4  ;;  %492 = vmatpush.msrb.mxu1 %v3310_v42 }
  0x31   :  { %512 = vmatpush.msrb.mxu2 %v3332_v47  ;;  %591 = vmatpush.msrb.mxu3 %v3344_v50 }
  0x32   :  { %493 = vmatpush.msrb.mxu1 %v3327_v46  ;;  %1076 = vmatpush.msra.mxu0 %v3344_v50 }
  0x33   :  { %513 = vmatpush.msrb.mxu2 %v3349_v51  ;;  %592 = vmatpush.msrb.mxu3 %v3362_v52 }
  0x34   :  { %494 = vmatpush.msrb.mxu1 %v3344_v50  ;;  %1077 = vmatpush.msra.mxu0 %v3362_v52 }
  0x35   :  { %514 = vmatpush.msrb.mxu2 %v3367_v53  ;;  %593 = vmatpush.msrb.mxu3 %v3378_v54 }
  0x36   :  { %495 = vmatpush.msrb.mxu1 %v3362_v52  ;;  %1078 = vmatpush.msra.mxu0 %v3378_v54 }
  0x37   :  { %515 = vmatpush.msrb.mxu2 %v3383_v55  ;;  %594 = vmatpush.msrb.mxu3 %v3394_v56 }
  0x38   :  { %2573 = vmatmul.msk.f32.gmra.mxu0 %vm150_vm0, %v139_v5  ;;  %496 = vmatpush.msrb.mxu1 %v3378_v54 }
  0x39   :  { %516 = vmatpush.msrb.mxu2 %v3399_v57  ;;  %1079 = vmatpush.msra.mxu0 %v3394_v56 }
  0x3a   :  { %497 = vmatpush.msrb.mxu1 %v3394_v56 }
  0x3b   :  { %517 = vmatpush.msrb.mxu2 %v3404_v58 }
  0x40   :  { %2574 = vmatmul.msk.f32.gmra.mxu0 %vm150_vm0, %v140_v10  ;;  %v422_v10 = vld [vmem:[%s4073_s6] sm:$0x3]  ;;  %s3095_s6 = smov 64  }
  0x48   :  { %2575 = vmatmul.msk.f32.gmra.mxu0 %vm150_vm0, %v141_v11 }
  0x50   :  { %2576 = vmatmul.msk.f32.gmra.mxu0 %vm150_vm0, %v142_v12 }
  0x58   :  { %2577 = vmatmul.msk.f32.gmra.mxu0 %vm150_vm0, %v143_v13  ;;  %v3488_v13 = vperm.slane %v422_v10, 0 }
  0x9d   :  { %v192_v19 = vpop.f32.mrf.mxu0 }
  0x9e   :  { %v3252_v20 = vadd.f32 %v3249_v18, %v192_v19 }
  0xa0   :  { %2594 = vmatmul.msk.f32.vlgmr.msra.gmra.mxu3 %vm233_vm1, %v3252_v20  ;;  %2602 = vmatmul.msk.f32.vlgmr.msrb.gmra.mxu0 %vm233_vm1, %v3252_v20 }
  0xa1   :  { %704 = vmatpush.msra.mxu3 %v3298_v39 }
  0xa3   :  { %705 = vmatpush.msra.mxu3 %v3315_v43 }
  0xa5   :  { %v195_v21 = vpop.f32.mrf.mxu0  ;;  %706 = vmatpush.msra.mxu3 %v3332_v47 }
  0xa6   :  { %v3259_v22 = vadd.f32 %v3249_v18, %v195_v21 }
  0xa7   :  { %707 = vmatpush.msra.mxu3 %v3349_v51 }
  0xa8   :  { %2595 = vmatmul.msk.f32.gmra.mxu3 %vm233_vm1, %v3259_v22  ;;  %2603 = vmatmul.msk.f32.gmra.mxu0 %vm233_vm1, %v3259_v22 }
  0xa9   :  { %708 = vmatpush.msra.mxu3 %v3367_v53 }
  0xab   :  { %709 = vmatpush.msra.mxu3 %v3383_v55 }
  0xad   :  { %v198_v23 = vpop.f32.mrf.mxu0  ;;  %710 = vmatpush.msra.mxu3 %v3399_v57 }
  0xae   :  { %v3266_v24 = vadd.f32 %v3249_v18, %v198_v23 }
  0xaf   :  { %711 = vmatpush.msra.mxu3 %v3404_v58 }
  0xb0   :  { %2596 = vmatmul.msk.f32.gmra.mxu3 %vm233_vm1, %v3266_v24  ;;  %2604 = vmatmul.msk.f32.gmra.mxu0 %vm233_vm1, %v3266_v24 }
  0xb5   :  { %v201_v31 = vpop.f32.mrf.mxu0 }
  0xb6   :  { %v3273_v32 = vadd.f32 %v3249_v18, %v201_v31 }
  0xb8   :  { %2597 = vmatmul.msk.f32.gmra.mxu3 %vm233_vm1, %v3273_v32  ;;  %2605 = vmatmul.msk.f32.gmra.mxu0 %vm233_vm1, %v3273_v32 }
  0xbd   :  { %v204_v36 = vpop.f32.mrf.mxu0 }
  0xbe   :  { %v205_v37 = vadd.f32 %v3249_v18, %v204_v36 }
  0xc0   :  { %2598 = vmatmul.msk.f32.gmra.mxu3 %vm233_vm1, %v205_v37  ;;  %2606 = vmatmul.msk.f32.gmra.mxu0 %vm233_vm1, %v205_v37 }
  0xc5   :  { %v207_v40 = vpop.f32.mrf.mxu0 }
  0xc6   :  { %v208_v41 = vadd.f32 %v3249_v18, %v207_v40 }
  0xc8   :  { %2599 = vmatmul.msk.f32.gmra.mxu3 %vm233_vm1, %v208_v41  ;;  %2607 = vmatmul.msk.f32.gmra.mxu0 %vm233_vm1, %v208_v41 }
  0xcd   :  { %v210_v44 = vpop.f32.mrf.mxu0 }
  0xce   :  { %v211_v45 = vadd.f32 %v3249_v18, %v210_v44 }
  0xd0   :  { %2600 = vmatmul.msk.f32.gmra.mxu3 %vm233_vm1, %v211_v45  ;;  %2608 = vmatmul.msk.f32.gmra.mxu0 %vm233_vm1, %v211_v45 }
  0xd5   :  { %v213_v48 = vpop.f32.mrf.mxu0 }
  0xd6   :  { %v214_v49 = vadd.f32 %v3249_v18, %v213_v48  ;;  %v3493_v18 = vperm.slane %v422_v10, 1 }
  0xd8   :  { %2578 = vmatmul.msk.f32.vlgmr.msra.gmra.mxu1 %vm233_vm1, %v214_v49  ;;  %2586 = vmatmul.msk.f32.vlgmr.msra.gmra.mxu2 %vm233_vm1, %v214_v49 }
  0xd9   :  { %2601 = vmatmul.msk.f32.gmra.mxu3 %vm233_vm1, %v214_v49  ;;  %2609 = vmatmul.msk.f32.gmra.mxu0 %vm233_vm1, %v214_v49 }
  0xda   :  { %607 = vmatpush.msra.mxu1 %v3298_v39  ;;  %684 = vmatpush.msra.mxu2 %v3282_v35 }
  0xdc   :  { %608 = vmatpush.msra.mxu1 %v3315_v43  ;;  %685 = vmatpush.msra.mxu2 %v3293_v38 }
  0xde   :  { %609 = vmatpush.msra.mxu1 %v3332_v47  ;;  %686 = vmatpush.msra.mxu2 %v3310_v42 }
  0xe0   :  { %2579 = vmatmul.msk.f32.gmra.mxu1 %vm233_vm1, %v211_v45  ;;  %2587 = vmatmul.msk.f32.gmra.mxu2 %vm233_vm1, %v211_v45 }
  0xe1   :  { %610 = vmatpush.msra.mxu1 %v3349_v51  ;;  %687 = vmatpush.msra.mxu2 %v3327_v46 }
  0xe3   :  { %611 = vmatpush.msra.mxu1 %v3367_v53  ;;  %688 = vmatpush.msra.mxu2 %v3344_v50 }
  0xe5   :  { %612 = vmatpush.msra.mxu1 %v3383_v55  ;;  %689 = vmatpush.msra.mxu2 %v3362_v52 }
  0xe7   :  { %613 = vmatpush.msra.mxu1 %v3399_v57  ;;  %690 = vmatpush.msra.mxu2 %v3378_v54 }
  0xe8   :  { %2580 = vmatmul.msk.f32.gmra.mxu1 %vm233_vm1, %v208_v41  ;;  %2588 = vmatmul.msk.f32.gmra.mxu2 %vm233_vm1, %v208_v41 }
  0xe9   :  { %614 = vmatpush.msra.mxu1 %v3404_v58  ;;  %691 = vmatpush.msra.mxu2 %v3394_v56 }
  0xf0   :  { %2581 = vmatmul.msk.f32.gmra.mxu1 %vm233_vm1, %v205_v37  ;;  %2589 = vmatmul.msk.f32.gmra.mxu2 %vm233_vm1, %v205_v37 }
  0xf8   :  { %2582 = vmatmul.msk.f32.gmra.mxu1 %vm233_vm1, %v3273_v32  ;;  %2590 = vmatmul.msk.f32.gmra.mxu2 %vm233_vm1, %v3273_v32 }
 0x100   :  { %2583 = vmatmul.msk.f32.gmra.mxu1 %vm233_vm1, %v3266_v24  ;;  %2591 = vmatmul.msk.f32.gmra.mxu2 %vm233_vm1, %v3266_v24 }
 0x108   :  { %2584 = vmatmul.msk.f32.gmra.mxu1 %vm233_vm1, %v3259_v22  ;;  %2592 = vmatmul.msk.f32.gmra.mxu2 %vm233_vm1, %v3259_v22 }
 0x110   :  { %2585 = vmatmul.msk.f32.gmra.mxu1 %vm233_vm1, %v3252_v20  ;;  %2593 = vmatmul.msk.f32.gmra.mxu2 %vm233_vm1, %v3252_v20 }
 0x118   :  { %498 = vmatmul.f32.vlgmr.msrb.gmra.mxu1 %v3094_v59  ;;  %518 = vmatmul.f32.vlgmr.msrb.gmra.mxu2 %v3094_v59 }
 0x119   :  { %781 = vmatpush.msrb.mxu1 %v3282_v35  ;;  %801 = vmatpush.msrb.mxu2 %v3298_v39 }
 0x11b   :  { %782 = vmatpush.msrb.mxu1 %v3293_v38  ;;  %802 = vmatpush.msrb.mxu2 %v3315_v43 }
 0x11d   :  { %783 = vmatpush.msrb.mxu1 %v3310_v42  ;;  %803 = vmatpush.msrb.mxu2 %v3332_v47  ;;  %v398_v61 = vpop.f32.mrf.mxu0 }
 0x11f   :  { %784 = vmatpush.msrb.mxu1 %v3327_v46  ;;  %804 = vmatpush.msrb.mxu2 %v3349_v51 }
 0x121   :  { %785 = vmatpush.msrb.mxu1 %v3344_v50  ;;  %805 = vmatpush.msrb.mxu2 %v3367_v53 }
 0x123   :  { %786 = vmatpush.msrb.mxu1 %v3362_v52  ;;  %806 = vmatpush.msrb.mxu2 %v3383_v55  ;;  %v357_v60 = vpop.f32.mrf.mxu3 }
 0x125   :  { %787 = vmatpush.msrb.mxu1 %v3378_v54  ;;  %807 = vmatpush.msrb.mxu2 %v3399_v57  ;;  %v3471_v0 = vpop.f32.mrf.mxu0 }
 0x127   :  { %788 = vmatpush.msrb.mxu1 %v3394_v56  ;;  %808 = vmatpush.msrb.mxu2 %v3404_v58 }
 0x12b   :  { %v3469_v62 = vpop.f32.mrf.mxu3 }
 0x12d   :  { %v3477_v4 = vpop.f32.mrf.mxu0 }
 0x133   :  { %v3473_v1 = vpop.f32.mrf.mxu3 }
 0x135   :  { %v407_v8 = vpop.f32.mrf.mxu0 }
 0x13b   :  { %v366_v6 = vpop.f32.mrf.mxu3 }
 0x13d   :  { %v410_v19 = vpop.f32.mrf.mxu0 }
 0x143   :  { %v369_v14 = vpop.f32.mrf.mxu3 }
 0x145   :  { %v413_v30 = vpop.f32.mrf.mxu0 }
 0x14b   :  { %v372_v24 = vpop.f32.mrf.mxu3 }
 0x14d   :  { %v416_v44 = vpop.f32.mrf.mxu0 }
 0x153   :  { %v375_v32 = vpop.f32.mrf.mxu3 }
 0x155   :  { %v275_v63 = vpop.f32.mrf.mxu1 }
 0x15b   :  { %v316_v2 = vpop.f32.mrf.mxu2 }
 0x15c   :  { %v378_v49 = vpop.f32.mrf.mxu3 }
 0x15d   :  { %v3475_v3 = vpop.f32.mrf.mxu1 }
 0x163   :  { %v3479_v5 = vpop.f32.mrf.mxu2 }
 0x165   :  { %v3481_v7 = vpop.f32.mrf.mxu1 }
 0x16b   :  { %v3483_v9 = vpop.f32.mrf.mxu2 }
 0x16d   :  { %v284_v11 = vpop.f32.mrf.mxu1 }
 0x16e   :  { %v367_v12 = vadd.f32 %v366_v6, %v284_v11  ;;  %v358_v11 = vadd.f32 %v357_v60, %v275_v63 }
 0x170   :  { %v3491_v15 = vadd.f32 %v3488_v13, %v367_v12 }
 0x173   :  { %v325_v16 = vpop.f32.mrf.mxu2 }
 0x174   :  { %v408_v17 = vadd.f32 %v407_v8, %v325_v16 }
 0x175   :  { %v287_v20 = vpop.f32.mrf.mxu1 }
 0x176   :  { %v370_v21 = vadd.f32 %v369_v14, %v287_v20  ;;  %v3496_v22 = vadd.f32 %v3493_v18, %v408_v17  ;;  %v419_v14 = vpop.f32.mrf.mxu0 }
 0x178   :  { %v3499_v23 = vadd.f32 %v3488_v13, %v370_v21 }
 0x17b   :  { %v328_v25 = vpop.f32.mrf.mxu2 }
 0x17c   :  { %v411_v26 = vadd.f32 %v410_v19, %v328_v25  ;;  %v428_v19 = vadd.f32 %v3488_v13, %v358_v11 }
 0x17d   :  { %v290_v27 = vpop.f32.mrf.mxu1 }
 0x17e   :  { %v373_v28 = vadd.f32 %v372_v24, %v290_v27  ;;  %v3502_v29 = vadd.f32 %v3493_v18, %v411_v26 }
 0x180   :  { %v3505_v31 = vadd.f32 %v3488_v13, %v373_v28  ;;  %v399_v28 = vadd.f32 %v398_v61, %v316_v2 }
 0x182   :  { %v429_v63 = vadd.f32 %v3493_v18, %v399_v28 }
 0x183   :  { %v331_v33 = vpop.f32.mrf.mxu2 }
 0x184   :  { %v414_v34 = vadd.f32 %v413_v30, %v331_v33 }
 0x185   :  { %v293_v36 = vpop.f32.mrf.mxu1 }
 0x186   :  { %v376_v37 = vadd.f32 %v375_v32, %v293_v36  ;;  %v3508_v40 = vadd.f32 %v3493_v18, %v414_v34 }
 0x188   :  { %v3511_v41 = vadd.f32 %v3488_v13, %v376_v37 }
 0x18b   :  { %v334_v45 = vpop.f32.mrf.mxu2 }
 0x18c   :  { %v417_v48 = vadd.f32 %v416_v44, %v334_v45 }
 0x18d   :  { %v296_v6 = vpop.f32.mrf.mxu1 }
 0x18e   :  { %v379_v8 = vadd.f32 %v378_v49, %v296_v6  ;;  %v3514_v10 = vadd.f32 %v3493_v18, %v417_v48 }
 0x190   :  { %v3517_v12 = vadd.f32 %v3488_v13, %v379_v8 }
 0x193   :  { %v337_v16 = vpop.f32.mrf.mxu2 }
 0x194   :  { %v420_v17 = vadd.f32 %v419_v14, %v337_v16 }
 0x195   :  { %v499_v20 = vpop.f32.mrf.mxu1 }
 0x196   :  { %v522_v21 = vadd.f32 %v499_v20, %v428_v19  ;;  %v3521_v24 = vadd.f32 %v3493_v18, %v420_v17 }
 0x198   :  { %v2610_v25 = vmul.f32 -1.442695, %v522_v21 }
 0x19a   :  { %2724 = vpow2.f32 %v2610_v25 }
 0x19b   :  { %v519_v60 = vpop.f32.mrf.mxu2 }
 0x19c   :  { %v523_v32 = vadd.f32 %v519_v60, %v429_v63 }
 0x19e   :  { %v2611_v8 = vmul.f32 -1.442695, %v523_v32 }
 0x1a0   :  { %v2725_v26 = vpop.eup %2724 }
 0x1a1   :  { %v530_v27 = vadd.f32 1.0, %v2725_v26 }
 0x1a3   :  { %2726 = vrcp.f32 %v530_v27  ;;  %v543_v36 = vand.u32 2147483648, %v530_v27  ;;  %v541_v44 = vand.u32 2147483647, %v530_v27  ;;  %vm537_vm3 = vweird.f32 %v530_v27 }
 0x1a4   :  { %2728 = vtanh.f32 %v523_v32 }
 0x1a5   :  { %v544_v48 = vor.u32 1.1754944e-38, %v543_v36  ;;  %vm542_vm5 = vcmp.eq.f32.partialorder %v541_v44, 8.507059e+37  ;;  %2730 = vpow2.f32 %v2611_v8 }
 0x1a9   :  { %v2727_v30 = vpop.eup %2726 }
 0x1aa   :  { %v533_v33 = vmul.f32 %v2727_v30, %v530_v27  ;;  %vm538_vm2 = vweird.f32 %v2727_v30  ;;  %v2729_v61 = vpop.eup %2728 }
 0x1ab   :  { %vm539_vm4 = vmor %vm537_vm3, %vm538_vm2  ;;  %v2731_v11 = vpop.eup %2730 }
 0x1ac   :  { %v534_v34 = vsub.f32 1.0, %v533_v33  ;;  %v531_v14 = vadd.f32 1.0, %v2731_v11 }
 0x1ae   :  { %v535_v37 = vmul.f32 %v2727_v30, %v534_v34  ;;  %2732 = vrcp.f32 %v531_v14  ;;  %v558_v28 = vand.u32 2147483648, %v531_v14  ;;  %vm552_vm7 = vweird.f32 %v531_v14 }
 0x1af   :  { %v556_v60 = vand.u32 2147483647, %v531_v14 }
 0x1b0   :  { %v536_v45 = vadd.f32 %v2727_v30, %v535_v37  ;;  %v361_v37 = vadd.f32 %v3469_v62, %v3475_v3 }
 0x1b1   :  { %vm557_vm9 = vcmp.eq.f32.partialorder %v556_v60, 8.507059e+37 }
 0x1b2   :  { %v540_v49 = vsel %vm539_vm4, %v2727_v30, %v536_v45  ;;  %v559_v30 = vor.u32 1.1754944e-38, %v558_v28  ;;  %v430_v44 = vadd.f32 %v3488_v13, %v361_v37 }
 0x1b3   :  { %v545_v2 = vsel %vm542_vm5, %v544_v48, %v540_v49 }
 0x1b4   :  { %v564_v6 = vmul.f32 %v2729_v61, %v545_v2  ;;  %v2733_v16 = vpop.eup %2732  ;;  %v563_v21 = vmul.f32 0.0, %v545_v2 }
 0x1b5   :  { %v548_v17 = vmul.f32 %v2733_v16, %v531_v14  ;;  %vm553_vm6 = vweird.f32 %v2733_v16 }
 0x1b6   :  { %566 = vrot.lane.b32.xlu0 %v564_v6, %s3095_s6  ;;  %vm554_vm8 = vmor %vm552_vm7, %vm553_vm6  ;;  %v402_v6 = vadd.f32 %v3471_v0, %v3479_v5 }
 0x1b7   :  { %v549_v19 = vsub.f32 1.0, %v548_v17 }
 0x1b8   :  { %v431_v11 = vadd.f32 %v3493_v18, %v402_v6 }
 0x1b9   :  { %v550_v20 = vmul.f32 %v2733_v16, %v549_v19 }
 0x1bb   :  { %v551_v27 = vadd.f32 %v2733_v16, %v550_v20 }
 0x1bd   :  { %v555_v63 = vsel %vm554_vm8, %v2733_v16, %v551_v27 }
 0x1be   :  { %v560_v33 = vsel %vm557_vm9, %v559_v30, %v555_v63 }
 0x228   :  { %v567_v25 = vpop.permute.xlu0 %566 }
 0x229   :  { %v3525_v26 = vadd.f32 %v567_v25, %v563_v21 }
 0x22b   :  { %2734 = vtanh.f32 %v3525_v26 }
 0x231   :  { %v2735_v32 = vpop.eup %2734 }
 0x232   :  { %v571_v34 = vmul.f32 %v2735_v32, %v560_v33 }
 0x234   :  { %575 = vrot.lane.b32.xlu0 %v571_v34, %s3095_s6 }
 0x2a6   :  { %v3529_v36 = vpop.permute.xlu0 %575 }
 0x2a7   :  { %2612 = vmatmul.msk.f32.vlgmr.msrb.gmra.mxu3 %vm478_vm10, %v3529_v36  ;;  %2613 = vmatmul.msk.f32.vlgmr.msra.gmra.mxu1 %vm478_vm10, %v3529_v36 }
 0x2a8   :  { %878 = vmatpush.msrb.mxu3 %v3282_v35  ;;  %898 = vmatpush.msra.mxu1 %v3298_v39 }
 0x2aa   :  { %879 = vmatpush.msrb.mxu3 %v3293_v38  ;;  %899 = vmatpush.msra.mxu1 %v3315_v43 }
 0x2ac   :  { %880 = vmatpush.msrb.mxu3 %v3310_v42  ;;  %900 = vmatpush.msra.mxu1 %v3332_v47 }
 0x2ae   :  { %881 = vmatpush.msrb.mxu3 %v3327_v46  ;;  %901 = vmatpush.msra.mxu1 %v3349_v51 }
 0x2b0   :  { %882 = vmatpush.msrb.mxu3 %v3344_v50  ;;  %902 = vmatpush.msra.mxu1 %v3367_v53 }
 0x2b2   :  { %883 = vmatpush.msrb.mxu3 %v3362_v52  ;;  %903 = vmatpush.msra.mxu1 %v3383_v55 }
 0x2b4   :  { %884 = vmatpush.msrb.mxu3 %v3378_v54  ;;  %904 = vmatpush.msra.mxu1 %v3399_v57 }
 0x2b6   :  { %885 = vmatpush.msrb.mxu3 %v3394_v56  ;;  %905 = vmatpush.msra.mxu1 %v3404_v58 }
 0x324   :  { %v616_v8 = vpop.f32.mrf.mxu1 }
 0x325   :  { %v620_v16 = vadd.f32 %v616_v8, %v431_v11 }
 0x327   :  { %v2615_v60 = vmul.f32 -1.442695, %v620_v16 }
 0x32a   :  { %v596_v45 = vpop.f32.mrf.mxu3 }
 0x32b   :  { %v619_v48 = vadd.f32 %v596_v45, %v430_v44 }
 0x32d   :  { %v2614_v49 = vmul.f32 -1.442695, %v619_v48 }
 0x32f   :  { %2736 = vpow2.f32 %v2614_v49 }
 0x335   :  { %v2737_v61 = vpop.eup %2736 }
 0x336   :  { %v627_v2 = vadd.f32 1.0, %v2737_v61 }
 0x338   :  { %2738 = vrcp.f32 %v627_v2  ;;  %v640_v62 = vand.u32 2147483648, %v627_v2  ;;  %v638_v20 = vand.u32 2147483647, %v627_v2  ;;  %vm634_vm12 = vweird.f32 %v627_v2 }
 0x339   :  { %2740 = vtanh.f32 %v620_v16 }
 0x33a   :  { %v641_v25 = vor.u32 1.1754944e-38, %v640_v62  ;;  %vm639_vm14 = vcmp.eq.f32.partialorder %v638_v20, 8.507059e+37  ;;  %2742 = vpow2.f32 %v2615_v60 }
 0x33e   :  { %v2739_v14 = vpop.eup %2738 }
 0x33f   :  { %v630_v17 = vmul.f32 %v2739_v14, %v627_v2  ;;  %vm635_vm11 = vweird.f32 %v2739_v14  ;;  %v2741_v0 = vpop.eup %2740 }
 0x340   :  { %vm636_vm13 = vmor %vm634_vm12, %vm635_vm11  ;;  %v2743_v63 = vpop.eup %2742 }
 0x341   :  { %v631_v19 = vsub.f32 1.0, %v630_v17  ;;  %v628_v30 = vadd.f32 1.0, %v2743_v63  ;;  %v364_v17 = vadd.f32 %v3473_v1, %v3481_v7 }
 0x343   :  { %v632_v3 = vmul.f32 %v2739_v14, %v631_v19  ;;  %2744 = vrcp.f32 %v628_v30  ;;  %v655_v61 = vand.u32 2147483648, %v628_v30  ;;  %vm649_vm0 = vweird.f32 %v628_v30 }
 0x344   :  { %v653_v2 = vand.u32 2147483647, %v628_v30  ;;  %v432_v19 = vadd.f32 %v3488_v13, %v364_v17 }
 0x345   :  { %v633_v21 = vadd.f32 %v2739_v14, %v632_v3  ;;  %v656_v8 = vor.u32 1.1754944e-38, %v655_v61 }
 0x346   :  { %vm654_vm3 = vcmp.eq.f32.partialorder %v653_v2, 8.507059e+37 }
 0x347   :  { %v637_v27 = vsel %vm636_vm13, %v2739_v14, %v633_v21 }
 0x348   :  { %v642_v5 = vsel %vm639_vm14, %v641_v25, %v637_v27  ;;  %v405_v27 = vadd.f32 %v3477_v4, %v3483_v9 }
 0x349   :  { %v661_v28 = vmul.f32 %v2741_v0, %v642_v5  ;;  %v2745_v32 = vpop.eup %2744  ;;  %v660_v44 = vmul.f32 %v642_v5, %v3525_v26 }
 0x34a   :  { %v645_v33 = vmul.f32 %v2745_v32, %v628_v30  ;;  %vm650_vm15 = vweird.f32 %v2745_v32  ;;  %v433_v5 = vadd.f32 %v3493_v18, %v405_v27 }
 0x34b   :  { %663 = vrot.lane.b32.xlu1 %v661_v28, %s3095_s6  ;;  %vm651_vm2 = vmor %vm649_vm0, %vm650_vm15 }
 0x34c   :  { %v646_v34 = vsub.f32 1.0, %v645_v33 }
 0x34e   :  { %v647_v37 = vmul.f32 %v2745_v32, %v646_v34 }
 0x350   :  { %v648_v49 = vadd.f32 %v2745_v32, %v647_v37 }
 0x352   :  { %v652_v6 = vsel %vm651_vm2, %v2745_v32, %v648_v49 }
 0x353   :  { %v657_v14 = vsel %vm654_vm3, %v656_v8, %v652_v6 }
 0x3bd   :  { %v664_v45 = vpop.permute.xlu1 %663 }
 0x3be   :  { %v3559_v48 = vadd.f32 %v664_v45, %v660_v44 }
 0x3c0   :  { %2746 = vtanh.f32 %v3559_v48 }
 0x3c6   :  { %v2747_v11 = vpop.eup %2746 }
 0x3c7   :  { %v668_v16 = vmul.f32 %v2747_v11, %v657_v14 }
 0x3c9   :  { %672 = vrot.lane.b32.xlu1 %v668_v16, %s3095_s6 }
 0x43b   :  { %v3563_v26 = vpop.permute.xlu1 %672 }
 0x43c   :  { %2616 = vmatmul.msk.f32.vlgmr.msra.gmra.mxu2 %vm478_vm10, %v3563_v26  ;;  %2617 = vmatmul.msk.f32.vlgmr.msra.gmra.mxu3 %vm478_vm10, %v3563_v26 }
 0x43d   :  { %975 = vmatpush.msra.mxu2 %v3282_v35  ;;  %995 = vmatpush.msra.mxu3 %v3298_v39 }
 0x43f   :  { %976 = vmatpush.msra.mxu2 %v3293_v38  ;;  %996 = vmatpush.msra.mxu3 %v3315_v43 }
 0x441   :  { %977 = vmatpush.msra.mxu2 %v3310_v42  ;;  %997 = vmatpush.msra.mxu3 %v3332_v47 }
 0x443   :  { %978 = vmatpush.msra.mxu2 %v3327_v46  ;;  %998 = vmatpush.msra.mxu3 %v3349_v51 }
 0x445   :  { %979 = vmatpush.msra.mxu2 %v3344_v50  ;;  %999 = vmatpush.msra.mxu3 %v3367_v53 }
 0x447   :  { %980 = vmatpush.msra.mxu2 %v3362_v52  ;;  %1000 = vmatpush.msra.mxu3 %v3383_v55 }
 0x449   :  { %981 = vmatpush.msra.mxu2 %v3378_v54  ;;  %1001 = vmatpush.msra.mxu3 %v3399_v57 }
 0x44b   :  { %982 = vmatpush.msra.mxu2 %v3394_v56  ;;  %1002 = vmatpush.msra.mxu3 %v3404_v58 }
 0x4bf   :  { %v693_v62 = vpop.f32.mrf.mxu2  ;;  %v713_v0 = vpop.f32.mrf.mxu3 }
 0x4c0   :  { %v716_v3 = vadd.f32 %v693_v62, %v432_v19  ;;  %v717_v60 = vadd.f32 %v713_v0, %v433_v5 }
 0x4c2   :  { %v2618_v20 = vmul.f32 -1.442695, %v716_v3  ;;  %v2619_v18 = vmul.f32 -1.442695, %v717_v60 }
 0x4c4   :  { %2748 = vpow2.f32 %v2618_v20 }
 0x4ca   :  { %v2749_v21 = vpop.eup %2748 }
 0x4cb   :  { %v724_v25 = vadd.f32 1.0, %v2749_v21 }
 0x4cd   :  { %2750 = vrcp.f32 %v724_v25  ;;  %v737_v1 = vand.u32 2147483648, %v724_v25  ;;  %v735_v13 = vand.u32 2147483647, %v724_v25  ;;  %vm731_vm5 = vweird.f32 %v724_v25 }
 0x4ce   :  { %2752 = vtanh.f32 %v717_v60 }
 0x4cf   :  { %v738_v33 = vor.u32 1.1754944e-38, %v737_v1  ;;  %vm736_vm7 = vcmp.eq.f32.partialorder %v735_v13, 8.507059e+37  ;;  %2754 = vpow2.f32 %v2619_v18 }
 0x4d3   :  { %v2751_v28 = vpop.eup %2750 }
 0x4d4   :  { %v727_v63 = vmul.f32 %v2751_v28, %v724_v25  ;;  %vm732_vm4 = vweird.f32 %v2751_v28  ;;  %v2753_v4 = vpop.eup %2752 }
 0x4d5   :  { %vm733_vm6 = vmor %vm731_vm5, %vm732_vm4  ;;  %v2755_v44 = vpop.eup %2754 }
 0x4d6   :  { %v728_v30 = vsub.f32 1.0, %v727_v63  ;;  %v725_v45 = vadd.f32 1.0, %v2755_v44 }
 0x4d8   :  { %v729_v7 = vmul.f32 %v2751_v28, %v728_v30  ;;  %2756 = vrcp.f32 %v725_v45  ;;  %v752_v17 = vand.u32 2147483648, %v725_v45  ;;  %vm746_vm9 = vweird.f32 %v725_v45 }
 0x4d9   :  { %v750_v19 = vand.u32 2147483647, %v725_v45 }
 0x4da   :  { %v730_v32 = vadd.f32 %v2751_v28, %v729_v7  ;;  %v753_v3 = vor.u32 1.1754944e-38, %v752_v17 }
 0x4db   :  { %vm751_vm12 = vcmp.eq.f32.partialorder %v750_v19, 8.507059e+37 }
 0x4dc   :  { %v734_v34 = vsel %vm733_vm6, %v2751_v28, %v730_v32 }
 0x4dd   :  { %v739_v9 = vsel %vm736_vm7, %v738_v33, %v734_v34 }
 0x4de   :  { %v758_v37 = vmul.f32 %v2753_v4, %v739_v9  ;;  %v2757_v49 = vpop.eup %2756  ;;  %v757_v8 = vmul.f32 %v739_v9, %v3559_v48 }
 0x4df   :  { %v742_v61 = vmul.f32 %v2757_v49, %v725_v45  ;;  %vm747_vm8 = vweird.f32 %v2757_v49 }
 0x4e0   :  { %760 = vrot.lane.b32.xlu2 %v758_v37, %s3095_s6  ;;  %vm748_vm11 = vmor %vm746_vm9, %vm747_vm8 }
 0x4e1   :  { %v743_v2 = vsub.f32 1.0, %v742_v61 }
 0x4e3   :  { %v744_v6 = vmul.f32 %v2757_v49, %v743_v2 }
 0x4e5   :  { %v745_v16 = vadd.f32 %v2757_v49, %v744_v6 }
 0x4e7   :  { %v749_v62 = vsel %vm748_vm11, %v2757_v49, %v745_v16 }
 0x4e8   :  { %v754_v21 = vsel %vm751_vm12, %v753_v3, %v749_v62 }
 0x53a   :  { %v761_v11 = vpop.permute.xlu2 %760 }
 0x53b   :  { %v3593_v14 = vadd.f32 %v761_v11, %v757_v8 }
 0x53d   :  { %2758 = vtanh.f32 %v3593_v14 }
 0x543   :  { %v2759_v20 = vpop.eup %2758 }
 0x544   :  { %v765_v25 = vmul.f32 %v2759_v20, %v754_v21 }
 0x546   :  { %769 = vrot.lane.b32.xlu2 %v765_v25, %s3095_s6 }
 0x5a0   :  { %v3597_v48 = vpop.permute.xlu2 %769 }
 0x5a1   :  { %2620 = vmatmul.msk.f32.vlgmr.msrb.gmra.mxu1 %vm478_vm10, %v3597_v48  ;;  %2621 = vmatmul.msk.f32.vlgmr.msrb.gmra.mxu2 %vm478_vm10, %v3597_v48 }
 0x5a2   :  { %1092 = vmatpush.msrb.mxu1 %v3298_v39  ;;  %1169 = vmatpush.msrb.mxu2 %v3282_v35 }
 0x5a4   :  { %1093 = vmatpush.msrb.mxu1 %v3315_v43  ;;  %1170 = vmatpush.msrb.mxu2 %v3293_v38 }
 0x5a6   :  { %1094 = vmatpush.msrb.mxu1 %v3332_v47  ;;  %1171 = vmatpush.msrb.mxu2 %v3310_v42 }
 0x5a8   :  { %1095 = vmatpush.msrb.mxu1 %v3349_v51  ;;  %1172 = vmatpush.msrb.mxu2 %v3327_v46 }
 0x5aa   :  { %1096 = vmatpush.msrb.mxu1 %v3367_v53  ;;  %1173 = vmatpush.msrb.mxu2 %v3344_v50 }
 0x5ac   :  { %1097 = vmatpush.msrb.mxu1 %v3383_v55  ;;  %1174 = vmatpush.msrb.mxu2 %v3362_v52 }
 0x5ae   :  { %1098 = vmatpush.msrb.mxu1 %v3399_v57  ;;  %1175 = vmatpush.msrb.mxu2 %v3378_v54 }
 0x5b0   :  { %1099 = vmatpush.msrb.mxu1 %v3404_v58  ;;  %1176 = vmatpush.msrb.mxu2 %v3394_v56 }
 0x61e   :  { %v790_v35 = vpop.f32.mrf.mxu1 }
 0x61f   :  { %v813_v38 = vadd.f32 %v790_v35, %v3491_v15 }
 0x621   :  { %v2622_v42 = vmul.f32 -1.442695, %v813_v38 }
 0x623   :  { %2760 = vpow2.f32 %v2622_v42 }
 0x624   :  { %v810_v50 = vpop.f32.mrf.mxu2 }
 0x625   :  { %v814_v52 = vadd.f32 %v810_v50, %v3496_v22 }
 0x627   :  { %v2623_v32 = vmul.f32 -1.442695, %v814_v52 }
 0x629   :  { %v2761_v46 = vpop.eup %2760 }
 0x62a   :  { %v821_v27 = vadd.f32 1.0, %v2761_v46 }
 0x62c   :  { %2762 = vrcp.f32 %v821_v27  ;;  %v834_v54 = vand.u32 2147483648, %v821_v27  ;;  %v832_v63 = vand.u32 2147483647, %v821_v27  ;;  %vm828_vm14 = vweird.f32 %v821_v27 }
 0x62d   :  { %2764 = vtanh.f32 %v814_v52 }
 0x62e   :  { %v835_v15 = vor.u32 1.1754944e-38, %v834_v54  ;;  %vm833_vm0 = vcmp.eq.f32.partialorder %v832_v63, 8.507059e+37  ;;  %2766 = vpow2.f32 %v2623_v32 }
 0x632   :  { %v2763_v0 = vpop.eup %2762 }
 0x633   :  { %v824_v5 = vmul.f32 %v2763_v0, %v821_v27  ;;  %vm829_vm13 = vweird.f32 %v2763_v0  ;;  %v2765_v1 = vpop.eup %2764 }
 0x634   :  { %vm830_vm15 = vmor %vm828_vm14, %vm829_vm13  ;;  %v2767_v22 = vpop.eup %2766 }
 0x635   :  { %v825_v28 = vsub.f32 1.0, %v824_v5  ;;  %v822_v33 = vadd.f32 1.0, %v2767_v22 }
 0x637   :  { %v826_v60 = vmul.f32 %v2763_v0, %v825_v28  ;;  %2768 = vrcp.f32 %v822_v33  ;;  %v849_v61 = vand.u32 2147483648, %v822_v33  ;;  %vm843_vm3 = vweird.f32 %v822_v33 }
 0x638   :  { %v847_v2 = vand.u32 2147483647, %v822_v33 }
 0x639   :  { %v827_v56 = vadd.f32 %v2763_v0, %v826_v60  ;;  %v850_v8 = vor.u32 1.1754944e-38, %v849_v61 }
 0x63a   :  { %vm848_vm5 = vcmp.eq.f32.partialorder %v847_v2, 8.507059e+37 }
 0x63b   :  { %v831_v30 = vsel %vm830_vm15, %v2763_v0, %v827_v56 }
 0x63c   :  { %v836_v7 = vsel %vm833_vm0, %v835_v15, %v831_v30 }
 0x63d   :  { %v855_v13 = vmul.f32 %v2765_v1, %v836_v7  ;;  %v2769_v34 = vpop.eup %2768  ;;  %v854_v18 = vmul.f32 %v836_v7, %v3593_v14 }
 0x63e   :  { %v839_v4 = vmul.f32 %v2769_v34, %v822_v33  ;;  %vm844_vm2 = vweird.f32 %v2769_v34 }
 0x63f   :  { %857 = vrot.lane.b32.xlu0 %v855_v13, %s3095_s6  ;;  %vm845_vm4 = vmor %vm843_vm3, %vm844_vm2 }
 0x640   :  { %v840_v9 = vsub.f32 1.0, %v839_v4 }
 0x642   :  { %v841_v37 = vmul.f32 %v2769_v34, %v840_v9 }
 0x644   :  { %v842_v49 = vadd.f32 %v2769_v34, %v841_v37 }
 0x646   :  { %v846_v6 = vsel %vm845_vm4, %v2769_v34, %v842_v49 }
 0x647   :  { %v851_v16 = vsel %vm848_vm5, %v850_v8, %v846_v6 }
 0x6b1   :  { %v858_v44 = vpop.permute.xlu0 %857 }
 0x6b2   :  { %v860_v45 = vadd.f32 %v858_v44, %v854_v18 }
 0x6b4   :  { %2770 = vtanh.f32 %v860_v45 }
 0x6ba   :  { %v2771_v11 = vpop.eup %2770 }
 0x6bb   :  { %v862_v17 = vmul.f32 %v2771_v11, %v851_v16 }
 0x6bd   :  { %866 = vrot.lane.b32.xlu1 %v862_v17, %s3095_s6 }
 0x72f   :  { %v3624_v19 = vpop.permute.xlu1 %866 }
 0x730   :  { %2624 = vmatmul.msk.f32.vlgmr.msrb.gmra.mxu3 %vm478_vm10, %v3624_v19  ;;  %2625 = vmatmul.msk.f32.vlgmr.msra.gmra.mxu1 %vm478_vm10, %v3624_v19 }
 0x731   :  { %1189 = vmatpush.msrb.mxu3 %v3298_v39 }
 0x733   :  { %1190 = vmatpush.msrb.mxu3 %v3315_v43 }
 0x735   :  { %1191 = vmatpush.msrb.mxu3 %v3332_v47 }
 0x737   :  { %1192 = vmatpush.msrb.mxu3 %v3349_v51 }
 0x739   :  { %1193 = vmatpush.msrb.mxu3 %v3367_v53 }
 0x73b   :  { %1194 = vmatpush.msrb.mxu3 %v3383_v55 }
 0x73d   :  { %1195 = vmatpush.msrb.mxu3 %v3399_v57 }
 0x73f   :  { %1196 = vmatpush.msrb.mxu3 %v3404_v58 }
 0x7ad   :  { %v907_v43 = vpop.f32.mrf.mxu1 }
 0x7ae   :  { %v911_v51 = vadd.f32 %v907_v43, %v3502_v29 }
 0x7b0   :  { %v2627_v27 = vmul.f32 -1.442695, %v911_v51 }
 0x7b3   :  { %v887_v14 = vpop.f32.mrf.mxu3 }
 0x7b4   :  { %v910_v62 = vadd.f32 %v887_v14, %v3499_v23 }
 0x7b6   :  { %v2626_v3 = vmul.f32 -1.442695, %v910_v62 }
 0x7b8   :  { %2772 = vpow2.f32 %v2626_v3 }
 0x7be   :  { %v2773_v39 = vpop.eup %2772 }
 0x7bf   :  { %v918_v20 = vadd.f32 1.0, %v2773_v39 }
 0x7c1   :  { %2774 = vrcp.f32 %v918_v20  ;;  %v931_v55 = vand.u32 2147483648, %v918_v20  ;;  %v929_v57 = vand.u32 2147483647, %v918_v20  ;;  %vm925_vm7 = vweird.f32 %v918_v20 }
 0x7c2   :  { %2776 = vtanh.f32 %v911_v51 }
 0x7c3   :  { %v932_v23 = vor.u32 1.1754944e-38, %v931_v55  ;;  %vm930_vm9 = vcmp.eq.f32.partialorder %v929_v57, 8.507059e+37  ;;  %2778 = vpow2.f32 %v2627_v27 }
 0x7c7   :  { %v2775_v47 = vpop.eup %2774 }
 0x7c8   :  { %v921_v21 = vmul.f32 %v2775_v47, %v918_v20  ;;  %vm926_vm6 = vweird.f32 %v2775_v47  ;;  %v2777_v38 = vpop.eup %2776 }
 0x7c9   :  { %vm927_vm8 = vmor %vm925_vm7, %vm926_vm6  ;;  %v2779_v29 = vpop.eup %2778 }
 0x7ca   :  { %v922_v53 = vsub.f32 1.0, %v921_v21  ;;  %v919_v50 = vadd.f32 1.0, %v2779_v29 }
 0x7cc   :  { %v923_v25 = vmul.f32 %v2775_v47, %v922_v53  ;;  %2780 = vrcp.f32 %v919_v50  ;;  %v946_v15 = vand.u32 2147483648, %v919_v50  ;;  %vm940_vm12 = vweird.f32 %v919_v50 }
 0x7cd   :  { %v944_v30 = vand.u32 2147483647, %v919_v50 }
 0x7ce   :  { %v924_v58 = vadd.f32 %v2775_v47, %v923_v25  ;;  %v947_v7 = vor.u32 1.1754944e-38, %v946_v15 }
 0x7cf   :  { %vm945_vm14 = vcmp.eq.f32.partialorder %v944_v30, 8.507059e+37 }
 0x7d0   :  { %v928_v35 = vsel %vm927_vm8, %v2775_v47, %v924_v58 }
 0x7d1   :  { %v933_v42 = vsel %vm930_vm9, %v932_v23, %v928_v35 }
 0x7d2   :  { %v952_v46 = vmul.f32 %v2777_v38, %v933_v42  ;;  %v2781_v0 = vpop.eup %2780  ;;  %v951_v54 = vmul.f32 %v933_v42, %v860_v45 }
 0x7d3   :  { %v936_v52 = vmul.f32 %v2781_v0, %v919_v50  ;;  %vm941_vm11 = vweird.f32 %v2781_v0 }
 0x7d4   :  { %954 = vrot.lane.b32.xlu2 %v952_v46, %s3095_s6  ;;  %vm942_vm13 = vmor %vm940_vm12, %vm941_vm11 }
 0x7d5   :  { %v937_v5 = vsub.f32 1.0, %v936_v52 }
 0x7d7   :  { %v938_v28 = vmul.f32 %v2781_v0, %v937_v5 }
 0x7d9   :  { %v939_v56 = vadd.f32 %v2781_v0, %v938_v28 }
 0x7db   :  { %v943_v1 = vsel %vm942_vm13, %v2781_v0, %v939_v56 }
 0x7dc   :  { %v948_v32 = vsel %vm945_vm14, %v947_v7, %v943_v1 }
 0x82e   :  { %v955_v60 = vpop.permute.xlu2 %954 }
 0x82f   :  { %v957_v63 = vadd.f32 %v955_v60, %v951_v54 }
 0x831   :  { %2782 = vtanh.f32 %v957_v63 }
 0x837   :  { %v2783_v13 = vpop.eup %2782 }
 0x838   :  { %v959_v22 = vmul.f32 %v2783_v13, %v948_v32 }
 0x83a   :  { %963 = vrot.lane.b32.xlu0 %v959_v22, %s3095_s6 }
 0x8ac   :  { %v3642_v33 = vpop.permute.xlu0 %963 }
 0x8ad   :  { %2628 = vmatmul.msk.f32.vlgmr.msra.gmra.mxu2 %vm478_vm10, %v3642_v33  ;;  %2629 = vmatmul.msk.f32.vlgmr.msra.gmra.mxu3 %vm478_vm10, %v3642_v33 }
 0x930   :  { %v984_v34 = vpop.f32.mrf.mxu2  ;;  %v1004_v44 = vpop.f32.mrf.mxu3 }
 0x931   :  { %v1007_v4 = vadd.f32 %v984_v34, %v3505_v31  ;;  %v1008_v49 = vadd.f32 %v1004_v44, %v3508_v40 }
 0x933   :  { %v2630_v9 = vmul.f32 -1.442695, %v1007_v4  ;;  %v2631_v39 = vmul.f32 -1.442695, %v1008_v49 }
 0x935   :  { %2784 = vpow2.f32 %v2630_v9 }
 0x93b   :  { %v2785_v37 = vpop.eup %2784 }
 0x93c   :  { %v1015_v18 = vadd.f32 1.0, %v2785_v37 }
 0x93e   :  { %2786 = vrcp.f32 %v1015_v18  ;;  %v1028_v6 = vand.u32 2147483648, %v1015_v18  ;;  %v1026_v11 = vand.u32 2147483647, %v1015_v18  ;;  %vm1022_vm0 = vweird.f32 %v1015_v18 }
 0x93f   :  { %2788 = vtanh.f32 %v1008_v49 }
 0x940   :  { %v1029_v31 = vor.u32 1.1754944e-38, %v1028_v6  ;;  %vm1027_vm3 = vcmp.eq.f32.partialorder %v1026_v11, 8.507059e+37  ;;  %2790 = vpow2.f32 %v2631_v39 }
 0x944   :  { %v2787_v45 = vpop.eup %2786 }
 0x945   :  { %v1018_v61 = vmul.f32 %v2787_v45, %v1015_v18  ;;  %vm1023_vm15 = vweird.f32 %v2787_v45  ;;  %v2789_v14 = vpop.eup %2788 }
 0x946   :  { %vm1024_vm2 = vmor %vm1022_vm0, %vm1023_vm15  ;;  %v2791_v40 = vpop.eup %2790 }
 0x947   :  { %v1019_v2 = vsub.f32 1.0, %v1018_v61  ;;  %v1016_v20 = vadd.f32 1.0, %v2791_v40 }
 0x949   :  { %v1020_v8 = vmul.f32 %v2787_v45, %v1019_v2  ;;  %2792 = vrcp.f32 %v1016_v20  ;;  %v1043_v58 = vand.u32 2147483648, %v1016_v20  ;;  %vm1037_vm5 = vweird.f32 %v1016_v20 }
 0x94a   :  { %v1041_v23 = vand.u32 2147483647, %v1016_v20 }
 0x94b   :  { %v1021_v16 = vadd.f32 %v2787_v45, %v1020_v8  ;;  %v1044_v38 = vor.u32 1.1754944e-38, %v1043_v58 }
 0x94c   :  { %vm1042_vm7 = vcmp.eq.f32.partialorder %v1041_v23, 8.507059e+37 }
 0x94d   :  { %v1025_v17 = vsel %vm1024_vm2, %v2787_v45, %v1021_v16 }
 0x94e   :  { %v1030_v62 = vsel %vm1027_vm3, %v1029_v31, %v1025_v17 }
 0x94f   :  { %v1049_v3 = vmul.f32 %v2789_v14, %v1030_v62  ;;  %v2793_v43 = vpop.eup %2792  ;;  %v1048_v53 = vmul.f32 %v1030_v62, %v957_v63 }
 0x950   :  { %v1033_v47 = vmul.f32 %v2793_v43, %v1016_v20  ;;  %vm1038_vm4 = vweird.f32 %v2793_v43 }
 0x951   :  { %1051 = vrot.lane.b32.xlu1 %v1049_v3, %s3095_s6  ;;  %vm1039_vm6 = vmor %vm1037_vm5, %vm1038_vm4 }
 0x952   :  { %v1034_v51 = vsub.f32 1.0, %v1033_v47 }
 0x954   :  { %v1035_v21 = vmul.f32 %v2793_v43, %v1034_v51 }
 0x956   :  { %v1036_v57 = vadd.f32 %v2793_v43, %v1035_v21 }
 0x958   :  { %v1040_v35 = vsel %vm1039_vm6, %v2793_v43, %v1036_v57 }
 0x959   :  { %v1045_v46 = vsel %vm1042_vm7, %v1044_v38, %v1040_v35 }
 0x9c3   :  { %v1052_v55 = vpop.permute.xlu1 %1051 }
 0x9c4   :  { %v1054_v25 = vadd.f32 %v1052_v55, %v1048_v53 }
 0x9c6   :  { %2794 = vtanh.f32 %v1054_v25 }
 0x9cc   :  { %v2795_v42 = vpop.eup %2794 }
 0x9cd   :  { %v1056_v27 = vmul.f32 %v2795_v42, %v1045_v46 }
 0x9cf   :  { %1060 = vrot.lane.b32.xlu2 %v1056_v27, %s3095_s6 }
 0xa29   :  { %v3652_v29 = vpop.permute.xlu2 %1060 }
 0xa2a   :  { %2632 = vmatmul.msk.f32.vlgmr.msra.gmra.mxu0 %vm478_vm10, %v3652_v29  ;;  %2633 = vmatmul.msk.f32.vlgmr.msrb.gmra.mxu1 %vm478_vm10, %v3652_v29 }
 0xaa7   :  { %v1081_v50 = vpop.f32.mrf.mxu0  ;;  %v1101_v54 = vpop.f32.mrf.mxu1 }
 0xaa8   :  { %v1104_v0 = vadd.f32 %v1081_v50, %v3511_v41  ;;  %v1105_v63 = vadd.f32 %v1101_v54, %v3514_v10  ;;  %v1284_v54 = vld [vmem:[#allocation5 + $0x70] sm:$0xff] }
 0xaa9   :  { %1416 = vmatpush.msra.mxu2 %v1284_v54 }
 0xaaa   :  { %v2634_v52 = vmul.f32 -1.442695, %v1104_v0  ;;  %v2635_v9 = vmul.f32 -1.442695, %v1105_v63 }
 0xaac   :  { %2796 = vpow2.f32 %v2634_v52 }
 0xab2   :  { %v2797_v5 = vpop.eup %2796 }
 0xab3   :  { %v1112_v28 = vadd.f32 1.0, %v2797_v5  ;;  %v1300_v5 = vld [vmem:[#allocation7 + $0x70] sm:$0xff] }
 0xab4   :  { %1334 = vmatpush.msrb.mxu0 %v1300_v5  ;;  %v3727_v5 = vld [vmem:[#allocation8 + $0x30] sm:$0xff] }
 0xab5   :  { %2798 = vrcp.f32 %v1112_v28  ;;  %v1125_v30 = vand.u32 2147483648, %v1112_v28  ;;  %v1123_v7 = vand.u32 2147483647, %v1112_v28  ;;  %vm1119_vm9 = vweird.f32 %v1112_v28 }
 0xab6   :  { %2800 = vtanh.f32 %v1105_v63  ;;  %v1298_v63 = vld [vmem:[#allocation7 + $0x60] sm:$0xff] }
 0xab7   :  { %v1126_v41 = vor.u32 1.1754944e-38, %v1125_v30  ;;  %vm1124_vm12 = vcmp.eq.f32.partialorder %v1123_v7, 8.507059e+37  ;;  %2802 = vpow2.f32 %v2635_v9  ;;  %v1283_v30 = vld [vmem:[#allocation5 + $0x68] sm:$0xff]  ;;  %1335 = vmatpush.msrb.mxu0 %v1298_v63  ;;  %v1297_v7 = vld [vmem:[#allocation7 + $0x58] sm:$0xff]  ;;  %v1292_v9 = vld [vmem:[#allocation7 + $0x30] sm:$0xff] }
 0xab8   :  { %v3751_v63 = vld [vmem:[#allocation8 + $0x48] sm:$0xff] }
 0xabb   :  { %v2799_v60 = vpop.eup %2798 }
 0xabc   :  { %v1115_v56 = vmul.f32 %v2799_v60, %v1112_v28  ;;  %vm1120_vm8 = vweird.f32 %v2799_v60  ;;  %v2801_v22 = vpop.eup %2800  ;;  %v1301_v28 = vld [vmem:[#allocation7 + $0x78] sm:$0xff] }
 0xabd   :  { %vm1121_vm11 = vmor %vm1119_vm9, %vm1120_vm8  ;;  %v2803_v10 = vpop.eup %2802  ;;  %1375 = vmatpush.msra.mxu1 %v1301_v28  ;;  %v3729_v28 = vld [vmem:[#allocation8 + $0x58] sm:$0xff] }
 0xabe   :  { %v1116_v15 = vsub.f32 1.0, %v1115_v56  ;;  %v1113_v37 = vadd.f32 1.0, %v2803_v10  ;;  %v1299_v56 = vld [vmem:[#allocation7 + $0x68] sm:$0xff]  ;;  %v1293_v10 = vld [vmem:[#allocation7 + $0x38] sm:$0xff] }
 0xabf   :  { %1376 = vmatpush.msra.mxu1 %v1299_v56  ;;  %v3767_v56 = vld [vmem:[#allocation8 + $0x10] sm:$0xff] }
 0xac0   :  { %v1117_v1 = vmul.f32 %v2799_v60, %v1116_v15  ;;  %2804 = vrcp.f32 %v1113_v37  ;;  %v1140_v11 = vand.u32 2147483648, %v1113_v37  ;;  %vm1134_vm14 = vweird.f32 %v1113_v37  ;;  %v1282_v15 = vld [vmem:[#allocation5 + $0x60] sm:$0xff] }
 0xac1   :  { %v1138_v16 = vand.u32 2147483647, %v1113_v37  ;;  %1417 = vmatpush.msra.mxu2 %v1282_v15  ;;  %1377 = vmatpush.msra.mxu1 %v1297_v7  ;;  %v3769_v15 = vld [vmem:[#allocation8 + $0x38] sm:$0xff] }
 0xac2   :  { %v1118_v13 = vadd.f32 %v2799_v60, %v1117_v1  ;;  %v1141_v17 = vor.u32 1.1754944e-38, %v1140_v11  ;;  %v1296_v1 = vld [vmem:[#allocation7 + $0x50] sm:$0xff]  ;;  %v3789_v7 = vld [vmem:[#allocation8 + $0x18] sm:$0xff] }
 0xac3   :  { %vm1139_vm0 = vcmp.eq.f32.partialorder %v1138_v16, 8.507059e+37  ;;  %1336 = vmatpush.msrb.mxu0 %v1296_v1  ;;  %v1288_v11 = vld [vmem:[#allocation7 + $0x10] sm:$0xff]  ;;  %v1289_v16 = vld [vmem:[#allocation7 + $0x18] sm:$0xff]  ;;  %v3787_v1 = vld [vmem:[#allocation8 + $0x28] sm:$0xff] }
 0xac4   :  { %v1122_v32 = vsel %vm1121_vm11, %v2799_v60, %v1118_v13  ;;  %v1285_v60 = vld [vmem:[#allocation5 + $0x78] sm:$0xff]  ;;  %v1280_v13 = vld [vmem:[#allocation5 + $0x50] sm:$0xff] }
 0xac5   :  { %v1127_v34 = vsel %vm1124_vm12, %v1126_v41, %v1122_v32  ;;  %1457 = vmatpush.msra.mxu3 %v1285_v60  ;;  %v1281_v41 = vld [vmem:[#allocation5 + $0x58] sm:$0xff]  ;;  %v1294_v32 = vld [vmem:[#allocation7 + $0x40] sm:$0xff]  ;;  %1418 = vmatpush.msra.mxu2 %v1280_v13  ;;  %v3793_v13 = vld [vmem:[#allocation8 + $0x8] sm:$0xff] }
 0xac6   :  { %v1146_v4 = vmul.f32 %v2801_v22, %v1127_v34  ;;  %v2805_v18 = vpop.eup %2804  ;;  %v1145_v61 = vmul.f32 %v1127_v34, %v1054_v25  ;;  %v1295_v22 = vld [vmem:[#allocation7 + $0x48] sm:$0xff]  ;;  %v1278_v34 = vld [vmem:[#allocation5 + $0x40] sm:$0xff]  ;;  %1337 = vmatpush.msrb.mxu0 %v1294_v32 }
 0xac7   :  { %v1130_v44 = vmul.f32 %v2805_v18, %v1113_v37  ;;  %vm1135_vm13 = vweird.f32 %v2805_v18  ;;  %1458 = vmatpush.msra.mxu3 %v1283_v30  ;;  %1378 = vmatpush.msra.mxu1 %v1295_v22  ;;  %v3749_v60 = vld [vmem:[#allocation8 + $0x20] sm:$0xff] }
 0xac8   :  { %1148 = vrot.lane.b32.xlu0 %v1146_v4, %s3095_s6  ;;  %vm1136_vm15 = vmor %vm1134_vm14, %vm1135_vm13  ;;  %v1279_v4 = vld [vmem:[#allocation5 + $0x48] sm:$0xff]  ;;  %1419 = vmatpush.msra.mxu2 %v1278_v34  ;;  %v3785_v30 = vld [vmem:[#allocation8] sm:$0xff] }
 0xac9   :  { %v1131_v45 = vsub.f32 1.0, %v1130_v44  ;;  %1459 = vmatpush.msra.mxu3 %v1281_v41  ;;  %v1277_v44 = vld [vmem:[#allocation5 + $0x38] sm:$0xff]  ;;  %1338 = vmatpush.msrb.mxu0 %v1292_v9 }
 0xaca   :  { %1379 = vmatpush.msra.mxu1 %v1293_v10 }
 0xacb   :  { %v1132_v49 = vmul.f32 %v2805_v18, %v1131_v45  ;;  %1460 = vmatpush.msra.mxu3 %v1279_v4  ;;  %v1290_v45 = vld [vmem:[#allocation7 + $0x20] sm:$0xff] }
 0xacc   :  { %1339 = vmatpush.msrb.mxu0 %v1290_v45  ;;  %v1490_v4 = vld [vmem:[%s4077_s10] sm:$0x3] }
 0xacd   :  { %v1133_v8 = vadd.f32 %v2805_v18, %v1132_v49  ;;  %v1291_v49 = vld [vmem:[#allocation7 + $0x28] sm:$0xff]  ;;  %1461 = vmatpush.msra.mxu3 %v1277_v44 }
 0xace   :  { %1380 = vmatpush.msra.mxu1 %v1291_v49  ;;  %1340 = vmatpush.msrb.mxu0 %v1288_v11  ;;  %v1492_v49 = vperm.slane %v1490_v4, 0 }
 0xacf   :  { %v1137_v31 = vsel %vm1136_vm15, %v2805_v18, %v1133_v8  ;;  %v1276_v18 = vld [vmem:[#allocation5 + $0x30] sm:$0xff] }
 0xad0   :  { %v1142_v62 = vsel %vm1139_vm0, %v1141_v17, %v1137_v31  ;;  %1420 = vmatpush.msra.mxu2 %v1276_v18  ;;  %v1272_v31 = vld [vmem:[#allocation5 + $0x10] sm:$0xff]  ;;  %v1273_v17 = vld [vmem:[#allocation5 + $0x18] sm:$0xff]  ;;  %1381 = vmatpush.msra.mxu1 %v1289_v16 }
 0xb3a   :  { %v1149_v2 = vpop.permute.xlu0 %1148 }
 0xb3b   :  { %v3661_v6 = vadd.f32 %v1149_v2, %v1145_v61  ;;  %v1274_v61 = vld [vmem:[#allocation5 + $0x20] sm:$0xff]  ;;  %v1275_v2 = vld [vmem:[#allocation5 + $0x28] sm:$0xff] }
 0xb3c   :  { %1421 = vmatpush.msra.mxu2 %v1274_v61  ;;  %1462 = vmatpush.msra.mxu3 %v1275_v2 }
 0xb3d   :  { %2806 = vtanh.f32 %v3661_v6 }
 0xb3e   :  { %1422 = vmatpush.msra.mxu2 %v1272_v31  ;;  %1463 = vmatpush.msra.mxu3 %v1273_v17 }
 0xb43   :  { %v2807_v14 = vpop.eup %2806 }
 0xb44   :  { %v1153_v3 = vmul.f32 %v2807_v14, %v1142_v62 }
 0xb46   :  { %1157 = vrot.lane.b32.xlu1 %v1153_v3, %s3095_s6 }
 0xbb8   :  { %v3665_v39 = vpop.permute.xlu1 %1157 }
 0xbb9   :  { %2636 = vmatmul.msk.f32.vlgmr.msrb.gmra.mxu2 %vm478_vm10, %v3665_v39  ;;  %2637 = vmatmul.msk.f32.vlgmr.msrb.gmra.mxu3 %vm478_vm10, %v3665_v39  ;;  %v1259_v54 = vsel %vm233_vm1, %v3563_v26, %v3665_v39 }
 0xc3c   :  { %v1178_v40 = vpop.f32.mrf.mxu2  ;;  %v1198_v21 = vpop.f32.mrf.mxu3 }
 0xc3d   :  { %v1201_v20 = vadd.f32 %v1178_v40, %v3517_v12  ;;  %v1202_v55 = vadd.f32 %v1198_v21, %v3521_v24 }
 0xc3f   :  { %v2638_v43 = vmul.f32 -1.442695, %v1201_v20  ;;  %v2639_v24 = vmul.f32 -1.442695, %v1202_v55 }
 0xc41   :  { %2808 = vpow2.f32 %v2638_v43 }
 0xc47   :  { %v2809_v47 = vpop.eup %2808 }
 0xc48   :  { %v1209_v51 = vadd.f32 1.0, %v2809_v47 }
 0xc4a   :  { %2810 = vrcp.f32 %v1209_v51  ;;  %v1222_v58 = vand.u32 2147483648, %v1209_v51  ;;  %v1220_v35 = vand.u32 2147483647, %v1209_v51  ;;  %vm1216_vm3 = vweird.f32 %v1209_v51 }
 0xc4b   :  { %2812 = vtanh.f32 %v1202_v55 }
 0xc4c   :  { %v1223_v12 = vor.u32 1.1754944e-38, %v1222_v58  ;;  %vm1221_vm5 = vcmp.eq.f32.partialorder %v1220_v35, 8.507059e+37  ;;  %2814 = vpow2.f32 %v2639_v24  ;;  %v1287_v58 = vld [vmem:[#allocation7 + $0x8] sm:$0xff] }
 0xc4d   :  { %1382 = vmatpush.msra.mxu1 %v1287_v58  ;;  %v1271_v35 = vld [vmem:[#allocation5 + $0x8] sm:$0xff] }
 0xc4e   :  { %1464 = vmatpush.msra.mxu3 %v1271_v35 }
 0xc50   :  { %v2811_v53 = vpop.eup %2810 }
 0xc51   :  { %v1212_v25 = vmul.f32 %v2811_v53, %v1209_v51  ;;  %vm1217_vm2 = vweird.f32 %v2811_v53  ;;  %v2813_v46 = vpop.eup %2812 }
 0xc52   :  { %vm1218_vm4 = vmor %vm1216_vm3, %vm1217_vm2  ;;  %v2815_v0 = vpop.eup %2814 }
 0xc53   :  { %v1213_v57 = vsub.f32 1.0, %v1212_v25  ;;  %v3677_v52 = vadd.f32 1.0, %v2815_v0 }
 0xc55   :  { %v1214_v23 = vmul.f32 %v2811_v53, %v1213_v57  ;;  %2816 = vrcp.f32 %v3677_v52  ;;  %v1237_v47 = vand.u32 2147483648, %v3677_v52  ;;  %vm1231_vm7 = vweird.f32 %v3677_v52 }
 0xc56   :  { %v1235_v51 = vand.u32 2147483647, %v3677_v52 }
 0xc57   :  { %v1215_v38 = vadd.f32 %v2811_v53, %v1214_v23  ;;  %v1270_v23 = vld [vmem:[#allocation5] sm:$0xff] }
 0xc58   :  { %vm1236_vm9 = vcmp.eq.f32.partialorder %v1235_v51, 8.507059e+37  ;;  %1423 = vmatpush.msra.mxu2 %v1270_v23 }
 0xc59   :  { %v1219_v42 = vsel %vm1218_vm4, %v2811_v53, %v1215_v38  ;;  %v1238_v53 = vor.u32 1.1754944e-38, %v1237_v47  ;;  %v3687_v38 = vld [vmem:[#allocation8 + $0x70] sm:$0xff] }
 0xc5a   :  { %v3673_v27 = vsel %vm1221_vm5, %v1223_v12, %v1219_v42  ;;  %1659 = vmatpush.msrb.mxu2 %v3687_v38  ;;  %v3691_v12 = vld [vmem:[#allocation8 + $0x60] sm:$0xff]  ;;  %v3695_v42 = vld [vmem:[#allocation8 + $0x50] sm:$0xff] }
 0xc5b   :  { %v1243_v50 = vmul.f32 %v2813_v46, %v3673_v27  ;;  %v2817_v37 = vpop.eup %2816  ;;  %v1242_v3 = vmul.f32 %v3673_v27, %v3661_v6  ;;  %v1286_v6 = vld [vmem:[#allocation7] sm:$0xff]  ;;  %v3697_v46 = vld [vmem:[#allocation8 + $0x78] sm:$0xff] }
 0xc5c   :  { %v1227_v8 = vmul.f32 %v2817_v37, %v3677_v52  ;;  %vm1232_vm6 = vweird.f32 %v2817_v37  ;;  %1341 = vmatpush.msrb.mxu0 %v1286_v6  ;;  %1660 = vmatpush.msrb.mxu2 %v3691_v12  ;;  %v3703_v27 = vld [vmem:[#allocation8 + $0x40] sm:$0xff] }
 0xc5d   :  { %1245 = vrot.lane.b32.xlu2 %v1243_v50, %s3095_s6  ;;  %vm1233_vm8 = vmor %vm1231_vm7, %vm1232_vm6  ;;  %1574 = vmatpush.msrb.mxu1 %v3697_v46  ;;  %v3705_v50 = vld [vmem:[#allocation8 + $0x68] sm:$0xff] }
 0xc5e   :  { %v1228_v14 = vsub.f32 1.0, %v1227_v8  ;;  %1554 = vmatpush.msra.mxu0 %v3687_v38  ;;  %1661 = vmatpush.msrb.mxu2 %v3695_v42 }
 0xc5f   :  { %1679 = vmatpush.msrb.mxu3 %v3697_v46  ;;  %1575 = vmatpush.msrb.mxu1 %v3705_v50 }
 0xc60   :  { %v1229_v62 = vmul.f32 %v2817_v37, %v1228_v14  ;;  %1555 = vmatpush.msra.mxu0 %v3691_v12  ;;  %1662 = vmatpush.msrb.mxu2 %v3703_v27 }
 0xc61   :  { %1680 = vmatpush.msrb.mxu3 %v3705_v50  ;;  %1576 = vmatpush.msrb.mxu1 %v3729_v28 }
 0xc62   :  { %v1230_v43 = vadd.f32 %v2817_v37, %v1229_v62  ;;  %1556 = vmatpush.msra.mxu0 %v3695_v42  ;;  %1663 = vmatpush.msrb.mxu2 %v3727_v5 }
 0xc63   :  { %1681 = vmatpush.msrb.mxu3 %v3729_v28  ;;  %1577 = vmatpush.msrb.mxu1 %v3751_v63 }
 0xc64   :  { %v1234_v21 = vsel %vm1233_vm8, %v2817_v37, %v1230_v43  ;;  %1557 = vmatpush.msra.mxu0 %v3703_v27  ;;  %1664 = vmatpush.msrb.mxu2 %v3749_v60 }
 0xc65   :  { %v1239_v25 = vsel %vm1236_vm9, %v1238_v53, %v1234_v21  ;;  %1682 = vmatpush.msrb.mxu3 %v3751_v63  ;;  %1578 = vmatpush.msrb.mxu1 %v3769_v15 }
 0xc66   :  { %1558 = vmatpush.msra.mxu0 %v3727_v5  ;;  %1665 = vmatpush.msrb.mxu2 %v3767_v56 }
 0xc67   :  { %1683 = vmatpush.msrb.mxu3 %v3769_v15  ;;  %1579 = vmatpush.msrb.mxu1 %v3787_v1 }
 0xc68   :  { %1559 = vmatpush.msra.mxu0 %v3749_v60  ;;  %1666 = vmatpush.msrb.mxu2 %v3785_v30 }
 0xc69   :  { %1684 = vmatpush.msrb.mxu3 %v3787_v1  ;;  %1580 = vmatpush.msrb.mxu1 %v3789_v7 }
 0xc6a   :  { %1560 = vmatpush.msra.mxu0 %v3767_v56 }
 0xc6b   :  { %1685 = vmatpush.msrb.mxu3 %v3789_v7  ;;  %1581 = vmatpush.msrb.mxu1 %v3793_v13 }
 0xc6c   :  { %1561 = vmatpush.msra.mxu0 %v3785_v30 }
 0xc6d   :  { %1686 = vmatpush.msrb.mxu3 %v3793_v13 }
 0xcb7   :  { %v1246_v40 = vpop.permute.xlu2 %1245 }
 0xcb8   :  { %v1248_v20 = vadd.f32 %v1246_v40, %v1242_v3 }
 0xcba   :  { %2818 = vtanh.f32 %v1248_v20 }
 0xcc0   :  { %v2819_v55 = vpop.eup %2818 }
 0xcc1   :  { %v1250_v57 = vmul.f32 %v2819_v55, %v1239_v25 }
 0xcc3   :  { %1253 = vrot.lane.b32.xlu0 %v1250_v57, %s3095_s6 }
 0xd35   :  { %v1254_v24 = vpop.permute.xlu0 %1253 }
 0xd36   :  { %v3713_v0 = vsel %vm233_vm1, %v3529_v36, %v1254_v24  ;;  %v3717_v52 = vsel %vm233_vm1, %v1254_v24, %v3529_v36  ;;  %v3738_v36 = vsel %vm233_vm1, %v3665_v39, %v3563_v26  ;;  %v1267_v26 = vsel %vm233_vm1, %v3652_v29, %v3597_v48 }
 0xd37   :  { %2640 = vmatmul.msk.f32.vlgmr.msrb.gmra.mxu0 %vm478_vm10, %v3717_v52  ;;  %2648 = vmatmul.msk.f32.vlgmr.msra.gmra.mxu1 %vm478_vm10, %v3717_v52  ;;  %v1262_v39 = vsel %vm233_vm1, %v3597_v48, %v3652_v29  ;;  %v1266_v48 = vsel %vm233_vm1, %v3642_v33, %v3624_v19  ;;  %v1265_v29 = vsel %vm233_vm1, %v3624_v19, %v3642_v33 }
 0xd38   :  { %2656 = vmatmul.msk.f32.vlgmr.msra.gmra.mxu2 %vm478_vm10, %v3713_v0  ;;  %2664 = vmatmul.msk.f32.vlgmr.msra.gmra.mxu3 %vm478_vm10, %v3713_v0 }
 0xd39   :  { %1805 = vmatpush.msra.mxu2 %v3687_v38  ;;  %1825 = vmatpush.msra.mxu3 %v3697_v46 }
 0xd3b   :  { %1806 = vmatpush.msra.mxu2 %v3691_v12  ;;  %1826 = vmatpush.msra.mxu3 %v3705_v50 }
 0xd3d   :  { %1807 = vmatpush.msra.mxu2 %v3695_v42  ;;  %1827 = vmatpush.msra.mxu3 %v3729_v28 }
 0xd3f   :  { %2641 = vmatmul.msk.f32.gmra.mxu0 %vm478_vm10, %v3738_v36  ;;  %2649 = vmatmul.msk.f32.gmra.mxu1 %vm478_vm10, %v3738_v36 }
 0xd40   :  { %2657 = vmatmul.msk.f32.gmra.mxu2 %vm478_vm10, %v1259_v54  ;;  %2665 = vmatmul.msk.f32.gmra.mxu3 %vm478_vm10, %v1259_v54 }
 0xd41   :  { %1808 = vmatpush.msra.mxu2 %v3703_v27  ;;  %1828 = vmatpush.msra.mxu3 %v3751_v63 }
 0xd43   :  { %1809 = vmatpush.msra.mxu2 %v3727_v5  ;;  %1829 = vmatpush.msra.mxu3 %v3769_v15 }
 0xd45   :  { %1810 = vmatpush.msra.mxu2 %v3749_v60  ;;  %1830 = vmatpush.msra.mxu3 %v3787_v1 }
 0xd47   :  { %2642 = vmatmul.msk.f32.gmra.mxu0 %vm478_vm10, %v1267_v26  ;;  %2650 = vmatmul.msk.f32.gmra.mxu1 %vm478_vm10, %v1267_v26 }
 0xd48   :  { %2658 = vmatmul.msk.f32.gmra.mxu2 %vm478_vm10, %v1262_v39  ;;  %2666 = vmatmul.msk.f32.gmra.mxu3 %vm478_vm10, %v1262_v39 }
 0xd49   :  { %1811 = vmatpush.msra.mxu2 %v3767_v56  ;;  %1831 = vmatpush.msra.mxu3 %v3789_v7 }
 0xd4b   :  { %1812 = vmatpush.msra.mxu2 %v3785_v30  ;;  %1832 = vmatpush.msra.mxu3 %v3793_v13 }
 0xd4f   :  { %2643 = vmatmul.msk.f32.gmra.mxu0 %vm478_vm10, %v1266_v48  ;;  %2651 = vmatmul.msk.f32.gmra.mxu1 %vm478_vm10, %v1266_v48 }
 0xd50   :  { %2659 = vmatmul.msk.f32.gmra.mxu2 %vm478_vm10, %v1265_v29  ;;  %2667 = vmatmul.msk.f32.gmra.mxu3 %vm478_vm10, %v1265_v29 }
 0xd57   :  { %2644 = vmatmul.msk.f32.gmra.mxu0 %vm478_vm10, %v1265_v29  ;;  %2652 = vmatmul.msk.f32.gmra.mxu1 %vm478_vm10, %v1265_v29 }
 0xd58   :  { %2660 = vmatmul.msk.f32.gmra.mxu2 %vm478_vm10, %v1266_v48  ;;  %2668 = vmatmul.msk.f32.gmra.mxu3 %vm478_vm10, %v1266_v48 }
 0xd5f   :  { %2645 = vmatmul.msk.f32.gmra.mxu0 %vm478_vm10, %v1262_v39  ;;  %2653 = vmatmul.msk.f32.gmra.mxu1 %vm478_vm10, %v1262_v39 }
 0xd60   :  { %2661 = vmatmul.msk.f32.gmra.mxu2 %vm478_vm10, %v1267_v26  ;;  %2669 = vmatmul.msk.f32.gmra.mxu3 %vm478_vm10, %v1267_v26 }
 0xd67   :  { %2646 = vmatmul.msk.f32.gmra.mxu0 %vm478_vm10, %v1259_v54  ;;  %2654 = vmatmul.msk.f32.gmra.mxu1 %vm478_vm10, %v1259_v54 }
 0xd68   :  { %2662 = vmatmul.msk.f32.gmra.mxu2 %vm478_vm10, %v3738_v36  ;;  %2670 = vmatmul.msk.f32.gmra.mxu3 %vm478_vm10, %v3738_v36 }
 0xd6f   :  { %2647 = vmatmul.msk.f32.gmra.mxu0 %vm478_vm10, %v3713_v0  ;;  %2655 = vmatmul.msk.f32.gmra.mxu1 %vm478_vm10, %v3713_v0 }
 0xd70   :  { %2663 = vmatmul.msk.f32.gmra.mxu2 %vm478_vm10, %v3717_v52  ;;  %2671 = vmatmul.msk.f32.gmra.mxu3 %vm478_vm10, %v3717_v52 }
 0xd77   :  { %1562 = vmatmul.f32.vlgmr.msra.gmra.mxu0 %v3094_v59  ;;  %1582 = vmatmul.f32.vlgmr.msrb.gmra.mxu1 %v3094_v59  ;;  %v1493_v59 = vperm.slane %v1490_v4, 1 }
 0xdb4   :  { %v1343_v19 = vpop.f32.mrf.mxu0  ;;  %v3841_v33 = vpop.f32.mrf.mxu1 }
 0xdbb   :  { %v1425_v41 = vpop.f32.mrf.mxu2  ;;  %v3843_v32 = vpop.f32.mrf.mxu3 }
 0xdbc   :  { %v1346_v22 = vpop.f32.mrf.mxu0  ;;  %v1387_v34 = vpop.f32.mrf.mxu1 }
 0xdc3   :  { %v1428_v9 = vpop.f32.mrf.mxu2  ;;  %v1469_v10 = vpop.f32.mrf.mxu3 }
 0xdc4   :  { %v1429_v37 = vadd.f32 %v1428_v9, %v1346_v22  ;;  %v1470_v18 = vadd.f32 %v1469_v10, %v1387_v34  ;;  %v1349_v44 = vpop.f32.mrf.mxu0  ;;  %v1390_v45 = vpop.f32.mrf.mxu1 }
 0xdc6   :  { %v3848_v61 = vadd.f32 %v1492_v49, %v1429_v37  ;;  %v3850_v2 = vadd.f32 %v1493_v59, %v1470_v18 }
 0xdcb   :  { %v1431_v8 = vpop.f32.mrf.mxu2  ;;  %v1472_v11 = vpop.f32.mrf.mxu3 }
 0xdcc   :  { %v1432_v16 = vadd.f32 %v1431_v8, %v1349_v44  ;;  %v1473_v31 = vadd.f32 %v1472_v11, %v1390_v45  ;;  %v1352_v17 = vpop.f32.mrf.mxu0  ;;  %v1393_v14 = vpop.f32.mrf.mxu1  ;;  %v1426_v45 = vadd.f32 %v1425_v41, %v1343_v19 }
 0xdce   :  { %v3852_v62 = vadd.f32 %v1492_v49, %v1432_v16  ;;  %v3854_v3 = vadd.f32 %v1493_v59, %v1473_v31  ;;  %v1496_v31 = vadd.f32 %v1492_v49, %v1426_v45  ;;  %v1640_v45 = vld [vmem:[#allocation10 + $0x20] sm:$0xff] }
 0xdd3   :  { %v1434_v40 = vpop.f32.mrf.mxu2  ;;  %v1475_v20 = vpop.f32.mrf.mxu3 }
 0xdd4   :  { %v1435_v43 = vadd.f32 %v1434_v40, %v1352_v17  ;;  %v1476_v47 = vadd.f32 %v1475_v20, %v1393_v14  ;;  %v1355_v51 = vpop.f32.mrf.mxu0  ;;  %v1396_v21 = vpop.f32.mrf.mxu1 }
 0xdd6   :  { %v3856_v53 = vadd.f32 %v1492_v49, %v1435_v43  ;;  %v3858_v55 = vadd.f32 %v1493_v59, %v1476_v47 }
 0xddb   :  { %v1437_v25 = vpop.f32.mrf.mxu2  ;;  %v1478_v57 = vpop.f32.mrf.mxu3 }
 0xddc   :  { %v1438_v6 = vadd.f32 %v1437_v25, %v1355_v51  ;;  %v1479_v58 = vadd.f32 %v1478_v57, %v1396_v21  ;;  %v1358_v23 = vpop.f32.mrf.mxu0  ;;  %v1399_v35 = vpop.f32.mrf.mxu1  ;;  %v1467_v57 = vadd.f32 %v3843_v32, %v3841_v33 }
 0xdde   :  { %v3860_v24 = vadd.f32 %v1492_v49, %v1438_v6  ;;  %v3862_v0 = vadd.f32 %v1493_v59, %v1479_v58  ;;  %v1497_v41 = vadd.f32 %v1493_v59, %v1467_v57 }
 0xde3   :  { %v1440_v52 = vpop.f32.mrf.mxu2  ;;  %v1481_v36 = vpop.f32.mrf.mxu3 }
 0xde4   :  { %v1441_v54 = vadd.f32 %v1440_v52, %v1358_v23  ;;  %v1482_v26 = vadd.f32 %v1481_v36, %v1399_v35  ;;  %v1361_v39 = vpop.f32.mrf.mxu0  ;;  %v1402_v22 = vpop.f32.mrf.mxu1 }
 0xde6   :  { %v3864_v48 = vadd.f32 %v1493_v59, %v1482_v26  ;;  %v3866_v29 = vadd.f32 %v1492_v49, %v1441_v54 }
 0xdeb   :  { %v1443_v34 = vpop.f32.mrf.mxu2  ;;  %v1484_v4 = vpop.f32.mrf.mxu3 }
 0xdec   :  { %v1444_v9 = vadd.f32 %v1443_v34, %v1361_v39  ;;  %v1485_v10 = vadd.f32 %v1484_v4, %v1402_v22  ;;  %v1364_v37 = vpop.f32.mrf.mxu0  ;;  %v1405_v8 = vpop.f32.mrf.mxu1 }
 0xdee   :  { %v3868_v18 = vadd.f32 %v1492_v49, %v1444_v9  ;;  %v3870_v44 = vadd.f32 %v1493_v59, %v1485_v10  ;;  %v1643_v9 = vld [vmem:[#allocation10 + $0x38] sm:$0xff]  ;;  %v1642_v10 = vld [vmem:[#allocation10 + $0x30] sm:$0xff] }
 0xdef   :  { %1783 = vmatpush.msra.mxu1 %v1643_v9 }
 0xdf1   :  { %1784 = vmatpush.msra.mxu1 %v1642_v10 }
 0xdf3   :  { %v1446_v11 = vpop.f32.mrf.mxu2  ;;  %v1487_v16 = vpop.f32.mrf.mxu3 }
 0xdf4   :  { %v1447_v17 = vadd.f32 %v1446_v11, %v1364_v37  ;;  %v1488_v14 = vadd.f32 %v1487_v16, %v1405_v8  ;;  %v1563_v40 = vpop.f32.mrf.mxu0  ;;  %v1583_v19 = vpop.f32.mrf.mxu1  ;;  %v1641_v37 = vld [vmem:[#allocation10 + $0x28] sm:$0xff]  ;;  %v1639_v8 = vld [vmem:[#allocation10 + $0x18] sm:$0xff]  ;;  %v1638_v16 = vld [vmem:[#allocation10 + $0x10] sm:$0xff] }
 0xdf5   :  { %v1586_v20 = vadd.f32 %v1563_v40, %v1496_v31  ;;  %v1587_v58 = vadd.f32 %v1583_v19, %v1497_v41  ;;  %1785 = vmatpush.msra.mxu1 %v1641_v37 }
 0xdf6   :  { %v3872_v43 = vadd.f32 %v1492_v49, %v1447_v17  ;;  %v3874_v47 = vadd.f32 %v1493_v59, %v1488_v14  ;;  %v1637_v17 = vld [vmem:[#allocation10 + $0x8] sm:$0xff]  ;;  %v1636_v14 = vld [vmem:[#allocation10] sm:$0xff] }
 0xdf7   :  { %v2672_v51 = vmul.f32 -1.442695, %v1586_v20  ;;  %v2673_v59 = vmul.f32 -1.442695, %v1587_v58  ;;  %1786 = vmatpush.msra.mxu1 %v1640_v45 }
 0xdf9   :  { %2820 = vpow2.f32 %v2672_v51  ;;  %1787 = vmatpush.msra.mxu1 %v1639_v8 }
 0xdfb   :  { %1788 = vmatpush.msra.mxu1 %v1638_v16 }
 0xdfd   :  { %1789 = vmatpush.msra.mxu1 %v1637_v17 }
 0xdff   :  { %v2821_v21 = vpop.eup %2820  ;;  %1790 = vmatpush.msra.mxu1 %v1636_v14 }
 0xe00   :  { %v1594_v25 = vadd.f32 1.0, %v2821_v21 }
 0xe01   :  { %1932 = vmatpush.msrb.mxu1 %v3687_v38 }
 0xe02   :  { %2822 = vrcp.f32 %v1594_v25  ;;  %v1607_v52 = vand.u32 2147483648, %v1594_v25  ;;  %v1605_v36 = vand.u32 2147483647, %v1594_v25  ;;  %vm1601_vm11 = vweird.f32 %v1594_v25 }
 0xe03   :  { %2824 = vtanh.f32 %v1587_v58  ;;  %1933 = vmatpush.msrb.mxu1 %v3691_v12 }
 0xe04   :  { %v1608_v26 = vor.u32 1.1754944e-38, %v1607_v52  ;;  %vm1606_vm13 = vcmp.eq.f32.partialorder %v1605_v36, 8.507059e+37  ;;  %2826 = vpow2.f32 %v2673_v59 }
 0xe05   :  { %1934 = vmatpush.msrb.mxu1 %v3695_v42 }
 0xe07   :  { %1935 = vmatpush.msrb.mxu1 %v3703_v27 }
 0xe08   :  { %v2823_v6 = vpop.eup %2822 }
 0xe09   :  { %v1597_v23 = vmul.f32 %v2823_v6, %v1594_v25  ;;  %vm1602_vm1 = vweird.f32 %v2823_v6  ;;  %v2825_v22 = vpop.eup %2824  ;;  %1936 = vmatpush.msrb.mxu1 %v3727_v5 }
 0xe0a   :  { %vm1603_vm12 = vmor %vm1601_vm11, %vm1602_vm1  ;;  %v2827_v34 = vpop.eup %2826 }
 0xe0b   :  { %v1598_v35 = vsub.f32 1.0, %v1597_v23  ;;  %v1595_v4 = vadd.f32 1.0, %v2827_v34  ;;  %1937 = vmatpush.msrb.mxu1 %v3749_v60 }
 0xe0d   :  { %v1599_v49 = vmul.f32 %v2823_v6, %v1598_v35  ;;  %2828 = vrcp.f32 %v1595_v4  ;;  %v1622_v19 = vand.u32 2147483648, %v1595_v4  ;;  %vm1616_vm15 = vweird.f32 %v1595_v4  ;;  %1938 = vmatpush.msrb.mxu1 %v3767_v56 }
 0xe0e   :  { %v1620_v41 = vand.u32 2147483647, %v1595_v4 }
 0xe0f   :  { %v1600_v54 = vadd.f32 %v2823_v6, %v1599_v49  ;;  %v1623_v58 = vor.u32 1.1754944e-38, %v1622_v19  ;;  %1939 = vmatpush.msrb.mxu1 %v3785_v30 }
 0xe10   :  { %vm1621_vm2 = vcmp.eq.f32.partialorder %v1620_v41, 8.507059e+37  ;;  %v1744_v41 = vld [vmem:[#allocation10 + $0x50] sm:$0xff] }
 0xe11   :  { %v1604_v39 = vsel %vm1603_vm12, %v2823_v6, %v1600_v54 }
 0xe12   :  { %v1609_v33 = vsel %vm1606_vm13, %v1608_v26, %v1604_v39 }
 0xe13   :  { %v1628_v32 = vmul.f32 %v2825_v22, %v1609_v33  ;;  %v2829_v11 = vpop.eup %2828  ;;  %v1627_v51 = vmul.f32 0.0, %v1609_v33 }
 0xe14   :  { %v1612_v31 = vmul.f32 %v2829_v11, %v1595_v4  ;;  %vm1617_vm14 = vweird.f32 %v2829_v11 }
 0xe15   :  { %1630 = vrot.lane.b32.xlu1 %v1628_v32, %s3095_s6  ;;  %vm1618_vm0 = vmor %vm1616_vm15, %vm1617_vm14 }
 0xe16   :  { %v1613_v40 = vsub.f32 1.0, %v1612_v31 }
 0xe18   :  { %v1614_v20 = vmul.f32 %v2829_v11, %v1613_v40  ;;  %v1749_v40 = vld [vmem:[#allocation10 + $0x78] sm:$0xff] }
 0xe19   :  { %1763 = vmatpush.msrb.mxu0 %v1749_v40 }
 0xe1a   :  { %v1615_v57 = vadd.f32 %v2829_v11, %v1614_v20  ;;  %v1748_v20 = vld [vmem:[#allocation10 + $0x70] sm:$0xff] }
 0xe1b   :  { %1764 = vmatpush.msrb.mxu0 %v1748_v20 }
 0xe1c   :  { %v1619_v6 = vsel %vm1618_vm0, %v2829_v11, %v1615_v57  ;;  %v1745_v57 = vld [vmem:[#allocation10 + $0x58] sm:$0xff] }
 0xe1d   :  { %v1624_v35 = vsel %vm1621_vm2, %v1623_v58, %v1619_v6  ;;  %v1743_v58 = vld [vmem:[#allocation10 + $0x48] sm:$0xff] }
 0xe87   :  { %v1631_v21 = vpop.permute.xlu1 %1630 }
 0xe88   :  { %v3882_v25 = vadd.f32 %v1631_v21, %v1627_v51  ;;  %v1747_v51 = vld [vmem:[#allocation10 + $0x68] sm:$0xff]  ;;  %v1746_v21 = vld [vmem:[#allocation10 + $0x60] sm:$0xff] }
 0xe89   :  { %1765 = vmatpush.msrb.mxu0 %v1747_v51 }
 0xe8a   :  { %2830 = vtanh.f32 %v3882_v25 }
 0xe8b   :  { %1766 = vmatpush.msrb.mxu0 %v1746_v21 }
 0xe8d   :  { %1767 = vmatpush.msrb.mxu0 %v1745_v57 }
 0xe8f   :  { %1768 = vmatpush.msrb.mxu0 %v1744_v41 }
 0xe90   :  { %v2831_v23 = vpop.eup %2830 }
 0xe91   :  { %v1635_v52 = vmul.f32 %v2831_v23, %v1624_v35  ;;  %v1742_v23 = vld [vmem:[#allocation10 + $0x40] sm:$0xff]  ;;  %1769 = vmatpush.msrb.mxu0 %v1743_v58  ;;  %v1895_v58 = vld [vmem:[#allocation10 + $0xb8] sm:$0xff] }
 0xe93   :  { %1647 = vrot.lane.b32.xlu2 %v1635_v52, %s3095_s6  ;;  %1770 = vmatpush.msrb.mxu0 %v1742_v23  ;;  %v1894_v23 = vld [vmem:[#allocation10 + $0xb0] sm:$0xff] }
 0xe95   :  { %1909 = vmatpush.msra.mxu0 %v1895_v58 }
 0xe97   :  { %1910 = vmatpush.msra.mxu0 %v1894_v23 }
 0xeed   :  { %v1648_v49 = vpop.permute.xlu2 %1647 }
 0xeee   :  { %2674 = vmatmul.msk.f32.vlgmr.msrb.gmra.mxu2 %vm478_vm10, %v1648_v49  ;;  %2675 = vmatmul.msk.f32.vlgmr.msrb.gmra.mxu3 %vm478_vm10, %v1648_v49 }
 0xeef   :  { %2679 = vmatmul.msk.f32.vlgmr.msra.gmra.mxu1 %vm478_vm10, %v1648_v49  ;;  %1952 = vmatpush.msrb.mxu2 %v3697_v46 }
 0xef0   :  { %2079 = vmatpush.msra.mxu1 %v3697_v46 }
 0xef1   :  { %1953 = vmatpush.msrb.mxu2 %v3705_v50 }
 0xef2   :  { %2080 = vmatpush.msra.mxu1 %v3705_v50 }
 0xef3   :  { %1954 = vmatpush.msrb.mxu2 %v3729_v28 }
 0xef4   :  { %2081 = vmatpush.msra.mxu1 %v3729_v28 }
 0xef5   :  { %1955 = vmatpush.msrb.mxu2 %v3751_v63 }
 0xef6   :  { %2082 = vmatpush.msra.mxu1 %v3751_v63 }
 0xef7   :  { %1956 = vmatpush.msrb.mxu2 %v3769_v15 }
 0xef8   :  { %2083 = vmatpush.msra.mxu1 %v3769_v15 }
 0xef9   :  { %1957 = vmatpush.msrb.mxu2 %v3787_v1 }
 0xefa   :  { %2084 = vmatpush.msra.mxu1 %v3787_v1 }
 0xefb   :  { %1958 = vmatpush.msrb.mxu2 %v3789_v7 }
 0xefc   :  { %2085 = vmatpush.msra.mxu1 %v3789_v7 }
 0xefd   :  { %1959 = vmatpush.msrb.mxu2 %v3793_v13 }
 0xefe   :  { %2086 = vmatpush.msra.mxu1 %v3793_v13 }
 0xf71   :  { %v1668_v36 = vpop.f32.mrf.mxu2  ;;  %v1688_v33 = vpop.f32.mrf.mxu3 }
 0xf72   :  { %v1691_v54 = vadd.f32 %v1668_v36, %v3848_v61  ;;  %v1692_v59 = vadd.f32 %v1688_v33, %v3850_v2 }
 0xf74   :  { %v2676_v26 = vmul.f32 -1.442695, %v1691_v54  ;;  %v2677_v17 = vmul.f32 -1.442695, %v1692_v59 }
 0xf76   :  { %2832 = vpow2.f32 %v2676_v26 }
 0xf7c   :  { %v2833_v39 = vpop.eup %2832 }
 0xf7d   :  { %v1699_v22 = vadd.f32 1.0, %v2833_v39 }
 0xf7f   :  { %2834 = vrcp.f32 %v1699_v22  ;;  %v1712_v9 = vand.u32 2147483648, %v1699_v22  ;;  %v1710_v37 = vand.u32 2147483647, %v1699_v22  ;;  %vm1706_vm4 = vweird.f32 %v1699_v22 }
 0xf80   :  { %2836 = vtanh.f32 %v1692_v59 }
 0xf81   :  { %v1713_v61 = vor.u32 1.1754944e-38, %v1712_v9  ;;  %vm1711_vm6 = vcmp.eq.f32.partialorder %v1710_v37, 8.507059e+37  ;;  %2838 = vpow2.f32 %v2677_v17 }
 0xf85   :  { %v2835_v32 = vpop.eup %2834 }
 0xf86   :  { %v1702_v34 = vmul.f32 %v2835_v32, %v1699_v22  ;;  %vm1707_vm3 = vweird.f32 %v2835_v32  ;;  %v2837_v11 = vpop.eup %2836 }
 0xf87   :  { %vm1708_vm5 = vmor %vm1706_vm4, %vm1707_vm3  ;;  %v2839_v2 = vpop.eup %2838 }
 0xf88   :  { %v1703_v4 = vsub.f32 1.0, %v1702_v34  ;;  %v1700_v14 = vadd.f32 1.0, %v2839_v2 }
 0xf8a   :  { %v1704_v10 = vmul.f32 %v2835_v32, %v1703_v4  ;;  %2840 = vrcp.f32 %v1700_v14  ;;  %v1727_v39 = vand.u32 2147483648, %v1700_v14  ;;  %vm1721_vm8 = vweird.f32 %v1700_v14 }
 0xf8b   :  { %v1725_v22 = vand.u32 2147483647, %v1700_v14 }
 0xf8c   :  { %v1705_v45 = vadd.f32 %v2835_v32, %v1704_v10 }
 0xf8d   :  { %vm1726_vm1 = vcmp.eq.f32.partialorder %v1725_v22, 8.507059e+37  ;;  %v1889_v22 = vld [vmem:[#allocation10 + $0x88] sm:$0xff] }
 0xf8e   :  { %v1709_v8 = vsel %vm1708_vm5, %v2835_v32, %v1705_v45  ;;  %v1728_v32 = vor.u32 1.1754944e-38, %v1727_v39 }
 0xf8f   :  { %v1714_v16 = vsel %vm1711_vm6, %v1713_v61, %v1709_v8 }
 0xf90   :  { %v1733_v31 = vmul.f32 %v2837_v11, %v1714_v16  ;;  %v2841_v19 = vpop.eup %2840  ;;  %v1732_v49 = vmul.f32 %v1714_v16, %v3882_v25 }
 0xf91   :  { %v1717_v6 = vmul.f32 %v2841_v19, %v1700_v14  ;;  %vm1722_vm7 = vweird.f32 %v2841_v19 }
 0xf92   :  { %1735 = vrot.lane.b32.xlu0 %v1733_v31, %s3095_s6  ;;  %vm1723_vm9 = vmor %vm1721_vm8, %vm1722_vm7 }
 0xf93   :  { %v1718_v35 = vsub.f32 1.0, %v1717_v6 }
 0xf95   :  { %v1719_v52 = vmul.f32 %v2841_v19, %v1718_v35  ;;  %v1893_v35 = vld [vmem:[#allocation10 + $0xa8] sm:$0xff] }
 0xf96   :  { %1911 = vmatpush.msra.mxu0 %v1893_v35 }
 0xf97   :  { %v1720_v26 = vadd.f32 %v2841_v19, %v1719_v52  ;;  %v1892_v52 = vld [vmem:[#allocation10 + $0xa0] sm:$0xff] }
 0xf98   :  { %1912 = vmatpush.msra.mxu0 %v1892_v52 }
 0xf99   :  { %v1724_v33 = vsel %vm1723_vm9, %v2841_v19, %v1720_v26  ;;  %v1890_v26 = vld [vmem:[#allocation10 + $0x90] sm:$0xff] }
 0xf9a   :  { %v1729_v34 = vsel %vm1726_vm1, %v1728_v32, %v1724_v33  ;;  %v1888_v33 = vld [vmem:[#allocation10 + $0x80] sm:$0xff] }
0x1004   :  { %v1736_v36 = vpop.permute.xlu0 %1735 }
0x1005   :  { %v3914_v54 = vadd.f32 %v1736_v36, %v1732_v49  ;;  %v1891_v49 = vld [vmem:[#allocation10 + $0x98] sm:$0xff] }
0x1006   :  { %1913 = vmatpush.msra.mxu0 %v1891_v49 }
0x1007   :  { %2842 = vtanh.f32 %v3914_v54 }
0x1008   :  { %1914 = vmatpush.msra.mxu0 %v1890_v26 }
0x100a   :  { %1915 = vmatpush.msra.mxu0 %v1889_v22  ;;  %v2021_v22 = vld [vmem:[#allocation10 + $0xf0] sm:$0xff] }
0x100c   :  { %1916 = vmatpush.msra.mxu0 %v1888_v33  ;;  %v2020_v33 = vld [vmem:[#allocation10 + $0xe8] sm:$0xff] }
0x100d   :  { %v2843_v59 = vpop.eup %2842 }
0x100e   :  { %v1740_v4 = vmul.f32 %v2843_v59, %v1729_v34 }
0x1010   :  { %1751 = vrot.lane.b32.xlu1 %v1740_v4, %s3095_s6 }
0x1082   :  { %v1752_v25 = vpop.permute.xlu1 %1751 }
0x1083   :  { %2678 = vmatmul.msk.f32.vlgmr.msrb.gmra.mxu0 %vm478_vm10, %v1752_v25  ;;  %2680 = vmatmul.msk.f32.vlgmr.msra.gmra.mxu2 %vm478_vm10, %v1752_v25 }
0x1084   :  { %2681 = vmatmul.msk.f32.vlgmr.msra.gmra.mxu3 %vm478_vm10, %v1752_v25  ;;  %2059 = vmatpush.msrb.mxu0 %v3687_v38 }
0x1086   :  { %2060 = vmatpush.msrb.mxu0 %v3691_v12 }
0x1088   :  { %2061 = vmatpush.msrb.mxu0 %v3695_v42 }
0x108a   :  { %2062 = vmatpush.msrb.mxu0 %v3703_v27 }
0x108c   :  { %2063 = vmatpush.msrb.mxu0 %v3727_v5 }
0x108e   :  { %2064 = vmatpush.msrb.mxu0 %v3749_v60 }
0x1090   :  { %2065 = vmatpush.msrb.mxu0 %v3767_v56 }
0x1092   :  { %2066 = vmatpush.msrb.mxu0 %v3785_v30 }
0x1106   :  { %v1814_v9 = vpop.f32.mrf.mxu2 }
0x1107   :  { %v1837_v10 = vadd.f32 %v1814_v9, %v3852_v62  ;;  %v1834_v8 = vpop.f32.mrf.mxu3 }
0x1108   :  { %v1838_v16 = vadd.f32 %v1834_v8, %v3854_v3 }
0x1109   :  { %v2682_v37 = vmul.f32 -1.442695, %v1837_v10 }
0x110a   :  { %v2683_v41 = vmul.f32 -1.442695, %v1838_v16 }
0x110b   :  { %2844 = vpow2.f32 %v2682_v37 }
0x1111   :  { %v2845_v45 = vpop.eup %2844 }
0x1112   :  { %v1845_v61 = vadd.f32 1.0, %v2845_v45 }
0x1114   :  { %2846 = vrcp.f32 %v1845_v61  ;;  %v1858_v2 = vand.u32 2147483648, %v1845_v61  ;;  %v1856_v40 = vand.u32 2147483647, %v1845_v61  ;;  %vm1852_vm12 = vweird.f32 %v1845_v61 }
0x1115   :  { %2848 = vtanh.f32 %v1838_v16 }
0x1116   :  { %v1859_v62 = vor.u32 1.1754944e-38, %v1858_v2  ;;  %vm1857_vm14 = vcmp.eq.f32.partialorder %v1856_v40, 8.507059e+37  ;;  %2850 = vpow2.f32 %v2683_v41 }
0x111a   :  { %v2847_v11 = vpop.eup %2846 }
0x111b   :  { %v1848_v31 = vmul.f32 %v2847_v11, %v1845_v61  ;;  %vm1853_vm11 = vweird.f32 %v2847_v11  ;;  %v2849_v21 = vpop.eup %2848 }
0x111c   :  { %vm1854_vm13 = vmor %vm1852_vm12, %vm1853_vm11  ;;  %v2851_v3 = vpop.eup %2850 }
0x111d   :  { %v1849_v17 = vsub.f32 1.0, %v1848_v31  ;;  %v1846_v6 = vadd.f32 1.0, %v2851_v3  ;;  %v3948_v31 = vpop.f32.mrf.mxu1 }
0x111f   :  { %v1850_v14 = vmul.f32 %v2847_v11, %v1849_v17  ;;  %2852 = vrcp.f32 %v1846_v6  ;;  %v1873_v10 = vand.u32 2147483648, %v1846_v6  ;;  %vm1867_vm0 = vweird.f32 %v1846_v6 }
0x1120   :  { %v1871_v37 = vand.u32 2147483647, %v1846_v6 }
0x1121   :  { %v1851_v20 = vadd.f32 %v2847_v11, %v1850_v14 }
0x1122   :  { %vm1872_vm3 = vcmp.eq.f32.partialorder %v1871_v37, 8.507059e+37  ;;  %v2015_v37 = vld [vmem:[#allocation10 + $0xc0] sm:$0xff] }
0x1123   :  { %v1855_v51 = vsel %vm1854_vm13, %v2847_v11, %v1851_v20 }
0x1124   :  { %v1860_v57 = vsel %vm1857_vm14, %v1859_v62, %v1855_v51 }
0x1125   :  { %v1879_v19 = vmul.f32 %v2849_v21, %v1860_v57  ;;  %v2853_v36 = vpop.eup %2852  ;;  %v1878_v34 = vmul.f32 %v1860_v57, %v3914_v54  ;;  %v1874_v54 = vor.u32 1.1754944e-38, %v1873_v10  ;;  %v2016_v10 = vld [vmem:[#allocation10 + $0xc8] sm:$0xff] }
0x1126   :  { %v1863_v39 = vmul.f32 %v2853_v36, %v1846_v6  ;;  %vm1868_vm15 = vweird.f32 %v2853_v36 }
0x1127   :  { %1881 = vrot.lane.b32.xlu2 %v1879_v19, %s3095_s6  ;;  %vm1869_vm2 = vmor %vm1867_vm0, %vm1868_vm15 }
0x1128   :  { %v1864_v32 = vsub.f32 1.0, %v1863_v39  ;;  %v2022_v39 = vld [vmem:[#allocation10 + $0xf8] sm:$0xff] }
0x1129   :  { %2036 = vmatpush.msrb.mxu3 %v2022_v39  ;;  %v2142_v39 = vld [vmem:[#allocation10 + $0x100] sm:$0xff] }
0x112a   :  { %v1865_v59 = vmul.f32 %v2853_v36, %v1864_v32  ;;  %v2019_v32 = vld [vmem:[#allocation10 + $0xe0] sm:$0xff] }
0x112b   :  { %2037 = vmatpush.msrb.mxu3 %v2021_v22 }
0x112c   :  { %v1866_v9 = vadd.f32 %v2853_v36, %v1865_v59  ;;  %v2018_v59 = vld [vmem:[#allocation10 + $0xd8] sm:$0xff] }
0x112d   :  { %2038 = vmatpush.msrb.mxu3 %v2020_v33  ;;  %v3984_v33 = vld [vmem:[#allocation8 + $0x70] sm:$0xff] }
0x112e   :  { %v1870_v45 = vsel %vm1869_vm2, %v2853_v36, %v1866_v9 }
0x112f   :  { %v1875_v8 = vsel %vm1872_vm3, %v1874_v54, %v1870_v45  ;;  %2039 = vmatpush.msrb.mxu3 %v2019_v32 }
0x1131   :  { %2040 = vmatpush.msrb.mxu3 %v2018_v59  ;;  %v3987_v59 = vld [vmem:[#allocation8 + $0x60] sm:$0xff] }
0x1181   :  { %v1882_v4 = vpop.permute.xlu2 %1881 }
0x1182   :  { %v3928_v25 = vadd.f32 %v1882_v4, %v1878_v34  ;;  %v2017_v4 = vld [vmem:[#allocation10 + $0xd0] sm:$0xff] }
0x1183   :  { %2041 = vmatpush.msrb.mxu3 %v2017_v4 }
0x1184   :  { %2854 = vtanh.f32 %v3928_v25 }
0x1185   :  { %2042 = vmatpush.msrb.mxu3 %v2016_v10 }
0x1187   :  { %2043 = vmatpush.msrb.mxu3 %v2015_v37 }
0x1189   :  { %2186 = vmatpush.msra.mxu3 %v3687_v38 }
0x118a   :  { %v2855_v61 = vpop.eup %2854 }
0x118b   :  { %v1886_v11 = vmul.f32 %v2855_v61, %v1875_v8  ;;  %2187 = vmatpush.msra.mxu3 %v3691_v12 }
0x118d   :  { %1897 = vrot.lane.b32.xlu0 %v1886_v11, %s3095_s6  ;;  %2188 = vmatpush.msra.mxu3 %v3695_v42 }
0x118f   :  { %2189 = vmatpush.msra.mxu3 %v3703_v27 }
0x1191   :  { %2190 = vmatpush.msra.mxu3 %v3727_v5  ;;  %v3977_v5 = vpop.f32.mrf.mxu0 }
0x1193   :  { %2191 = vmatpush.msra.mxu3 %v3749_v60 }
0x1195   :  { %2192 = vmatpush.msra.mxu3 %v3767_v56 }
0x1197   :  { %2193 = vmatpush.msra.mxu3 %v3785_v30 }
0x11ff   :  { %v1898_v16 = vpop.permute.xlu0 %1897 }
0x1200   :  { %2684 = vmatmul.msk.f32.vlgmr.msra.gmra.mxu0 %vm478_vm10, %v1898_v16  ;;  %2685 = vmatmul.msk.f32.vlgmr.msrb.gmra.mxu1 %vm478_vm10, %v1898_v16 }
0x1201   :  { %2686 = vmatmul.msk.f32.vlgmr.msrb.gmra.mxu2 %vm478_vm10, %v1898_v16  ;;  %2206 = vmatpush.msra.mxu0 %v3697_v46 }
0x1203   :  { %2207 = vmatpush.msra.mxu0 %v3705_v50 }
0x1205   :  { %2208 = vmatpush.msra.mxu0 %v3729_v28 }
0x1207   :  { %2209 = vmatpush.msra.mxu0 %v3751_v63 }
0x1209   :  { %2210 = vmatpush.msra.mxu0 %v3769_v15 }
0x120b   :  { %2211 = vmatpush.msra.mxu0 %v3787_v1 }
0x120d   :  { %2212 = vmatpush.msra.mxu0 %v3789_v7 }
0x120f   :  { %2213 = vmatpush.msra.mxu0 %v3793_v13 }
0x127d   :  { %v1941_v17 = vpop.f32.mrf.mxu1  ;;  %v3979_v60 = vpop.f32.mrf.mxu0 }
0x127e   :  { %v1964_v2 = vadd.f32 %v1941_v17, %v3856_v53 }
0x1280   :  { %v2687_v14 = vmul.f32 -1.442695, %v1964_v2 }
0x1282   :  { %2856 = vpow2.f32 %v2687_v14 }
0x1284   :  { %v1961_v62 = vpop.f32.mrf.mxu2 }
0x1285   :  { %v1965_v21 = vadd.f32 %v1961_v62, %v3858_v55 }
0x1287   :  { %v2688_v36 = vmul.f32 -1.442695, %v1965_v21 }
0x1288   :  { %v2857_v40 = vpop.eup %2856 }
0x1289   :  { %v1972_v20 = vadd.f32 1.0, %v2857_v40 }
0x128b   :  { %2858 = vrcp.f32 %v1972_v20  ;;  %v1985_v41 = vand.u32 2147483648, %v1972_v20  ;;  %v1983_v6 = vand.u32 2147483647, %v1972_v20  ;;  %vm1979_vm5 = vweird.f32 %v1972_v20 }
0x128c   :  { %2860 = vtanh.f32 %v1965_v21 }
0x128d   :  { %v1986_v53 = vor.u32 1.1754944e-38, %v1985_v41  ;;  %vm1984_vm7 = vcmp.eq.f32.partialorder %v1983_v6, 8.507059e+37  ;;  %2862 = vpow2.f32 %v2688_v36  ;;  %v2144_v36 = vld [vmem:[#allocation10 + $0x110] sm:$0xff] }
0x1291   :  { %v2859_v51 = vpop.eup %2858 }
0x1292   :  { %v1975_v57 = vmul.f32 %v2859_v51, %v1972_v20  ;;  %vm1980_vm4 = vweird.f32 %v2859_v51  ;;  %v2861_v35 = vpop.eup %2860 }
0x1293   :  { %vm1981_vm6 = vmor %vm1979_vm5, %vm1980_vm4  ;;  %v2863_v55 = vpop.eup %2862 }
0x1294   :  { %v1976_v19 = vsub.f32 1.0, %v1975_v57  ;;  %v1973_v26 = vadd.f32 1.0, %v2863_v55 }
0x1296   :  { %v1977_v3 = vmul.f32 %v2859_v51, %v1976_v19  ;;  %2864 = vrcp.f32 %v1973_v26  ;;  %v2000_v17 = vand.u32 2147483648, %v1973_v26  ;;  %vm1994_vm9 = vweird.f32 %v1973_v26 }
0x1297   :  { %v1998_v2 = vand.u32 2147483647, %v1973_v26 }
0x1298   :  { %v1978_v58 = vadd.f32 %v2859_v51, %v1977_v3  ;;  %v2001_v12 = vor.u32 1.1754944e-38, %v2000_v17 }
0x1299   :  { %vm1999_vm11 = vcmp.eq.f32.partialorder %v1998_v2, 8.507059e+37  ;;  %v4006_v2 = vld [vmem:[#allocation8 + $0x10] sm:$0xff] }
0x129a   :  { %v1982_v23 = vsel %vm1981_vm6, %v2859_v51, %v1978_v58  ;;  %v2149_v58 = vld [vmem:[#allocation10 + $0x138] sm:$0xff] }
0x129b   :  { %v1987_v52 = vsel %vm1984_vm7, %v1986_v53, %v1982_v23  ;;  %v2148_v53 = vld [vmem:[#allocation10 + $0x130] sm:$0xff]  ;;  %2163 = vmatpush.msra.mxu2 %v2149_v58  ;;  %v2147_v23 = vld [vmem:[#allocation10 + $0x128] sm:$0xff] }
0x129c   :  { %v2006_v49 = vmul.f32 %v2861_v35, %v1987_v52  ;;  %v2865_v34 = vpop.eup %2864  ;;  %v2005_v61 = vmul.f32 %v1987_v52, %v3928_v25  ;;  %v2146_v35 = vld [vmem:[#allocation10 + $0x120] sm:$0xff]  ;;  %v2145_v52 = vld [vmem:[#allocation10 + $0x118] sm:$0xff] }
0x129d   :  { %v1990_v9 = vmul.f32 %v2865_v34, %v1973_v26  ;;  %vm1995_vm8 = vweird.f32 %v2865_v34  ;;  %2164 = vmatpush.msra.mxu2 %v2148_v53  ;;  %v2143_v26 = vld [vmem:[#allocation10 + $0x108] sm:$0xff] }
0x129e   :  { %2008 = vrot.lane.b32.xlu1 %v2006_v49, %s3095_s6  ;;  %vm1996_vm1 = vmor %vm1994_vm9, %vm1995_vm8 }
0x129f   :  { %v1991_v45 = vsub.f32 1.0, %v1990_v9  ;;  %2165 = vmatpush.msra.mxu2 %v2147_v23  ;;  %v3991_v9 = vld [vmem:[#allocation8 + $0x50] sm:$0xff] }
0x12a1   :  { %v1992_v54 = vmul.f32 %v2865_v34, %v1991_v45  ;;  %2166 = vmatpush.msra.mxu2 %v2146_v35  ;;  %v3996_v45 = vld [vmem:[#allocation8 + $0x40] sm:$0xff] }
0x12a3   :  { %v1993_v16 = vadd.f32 %v2865_v34, %v1992_v54  ;;  %2167 = vmatpush.msra.mxu2 %v2145_v52 }
0x12a5   :  { %v1997_v38 = vsel %vm1996_vm1, %v2865_v34, %v1993_v16  ;;  %2168 = vmatpush.msra.mxu2 %v2144_v36  ;;  %v4003_v16 = vld [vmem:[#allocation8 + $0x20] sm:$0xff]  ;;  %v2276_v36 = vld [vmem:[#allocation10 + $0x178] sm:$0xff] }
0x12a6   :  { %v2002_v25 = vsel %vm1999_vm11, %v2001_v12, %v1997_v38  ;;  %2290 = vmatpush.msrb.mxu1 %v2276_v36 }
0x12a7   :  { %2169 = vmatpush.msra.mxu2 %v2143_v26  ;;  %v2274_v26 = vld [vmem:[#allocation10 + $0x168] sm:$0xff] }
0x12a9   :  { %2170 = vmatpush.msra.mxu2 %v2142_v39  ;;  %v2273_v39 = vld [vmem:[#allocation10 + $0x160] sm:$0xff] }
0x12ab   :  { %2313 = vmatpush.msrb.mxu2 %v3984_v33 }
0x12ad   :  { %2314 = vmatpush.msrb.mxu2 %v3987_v59 }
0x12af   :  { %2315 = vmatpush.msrb.mxu2 %v3991_v9 }
0x12b1   :  { %2316 = vmatpush.msrb.mxu2 %v3996_v45 }
0x1310   :  { %v2009_v8 = vpop.permute.xlu1 %2008 }
0x1311   :  { %v3957_v11 = vadd.f32 %v2009_v8, %v2005_v61  ;;  %v4000_v8 = vld [vmem:[#allocation8 + $0x30] sm:$0xff] }
0x1312   :  { %2317 = vmatpush.msrb.mxu2 %v4000_v8 }
0x1313   :  { %2866 = vtanh.f32 %v3957_v11 }
0x1314   :  { %2318 = vmatpush.msrb.mxu2 %v4003_v16 }
0x1316   :  { %2319 = vmatpush.msrb.mxu2 %v4006_v2 }
0x1319   :  { %v2867_v42 = vpop.eup %2866 }
0x131a   :  { %v2013_v14 = vmul.f32 %v2867_v42, %v2002_v25  ;;  %v4009_v25 = vld [vmem:[#allocation8] sm:$0xff] }
0x131b   :  { %2320 = vmatpush.msrb.mxu2 %v4009_v25 }
0x131c   :  { %2024 = vrot.lane.b32.xlu2 %v2013_v14, %s3095_s6 }
0x1376   :  { %v2025_v27 = vpop.permute.xlu2 %2024 }
0x1377   :  { %2689 = vmatmul.msk.f32.vlgmr.msrb.gmra.mxu3 %vm478_vm10, %v2025_v27  ;;  %2690 = vmatmul.msk.f32.vlgmr.msrb.gmra.mxu0 %vm478_vm10, %v2025_v27 }
0x1378   :  { %2691 = vmatmul.msk.f32.vlgmr.msra.gmra.mxu1 %vm478_vm10, %v2025_v27  ;;  %2333 = vmatpush.msrb.mxu3 %v3697_v46  ;;  %v2924_v27 = vld [vmem:[#allocation8 + $0x78] sm:$0xff] }
0x137a   :  { %2334 = vmatpush.msrb.mxu3 %v3705_v50 }
0x137c   :  { %2335 = vmatpush.msrb.mxu3 %v3729_v28 }
0x137e   :  { %2336 = vmatpush.msrb.mxu3 %v3751_v63 }
0x1380   :  { %2337 = vmatpush.msrb.mxu3 %v3769_v15 }
0x1382   :  { %2338 = vmatpush.msrb.mxu3 %v3787_v1 }
0x1384   :  { %2339 = vmatpush.msrb.mxu3 %v3789_v7 }
0x1386   :  { %2340 = vmatpush.msrb.mxu3 %v3793_v13 }
0x13f4   :  { %v2068_v56 = vpop.f32.mrf.mxu0 }
0x13f5   :  { %v2091_v46 = vadd.f32 %v2068_v56, %v3860_v24  ;;  %v2088_v63 = vpop.f32.mrf.mxu1  ;;  %v2925_v56 = vld [vmem:[#allocation8 + $0x68] sm:$0xff] }
0x13f6   :  { %v2092_v1 = vadd.f32 %v2088_v63, %v3862_v0  ;;  %v2930_v63 = vld [vmem:[#allocation8 + $0x18] sm:$0xff] }
0x13f7   :  { %v2692_v50 = vmul.f32 -1.442695, %v2091_v46  ;;  %v2926_v46 = vld [vmem:[#allocation8 + $0x58] sm:$0xff] }
0x13f8   :  { %v2693_v3 = vmul.f32 -1.442695, %v2092_v1 }
0x13f9   :  { %2868 = vpow2.f32 %v2692_v50  ;;  %v2927_v50 = vld [vmem:[#allocation8 + $0x48] sm:$0xff] }
0x13ff   :  { %v2869_v28 = vpop.eup %2868 }
0x1400   :  { %v2099_v30 = vadd.f32 1.0, %v2869_v28  ;;  %v2928_v28 = vld [vmem:[#allocation8 + $0x38] sm:$0xff] }
0x1402   :  { %2870 = vrcp.f32 %v2099_v30  ;;  %v2112_v13 = vand.u32 2147483648, %v2099_v30  ;;  %v2110_v62 = vand.u32 2147483647, %v2099_v30  ;;  %vm2106_vm13 = vweird.f32 %v2099_v30 }
0x1403   :  { %2872 = vtanh.f32 %v2092_v1  ;;  %v4016_v1 = vpop.f32.mrf.mxu3 }
0x1404   :  { %v2113_v24 = vor.u32 1.1754944e-38, %v2112_v13  ;;  %vm2111_vm15 = vcmp.eq.f32.partialorder %v2110_v62, 8.507059e+37  ;;  %2874 = vpow2.f32 %v2693_v3 }
0x1408   :  { %v2871_v15 = vpop.eup %2870 }
0x1409   :  { %v2102_v40 = vmul.f32 %v2871_v15, %v2099_v30  ;;  %vm2107_vm12 = vweird.f32 %v2871_v15  ;;  %v2873_v57 = vpop.eup %2872  ;;  %v2929_v30 = vld [vmem:[#allocation8 + $0x28] sm:$0xff] }
0x140a   :  { %vm2108_vm14 = vmor %vm2106_vm13, %vm2107_vm12  ;;  %v2875_v0 = vpop.eup %2874 }
0x140b   :  { %v2103_v7 = vsub.f32 1.0, %v2102_v40  ;;  %v2100_v6 = vadd.f32 1.0, %v2875_v0 }
0x140d   :  { %v2104_v20 = vmul.f32 %v2871_v15, %v2103_v7  ;;  %2876 = vrcp.f32 %v2100_v6  ;;  %v2127_v54 = vand.u32 2147483648, %v2100_v6  ;;  %vm2121_vm2 = vweird.f32 %v2100_v6 }
0x140e   :  { %v2125_v61 = vand.u32 2147483647, %v2100_v6 }
0x140f   :  { %v2105_v51 = vadd.f32 %v2871_v15, %v2104_v20  ;;  %v2128_v17 = vor.u32 1.1754944e-38, %v2127_v54  ;;  %v2269_v54 = vld [vmem:[#allocation10 + $0x140] sm:$0xff] }
0x1410   :  { %vm2126_vm4 = vcmp.eq.f32.partialorder %v2125_v61, 8.507059e+37 }
0x1411   :  { %v2109_v21 = vsel %vm2108_vm14, %v2871_v15, %v2105_v51  ;;  %v2931_v15 = vld [vmem:[#allocation8 + $0x8] sm:$0xff] }
0x1412   :  { %v2114_v19 = vsel %vm2111_vm15, %v2113_v24, %v2109_v21 }
0x1413   :  { %v2133_v41 = vmul.f32 %v2873_v57, %v2114_v19  ;;  %v2877_v49 = vpop.eup %2876  ;;  %v2132_v34 = vmul.f32 %v2114_v19, %v3957_v11 }
0x1414   :  { %v2117_v55 = vmul.f32 %v2877_v49, %v2100_v6  ;;  %vm2122_vm0 = vweird.f32 %v2877_v49 }
0x1415   :  { %2135 = vrot.lane.b32.xlu0 %v2133_v41, %s3095_s6  ;;  %vm2123_vm3 = vmor %vm2121_vm2, %vm2122_vm0 }
0x1416   :  { %v2118_v22 = vsub.f32 1.0, %v2117_v55  ;;  %v2275_v55 = vld [vmem:[#allocation10 + $0x170] sm:$0xff] }
0x1417   :  { %2291 = vmatpush.msrb.mxu1 %v2275_v55 }
0x1418   :  { %v2119_v32 = vmul.f32 %v2877_v49, %v2118_v22  ;;  %v2272_v22 = vld [vmem:[#allocation10 + $0x158] sm:$0xff] }
0x1419   :  { %2292 = vmatpush.msrb.mxu1 %v2274_v26 }
0x141a   :  { %v2120_v37 = vadd.f32 %v2877_v49, %v2119_v32 }
0x141b   :  { %2293 = vmatpush.msrb.mxu1 %v2273_v39 }
0x141c   :  { %v2124_v11 = vsel %vm2123_vm3, %v2877_v49, %v2120_v37  ;;  %v2270_v37 = vld [vmem:[#allocation10 + $0x148] sm:$0xff] }
0x141d   :  { %v2129_v12 = vsel %vm2126_vm4, %v2128_v17, %v2124_v11  ;;  %2294 = vmatpush.msrb.mxu1 %v2272_v22 }
0x1487   :  { %v2136_v4 = vpop.permute.xlu0 %2135 }
0x1488   :  { %v3994_v10 = vadd.f32 %v2136_v4, %v2132_v34  ;;  %v2271_v34 = vld [vmem:[#allocation10 + $0x150] sm:$0xff] }
0x1489   :  { %2295 = vmatpush.msrb.mxu1 %v2271_v34 }
0x148a   :  { %2878 = vtanh.f32 %v3994_v10 }
0x148b   :  { %2296 = vmatpush.msrb.mxu1 %v2270_v37 }
0x148d   :  { %2297 = vmatpush.msrb.mxu1 %v2269_v54 }
0x148f   :  { %2440 = vmatpush.msra.mxu1 %v3984_v33 }
0x1490   :  { %v2879_v38 = vpop.eup %2878 }
0x1491   :  { %v2140_v42 = vmul.f32 %v2879_v38, %v2129_v12  ;;  %2441 = vmatpush.msra.mxu1 %v3987_v59 }
0x1493   :  { %2151 = vrot.lane.b32.xlu1 %v2140_v42, %s3095_s6  ;;  %2442 = vmatpush.msra.mxu1 %v3991_v9 }
0x1495   :  { %2443 = vmatpush.msra.mxu1 %v3996_v45 }
0x1497   :  { %2444 = vmatpush.msra.mxu1 %v4000_v8 }
0x1499   :  { %2445 = vmatpush.msra.mxu1 %v4003_v16 }
0x149b   :  { %2446 = vmatpush.msra.mxu1 %v4006_v2 }
0x149d   :  { %2447 = vmatpush.msra.mxu1 %v4009_v25 }
0x1505   :  { %v2152_v14 = vpop.permute.xlu1 %2151 }
0x1506   :  { %2694 = vmatmul.msk.f32.vlgmr.msra.gmra.mxu2 %vm478_vm10, %v2152_v14  ;;  %2695 = vmatmul.msk.f32.vlgmr.msra.gmra.mxu3 %vm478_vm10, %v2152_v14 }
0x1507   :  { %2696 = vmatmul.msk.f32.vlgmr.msra.gmra.mxu0 %vm478_vm10, %v2152_v14  ;;  %2460 = vmatpush.msra.mxu2 %v2924_v27 }
0x1509   :  { %2461 = vmatpush.msra.mxu2 %v2925_v56 }
0x150b   :  { %2462 = vmatpush.msra.mxu2 %v2926_v46 }
0x150d   :  { %2463 = vmatpush.msra.mxu2 %v2927_v50 }
0x150f   :  { %2464 = vmatpush.msra.mxu2 %v2928_v28 }
0x1511   :  { %2465 = vmatpush.msra.mxu2 %v2929_v30 }
0x1513   :  { %2466 = vmatpush.msra.mxu2 %v2930_v63 }
0x1515   :  { %2467 = vmatpush.msra.mxu2 %v2931_v15 }
0x1584   :  { %v2215_v51 = vpop.f32.mrf.mxu0 }
0x1585   :  { %v2219_v21 = vadd.f32 %v2215_v51, %v3864_v48 }
0x1587   :  { %v2698_v52 = vmul.f32 -1.442695, %v2219_v21 }
0x1589   :  { %v2195_v40 = vpop.f32.mrf.mxu3  ;;  %v4037_v8 = vpop.f32.mrf.mxu2 }
0x158a   :  { %v2218_v7 = vadd.f32 %v2195_v40, %v3866_v29 }
0x158c   :  { %v2697_v13 = vmul.f32 -1.442695, %v2218_v7 }
0x158e   :  { %2880 = vpow2.f32 %v2697_v13 }
0x1594   :  { %v2881_v20 = vpop.eup %2880 }
0x1595   :  { %v2226_v62 = vadd.f32 1.0, %v2881_v20 }
0x1597   :  { %2882 = vrcp.f32 %v2226_v62  ;;  %v2239_v41 = vand.u32 2147483648, %v2226_v62  ;;  %v2237_v0 = vand.u32 2147483647, %v2226_v62  ;;  %vm2233_vm6 = vweird.f32 %v2226_v62 }
0x1598   :  { %2884 = vtanh.f32 %v2219_v21 }
0x1599   :  { %v2240_v29 = vor.u32 1.1754944e-38, %v2239_v41  ;;  %vm2238_vm8 = vcmp.eq.f32.partialorder %v2237_v0, 8.507059e+37  ;;  %2886 = vpow2.f32 %v2698_v52  ;;  %v2402_v0 = vld [vmem:[#allocation10 + $0x1b0] sm:$0xff]  ;;  %v2397_v52 = vld [vmem:[#allocation10 + $0x188] sm:$0xff] }
0x159d   :  { %v2883_v24 = vpop.eup %2882 }
0x159e   :  { %v2229_v57 = vmul.f32 %v2883_v24, %v2226_v62  ;;  %vm2234_vm5 = vweird.f32 %v2883_v24  ;;  %v2885_v53 = vpop.eup %2884 }
0x159f   :  { %vm2235_vm7 = vmor %vm2233_vm6, %vm2234_vm5  ;;  %v2887_v48 = vpop.eup %2886 }
0x15a0   :  { %v2230_v19 = vsub.f32 1.0, %v2229_v57  ;;  %v2227_v49 = vadd.f32 1.0, %v2887_v48  ;;  %v2396_v48 = vld [vmem:[#allocation10 + $0x180] sm:$0xff] }
0x15a2   :  { %v2231_v3 = vmul.f32 %v2883_v24, %v2230_v19  ;;  %2888 = vrcp.f32 %v2227_v49  ;;  %v2254_v14 = vand.u32 2147483648, %v2227_v49  ;;  %vm2248_vm1 = vweird.f32 %v2227_v49 }
0x15a3   :  { %v2252_v27 = vand.u32 2147483647, %v2227_v49 }
0x15a4   :  { %v2232_v6 = vadd.f32 %v2883_v24, %v2231_v3  ;;  %v2255_v59 = vor.u32 1.1754944e-38, %v2254_v14  ;;  %v2403_v3 = vld [vmem:[#allocation10 + $0x1b8] sm:$0xff] }
0x15a5   :  { %vm2253_vm12 = vcmp.eq.f32.partialorder %v2252_v27, 8.507059e+37  ;;  %2417 = vmatpush.msrb.mxu0 %v2403_v3 }
0x15a6   :  { %v2236_v58 = vsel %vm2235_vm7, %v2883_v24, %v2232_v6  ;;  %v2401_v6 = vld [vmem:[#allocation10 + $0x1a8] sm:$0xff] }
0x15a7   :  { %v2241_v23 = vsel %vm2238_vm8, %v2240_v29, %v2236_v58  ;;  %2418 = vmatpush.msrb.mxu0 %v2402_v0  ;;  %v2400_v29 = vld [vmem:[#allocation10 + $0x1a0] sm:$0xff]  ;;  %v2399_v58 = vld [vmem:[#allocation10 + $0x198] sm:$0xff] }
0x15a8   :  { %v2260_v35 = vmul.f32 %v2885_v53, %v2241_v23  ;;  %v2889_v32 = vpop.eup %2888  ;;  %v2259_v17 = vmul.f32 %v2241_v23, %v3994_v10  ;;  %v2398_v23 = vld [vmem:[#allocation10 + $0x190] sm:$0xff] }
0x15a9   :  { %v2244_v4 = vmul.f32 %v2889_v32, %v2227_v49  ;;  %vm2249_vm9 = vweird.f32 %v2889_v32  ;;  %2419 = vmatpush.msrb.mxu0 %v2401_v6 }
0x15aa   :  { %2262 = vrot.lane.b32.xlu2 %v2260_v35, %s3095_s6  ;;  %vm2250_vm11 = vmor %vm2248_vm1, %vm2249_vm9 }
0x15ab   :  { %v2245_v61 = vsub.f32 1.0, %v2244_v4  ;;  %2420 = vmatpush.msrb.mxu0 %v2400_v29 }
0x15ad   :  { %v2246_v11 = vmul.f32 %v2889_v32, %v2245_v61  ;;  %2421 = vmatpush.msrb.mxu0 %v2399_v58 }
0x15af   :  { %v2247_v42 = vadd.f32 %v2889_v32, %v2246_v11  ;;  %2422 = vmatpush.msrb.mxu0 %v2398_v23 }
0x15b1   :  { %v2251_v33 = vsel %vm2250_vm11, %v2889_v32, %v2247_v42  ;;  %2423 = vmatpush.msrb.mxu0 %v2397_v52 }
0x15b2   :  { %v2256_v10 = vsel %vm2253_vm12, %v2255_v59, %v2251_v33 }
0x15b3   :  { %2424 = vmatpush.msrb.mxu0 %v2396_v48 }
0x1604   :  { %v2263_v38 = vpop.permute.xlu2 %2262 }
0x1605   :  { %v4025_v12 = vadd.f32 %v2263_v38, %v2259_v17 }
0x1607   :  { %2890 = vtanh.f32 %v4025_v12 }
0x160d   :  { %v2891_v9 = vpop.eup %2890 }
0x160e   :  { %v2267_v56 = vmul.f32 %v2891_v9, %v2256_v10 }
0x1610   :  { %2278 = vrot.lane.b32.xlu0 %v2267_v56, %s3095_s6 }
0x1682   :  { %v2279_v45 = vpop.permute.xlu0 %2278 }
0x1683   :  { %2699 = vmatmul.msk.f32.vlgmr.msrb.gmra.mxu1 %vm478_vm10, %v2279_v45  ;;  %2700 = vmatmul.msk.f32.vlgmr.msrb.gmra.mxu2 %vm478_vm10, %v2279_v45 }
0x1684   :  { %2701 = vmatmul.msk.f32.vlgmr.msrb.gmra.mxu3 %vm478_vm10, %v2279_v45 }
0x1700   :  { %v4050_v38 = vpop.f32.mrf.mxu1 }
0x1706   :  { %v2322_v16 = vpop.f32.mrf.mxu2 }
0x1707   :  { %v2345_v46 = vadd.f32 %v2322_v16, %v3868_v18  ;;  %v2342_v25 = vpop.f32.mrf.mxu3 }
0x1708   :  { %v2346_v63 = vadd.f32 %v2342_v25, %v3870_v44 }
0x1709   :  { %v2702_v2 = vmul.f32 -1.442695, %v2345_v46 }
0x170a   :  { %v2703_v19 = vmul.f32 -1.442695, %v2346_v63 }
0x170b   :  { %2892 = vpow2.f32 %v2702_v2 }
0x1711   :  { %v2893_v50 = vpop.eup %2892 }
0x1712   :  { %v2353_v28 = vadd.f32 1.0, %v2893_v50 }
0x1714   :  { %2894 = vrcp.f32 %v2353_v28  ;;  %v2366_v7 = vand.u32 2147483648, %v2353_v28  ;;  %v2364_v20 = vand.u32 2147483647, %v2353_v28  ;;  %vm2360_vm14 = vweird.f32 %v2353_v28 }
0x1715   :  { %2896 = vtanh.f32 %v2346_v63 }
0x1716   :  { %v2367_v18 = vor.u32 1.1754944e-38, %v2366_v7  ;;  %vm2365_vm0 = vcmp.eq.f32.partialorder %v2364_v20, 8.507059e+37  ;;  %2898 = vpow2.f32 %v2703_v19  ;;  %v2530_v7 = vld [vmem:[#allocation10 + $0x1f8] sm:$0xff]  ;;  %v2528_v20 = vld [vmem:[#allocation10 + $0x1e8] sm:$0xff]  ;;  %v2523_v19 = vld [vmem:[#allocation10 + $0x1c0] sm:$0xff] }
0x1717   :  { %2544 = vmatpush.msra.mxu3 %v2530_v7 }
0x171a   :  { %v2895_v30 = vpop.eup %2894 }
0x171b   :  { %v2356_v15 = vmul.f32 %v2895_v30, %v2353_v28  ;;  %vm2361_vm13 = vweird.f32 %v2895_v30  ;;  %v2897_v24 = vpop.eup %2896 }
0x171c   :  { %vm2362_vm15 = vmor %vm2360_vm14, %vm2361_vm13  ;;  %v2899_v44 = vpop.eup %2898 }
0x171d   :  { %v2357_v40 = vsub.f32 1.0, %v2356_v15  ;;  %v2354_v41 = vadd.f32 1.0, %v2899_v44 }
0x171f   :  { %v2358_v13 = vmul.f32 %v2895_v30, %v2357_v40  ;;  %2900 = vrcp.f32 %v2354_v41  ;;  %v2381_v32 = vand.u32 2147483648, %v2354_v41  ;;  %vm2375_vm3 = vweird.f32 %v2354_v41 }
0x1720   :  { %v2379_v34 = vand.u32 2147483647, %v2354_v41 }
0x1721   :  { %v2359_v62 = vadd.f32 %v2895_v30, %v2358_v13  ;;  %v2382_v37 = vor.u32 1.1754944e-38, %v2381_v32  ;;  %v2529_v13 = vld [vmem:[#allocation10 + $0x1f0] sm:$0xff] }
0x1722   :  { %vm2380_vm5 = vcmp.eq.f32.partialorder %v2379_v34, 8.507059e+37  ;;  %2545 = vmatpush.msra.mxu3 %v2529_v13 }
0x1723   :  { %v2363_v51 = vsel %vm2362_vm15, %v2895_v30, %v2359_v62  ;;  %v2527_v62 = vld [vmem:[#allocation10 + $0x1e0] sm:$0xff] }
0x1724   :  { %v2368_v21 = vsel %vm2365_vm0, %v2367_v18, %v2363_v51  ;;  %2546 = vmatpush.msra.mxu3 %v2528_v20  ;;  %v2526_v18 = vld [vmem:[#allocation10 + $0x1d8] sm:$0xff] }
0x1725   :  { %v2387_v57 = vmul.f32 %v2897_v24, %v2368_v21  ;;  %v2901_v53 = vpop.eup %2900  ;;  %v2386_v55 = vmul.f32 %v2368_v21, %v4025_v12  ;;  %v2525_v24 = vld [vmem:[#allocation10 + $0x1d0] sm:$0xff] }
0x1726   :  { %v2371_v35 = vmul.f32 %v2901_v53, %v2354_v41  ;;  %vm2376_vm2 = vweird.f32 %v2901_v53  ;;  %2547 = vmatpush.msra.mxu3 %v2527_v62 }
0x1727   :  { %2389 = vrot.lane.b32.xlu1 %v2387_v57, %s3095_s6  ;;  %vm2377_vm4 = vmor %vm2375_vm3, %vm2376_vm2  ;;  %v2524_v57 = vld [vmem:[#allocation10 + $0x1c8] sm:$0xff] }
0x1728   :  { %v2372_v49 = vsub.f32 1.0, %v2371_v35  ;;  %2548 = vmatpush.msra.mxu3 %v2526_v18 }
0x172a   :  { %v2373_v36 = vmul.f32 %v2901_v53, %v2372_v49  ;;  %2549 = vmatpush.msra.mxu3 %v2525_v24 }
0x172c   :  { %v2374_v22 = vadd.f32 %v2901_v53, %v2373_v36  ;;  %2550 = vmatpush.msra.mxu3 %v2524_v57 }
0x172e   :  { %v2378_v4 = vsel %vm2377_vm4, %v2901_v53, %v2374_v22  ;;  %2551 = vmatpush.msra.mxu3 %v2523_v19 }
0x172f   :  { %v2383_v61 = vsel %vm2380_vm5, %v2382_v37, %v2378_v4  ;;  %v2723_v37 = vld [vmem:[#allocation11] ss:$0 sm:$0xff] }
0x1799   :  { %v2390_v26 = vpop.permute.xlu1 %2389 }
0x179a   :  { %v4043_v39 = vadd.f32 %v2390_v26, %v2386_v55  ;;  %v1793_v55 = vadd.f32 %v3948_v31, %v3977_v5 }
0x179c   :  { %2902 = vtanh.f32 %v4043_v39  ;;  %v1921_v26 = vadd.f32 %v3979_v60, %v1793_v55 }
0x17a2   :  { %v2903_v54 = vpop.eup %2902 }
0x17a3   :  { %v2394_v11 = vmul.f32 %v2903_v54, %v2383_v61 }
0x17a5   :  { %2405 = vrot.lane.b32.xlu2 %v2394_v11, %s3095_s6 }
0x17ff   :  { %v2406_v17 = vpop.permute.xlu2 %2405 }
0x1800   :  { %2704 = vmatmul.msk.f32.vlgmr.msrb.gmra.mxu0 %vm478_vm10, %v2406_v17  ;;  %2705 = vmatmul.msk.f32.vlgmr.msra.gmra.mxu1 %vm478_vm10, %v2406_v17 }
0x1801   :  { %2706 = vmatmul.msk.f32.vlgmr.msra.gmra.mxu2 %vm478_vm10, %v2406_v17 }
0x187d   :  { %v2449_v12 = vpop.f32.mrf.mxu1  ;;  %v2426_v32 = vpop.f32.mrf.mxu0 }
0x187e   :  { %v2472_v42 = vadd.f32 %v2449_v12, %v3872_v43 }
0x1880   :  { %v2707_v14 = vmul.f32 -1.442695, %v2472_v42 }
0x1882   :  { %2904 = vpow2.f32 %v2707_v14 }
0x1884   :  { %v2469_v59 = vpop.f32.mrf.mxu2 }
0x1885   :  { %v2473_v10 = vadd.f32 %v2469_v59, %v3874_v47 }
0x1887   :  { %v2708_v15 = vmul.f32 -1.442695, %v2473_v10 }
0x1888   :  { %v2905_v27 = vpop.eup %2904 }
0x1889   :  { %v2480_v33 = vadd.f32 1.0, %v2905_v27 }
0x188b   :  { %2906 = vrcp.f32 %v2480_v33  ;;  %v2493_v16 = vand.u32 2147483648, %v2480_v33  ;;  %v2491_v2 = vand.u32 2147483647, %v2480_v33  ;;  %vm2487_vm7 = vweird.f32 %v2480_v33 }
0x188c   :  { %2908 = vtanh.f32 %v2473_v10 }
0x188d   :  { %v2494_v43 = vor.u32 1.1754944e-38, %v2493_v16  ;;  %vm2492_vm9 = vcmp.eq.f32.partialorder %v2491_v2, 8.507059e+37  ;;  %2910 = vpow2.f32 %v2708_v15 }
0x1891   :  { %v2907_v9 = vpop.eup %2906 }
0x1892   :  { %v2483_v56 = vmul.f32 %v2907_v9, %v2480_v33  ;;  %vm2488_vm6 = vweird.f32 %v2907_v9  ;;  %v2909_v25 = vpop.eup %2908 }
0x1893   :  { %vm2489_vm8 = vmor %vm2487_vm7, %vm2488_vm6  ;;  %v2911_v47 = vpop.eup %2910 }
0x1894   :  { %v2484_v45 = vsub.f32 1.0, %v2483_v56  ;;  %v2481_v40 = vadd.f32 1.0, %v2911_v47 }
0x1896   :  { %v2485_v46 = vmul.f32 %v2907_v9, %v2484_v45  ;;  %2912 = vrcp.f32 %v2481_v40  ;;  %v2508_v58 = vand.u32 2147483648, %v2481_v40  ;;  %vm2502_vm11 = vweird.f32 %v2481_v40 }
0x1897   :  { %v2506_v53 = vand.u32 2147483647, %v2481_v40 }
0x1898   :  { %v2486_v50 = vadd.f32 %v2907_v9, %v2485_v46  ;;  %v2509_v35 = vor.u32 1.1754944e-38, %v2508_v58 }
0x1899   :  { %vm2507_vm13 = vcmp.eq.f32.partialorder %v2506_v53, 8.507059e+37 }
0x189a   :  { %v2490_v28 = vsel %vm2489_vm8, %v2907_v9, %v2486_v50 }
0x189b   :  { %v2495_v30 = vsel %vm2492_vm9, %v2494_v43, %v2490_v28 }
0x189c   :  { %v2514_v63 = vmul.f32 %v2909_v25, %v2495_v30  ;;  %v2913_v51 = vpop.eup %2912  ;;  %v2513_v3 = vmul.f32 %v2495_v30, %v4043_v39  ;;  %v2048_v39 = vadd.f32 %v4016_v1, %v1921_v26 }
0x189d   :  { %v2498_v21 = vmul.f32 %v2913_v51, %v2481_v40  ;;  %vm2503_vm1 = vweird.f32 %v2913_v51 }
0x189e   :  { %2516 = vrot.lane.b32.xlu0 %v2514_v63, %s3095_s6  ;;  %vm2504_vm12 = vmor %vm2502_vm11, %vm2503_vm1  ;;  %v2175_v22 = vadd.f32 %v4037_v8, %v2048_v39 }
0x189f   :  { %v2499_v44 = vsub.f32 1.0, %v2498_v21 }
0x18a0   :  { %v2302_v34 = vadd.f32 %v4050_v38, %v2175_v22 }
0x18a1   :  { %v2500_v41 = vmul.f32 %v2913_v51, %v2499_v44 }
0x18a2   :  { %v2429_v4 = vadd.f32 %v2426_v32, %v2302_v34 }
0x18a3   :  { %v2501_v29 = vadd.f32 %v2913_v51, %v2500_v41 }
0x18a5   :  { %v2505_v23 = vsel %vm2504_vm12, %v2913_v51, %v2501_v29 }
0x18a6   :  { %v2510_v48 = vsel %vm2507_vm13, %v2509_v35, %v2505_v23 }
0x1910   :  { %v2517_v0 = vpop.permute.xlu0 %2516 }
0x1911   :  { %v2519_v6 = vadd.f32 %v2517_v0, %v2513_v3 }
0x1913   :  { %2914 = vtanh.f32 %v2519_v6 }
0x1919   :  { %v2915_v52 = vpop.eup %2914 }
0x191a   :  { %v2521_v49 = vmul.f32 %v2915_v52, %v2510_v48 }
0x191c   :  { %2532 = vrot.lane.b32.xlu1 %v2521_v49, %s3095_s6 }
0x198e   :  { %v2533_v36 = vpop.permute.xlu1 %2532 }
0x198f   :  { %2709 = vmatmul.msk.f32.vlgmr.msra.gmra.mxu3 %vm478_vm10, %v2533_v36 }
0x1a12   :  { %v2553_v54 = vpop.f32.mrf.mxu3 }
0x1a13   :  { %v2556_v61 = vadd.f32 %v2553_v54, %v2429_v4 }
0x1a15   :  { %v2560_v11 = vadd.f32 %v2723_v37, %v2556_v61 }
0x1a17   :  { %2561 = vst [vmem:[%s4080_s13] sm:$0xff] %v2560_v11 }
0x1a18   :  { %2566 = vsyncpa [#allocation4], 1 }
0x1a19   :  { %2567 = vsyncpa [#allocation6], 1 }
0x1a1a   :  { %2568 = vsyncpa [#allocation9], 1 }
0x1a1b   :  { %2569 = vsyncpa [#allocation12], 1 }

</bundles_post_ra>
